<compile_context>
chip_gen: v7x
topology: tpu7x:2x2x1
jax: 0.10.0
libtpu: 0.0.40
codegen_flags: <defaults>
</compile_context>

<pallas_src>
import functools

import jax
import jax.numpy as jnp
from jax.experimental import pallas as pl
from jax.experimental.pallas import tpu as pltpu


# Packed small-parameter slab row layout (zero-padded to max width):
#   row 0           : bias of layer 0
#   rows 1+3*(i-1)..: [bias, gamma, beta] of layers i = 1..4
#   row 13          : bias of layer 5
_B0_ROW = 0
_B5_ROW = 13


def _blk_rows(i):  # i in 1..4
    base = 1 + 3 * (i - 1)
    return base, base + 1, base + 2


# ------------------------------ fused kernel -------------------------------- #

def _generator_kernel(z_ref, w0, w1, w2, w3, w4_hbm, w5_hbm, pk_ref,
                      o_ref, w4_buf, w5_buf, sems):
    """Whole 6-layer MLP in one kernel; activations stay on-chip.

    w4/w5 are raw HBM refs; their DMA into VMEM scratch is started first and
    overlapped with layers 0-3.
    """
    cp4 = pltpu.make_async_copy(w4_hbm, w4_buf, sems.at[0])
    cp5 = pltpu.make_async_copy(w5_hbm, w5_buf, sems.at[1])
    cp4.start()
    cp5.start()

    def row(r, n):
        # (1, n) f32 slice of the packed small-parameter slab.
        return pk_ref[r:r + 1, :n]

    def dot_bias(x_f32, w_bf16, b):
        # bf16 x bf16 MXU matmul with f32 accumulation; bias add in f32.
        return jnp.dot(x_f32.astype(jnp.bfloat16), w_bf16,
                       preferred_element_type=jnp.float32) + b

    def lrelu(h):
        # LeakyReLU(0.2): single vmul + vmax per vreg.
        return jnp.maximum(h, 0.2 * h)

    def bn(h, g, be):
        # Training-mode BatchNorm1d over the batch dim, biased var, eps=0.8.
        mean = jnp.mean(h, axis=0, keepdims=True)
        d = h - mean
        var = jnp.mean(d * d, axis=0, keepdims=True)
        return d * jax.lax.rsqrt(var + 0.8) * g + be

    n0 = w0.shape[1]
    n1 = w1.shape[1]
    n2 = w2.shape[1]
    n3 = w3.shape[1]
    n4 = w4_buf.shape[1]
    n5 = w5_buf.shape[1]

    h = lrelu(dot_bias(z_ref[...], w0[...], row(_B0_ROW, n0)))

    b1, g1, e1 = _blk_rows(1)
    h = lrelu(bn(dot_bias(h, w1[...], row(b1, n1)), row(g1, n1), row(e1, n1)))
    b2, g2, e2 = _blk_rows(2)
    h = lrelu(bn(dot_bias(h, w2[...], row(b2, n2)), row(g2, n2), row(e2, n2)))
    b3, g3, e3 = _blk_rows(3)
    h = lrelu(bn(dot_bias(h, w3[...], row(b3, n3)), row(g3, n3), row(e3, n3)))

    cp4.wait()
    b4, g4, e4 = _blk_rows(4)
    h = lrelu(bn(dot_bias(h, w4_buf[...], row(b4, n4)), row(g4, n4), row(e4, n4)))

    cp5.wait()
    o_ref[...] = jnp.tanh(dot_bias(h, w5_buf[...], row(_B5_ROW, n5)))


# ----------------------------- pallas wrapper -------------------------------- #

def generator_pallas(z, params):
    """Single fused pallas_call over the whole generator MLP."""
    weights = params["weights"]
    packed = params["packed"]

    batch = z.shape[0]
    out_feat = weights[5].shape[1]

    vmem_spec = pl.BlockSpec(memory_space=pltpu.MemorySpace.VMEM)
    any_spec = pl.BlockSpec(memory_space=pl.ANY)   # w4/w5 stay in HBM; manual DMA

    # Scoped-VMEM budget computed from the buffers that actually live in VMEM
    # (bf16 weights, packed slab, a few f32 activation slabs, output) plus a
    # generous margin for Mosaic internals; capped well below v7x's 64 MiB.
    w_bytes = sum(w.shape[0] * w.shape[1] * 2 for w in weights)
    packed_bytes = packed.shape[0] * packed.shape[1] * 4
    act_bytes = 6 * batch * max(1024, out_feat) * 4
    vmem_limit = min(48 << 20, w_bytes + packed_bytes + act_bytes + (8 << 20))

    return pl.pallas_call(
        _generator_kernel,
        out_shape=jax.ShapeDtypeStruct((batch, out_feat), jnp.float32),
        in_specs=[vmem_spec] * 5 + [any_spec, any_spec, vmem_spec],
        out_specs=vmem_spec,
        scratch_shapes=[
            pltpu.VMEM(weights[4].shape, jnp.bfloat16),   # w4 landing buffer
            pltpu.VMEM(weights[5].shape, jnp.bfloat16),   # w5 landing buffer
            pltpu.SemaphoreType.DMA((2,)),
        ],
        compiler_params=pltpu.CompilerParams(vmem_limit_bytes=int(vmem_limit)),
    )(z, weights[0], weights[1], weights[2], weights[3],
      weights[4], weights[5], packed)


# ------------------------------- parameters ---------------------------------- #

def init_generator_params(key, latent_dim, img_size, channels):
    dims = [latent_dim, 64, 128, 256, 512, 1024, channels * img_size * img_size]
    n_layers = len(dims) - 1                      # 6
    keys = jax.random.split(key, n_layers)

    weights, biases = [], []
    for i in range(n_layers):
        kw, kb = jax.random.split(keys[i])
        # PyTorch nn.Linear default init: U(-1/sqrt(in), 1/sqrt(in)).
        bound = float(dims[i]) ** -0.5
        w = jax.random.uniform(kw, (dims[i], dims[i + 1]), jnp.float32,
                               -bound, bound)
        b = jax.random.uniform(kb, (dims[i + 1],), jnp.float32, -bound, bound)
        weights.append(w.astype(jnp.bfloat16))    # bf16 storage: half the DMA
        biases.append(b)

    # BatchNorm1d affine params for hidden blocks 1..4 (not first, not output).
    gammas = {i: jnp.ones((dims[i + 1],), jnp.float32) for i in range(1, 5)}
    betas = {i: jnp.zeros((dims[i + 1],), jnp.float32) for i in range(1, 5)}

    # Pack all 14 small vectors into one zero-padded (14, P) f32 slab.
    pad_to = max(dims[1:])

    def pad(v):
        return jnp.pad(v, (0, pad_to - v.shape[0]))

    rows = [pad(biases[0])]
    for i in range(1, 5):
        rows += [pad(biases[i]), pad(gammas[i]), pad(betas[i])]
    rows.append(pad(biases[5]))
    packed = jnp.stack(rows, axis=0)              # (14, P) f32

    return {"weights": weights, "packed": packed}


# -------------------------------- forward ------------------------------------- #

@functools.partial(jax.jit, static_argnums=(2, 3))
def generator_forward(z, params, img_size, channels):
    img = generator_pallas(z, params)                     # (B, C*H*W) f32
    # view(B, C, H, W)  -- NCHW, same as PyTorch
    return img.reshape(img.shape[0], channels, img_size, img_size)


# ---------------------------------- main --------------------------------------- #

if __name__ == "__main__":
    LATENT_DIM = 32
    IMG_SIZE = 16
    CHANNELS = 4
    BATCH = 8

    key = jax.random.PRNGKey(0)
    kz, kp = jax.random.split(key)

    z = jax.random.normal(kz, (BATCH, LATENT_DIM), jnp.float32)
    params = init_generator_params(kp, LATENT_DIM, IMG_SIZE, CHANNELS)

    img = generator_forward(z, params, IMG_SIZE, CHANNELS)
    img = jax.block_until_ready(img)

    assert img.shape == (BATCH, CHANNELS, IMG_SIZE, IMG_SIZE), img.shape
    assert bool(jnp.all(jnp.isfinite(img)))
    assert bool(jnp.all(jnp.abs(img) <= 1.0))  # tanh output range

    print("KERNEL_OK")
</pallas_src>

<mosaic_0001>
module attributes {stable_mosaic.version = 11 : i64} {
  func.func @_generator_kernel(%arg0: memref<8x32xf32, #tpu.memory_space<vmem>>, %arg1: memref<32x64xbf16, #tpu.memory_space<vmem>>, %arg2: memref<64x128xbf16, #tpu.memory_space<vmem>>, %arg3: memref<128x256xbf16, #tpu.memory_space<vmem>>, %arg4: memref<256x512xbf16, #tpu.memory_space<vmem>>, %arg5: memref<512x1024xbf16, #tpu.memory_space<any>>, %arg6: memref<1024x1024xbf16, #tpu.memory_space<any>>, %arg7: memref<14x1024xf32, #tpu.memory_space<vmem>>, %arg8: memref<8x1024xf32, #tpu.memory_space<vmem>>, %arg9: memref<512x1024xbf16, #tpu.memory_space<vmem>>, %arg10: memref<1024x1024xbf16, #tpu.memory_space<vmem>>, %arg11: memref<2x!tpu.dma_semaphore, #tpu.memory_space<semaphore_mem>>) attributes {dimension_semantics = [], scalar_prefetch = 0 : i64, scratch_operands = 3 : i64, tpu.core_type = #tpu.core_type<tc>} {
    %c0_i32 = arith.constant 0 : i32
    %0 = tpu.memref_slice %arg11[%c0_i32] : memref<2x!tpu.dma_semaphore, #tpu.memory_space<semaphore_mem>> -> memref<1x!tpu.dma_semaphore, #tpu.memory_space<semaphore_mem>>
    %1 = tpu.memref_squeeze %0 : memref<1x!tpu.dma_semaphore, #tpu.memory_space<semaphore_mem>> -> memref<!tpu.dma_semaphore, #tpu.memory_space<semaphore_mem>>
    tpu.enqueue_dma source(%arg5 : memref<512x1024xbf16, #tpu.memory_space<any>>) target(%arg9 : memref<512x1024xbf16, #tpu.memory_space<vmem>>) target_semaphore(%1 : memref<!tpu.dma_semaphore, #tpu.memory_space<semaphore_mem>>)
    %c1_i32 = arith.constant 1 : i32
    %2 = tpu.memref_slice %arg11[%c1_i32] : memref<2x!tpu.dma_semaphore, #tpu.memory_space<semaphore_mem>> -> memref<1x!tpu.dma_semaphore, #tpu.memory_space<semaphore_mem>>
    %3 = tpu.memref_squeeze %2 : memref<1x!tpu.dma_semaphore, #tpu.memory_space<semaphore_mem>> -> memref<!tpu.dma_semaphore, #tpu.memory_space<semaphore_mem>>
    tpu.enqueue_dma source(%arg6 : memref<1024x1024xbf16, #tpu.memory_space<any>>) target(%arg10 : memref<1024x1024xbf16, #tpu.memory_space<vmem>>) target_semaphore(%3 : memref<!tpu.dma_semaphore, #tpu.memory_space<semaphore_mem>>)
    %c0 = arith.constant 0 : index
    %c0_0 = arith.constant 0 : index
    %4 = vector.load %arg0[%c0, %c0_0] : memref<8x32xf32, #tpu.memory_space<vmem>>, vector<8x32xf32>
    %c0_1 = arith.constant 0 : index
    %c0_2 = arith.constant 0 : index
    %5 = vector.load %arg1[%c0_1, %c0_2] : memref<32x64xbf16, #tpu.memory_space<vmem>>, vector<32x64xbf16>
    %c0_3 = arith.constant 0 : index
    %c0_4 = arith.constant 0 : index
    %6 = vector.load %arg7[%c0_3, %c0_4] : memref<14x1024xf32, #tpu.memory_space<vmem>>, vector<1x64xf32>
    %7 = arith.truncf %4 : vector<8x32xf32> to vector<8x32xbf16>
    %cst = arith.constant dense<0.000000e+00> : vector<8x64xf32>
    %8 = tpu.matmul %7, %5, %cst {dimension_numbers = #tpu.dot_dimension_numbers<[1], [0], [0], [1], [0, 0, 1, 1], [], []>} : vector<8x32xbf16>, vector<32x64xbf16>, vector<8x64xf32> -> vector<8x64xf32>
    %9 = vector.broadcast %6 : vector<1x64xf32> to vector<8x64xf32>
    %10 = arith.addf %8, %9 : vector<8x64xf32>
    %cst_5 = arith.constant 2.000000e-01 : f32
    %11 = vector.broadcast %cst_5 : f32 to vector<8x64xf32>
    %12 = arith.mulf %11, %10 : vector<8x64xf32>
    %13 = arith.maximumf %10, %12 : vector<8x64xf32>
    %c0_6 = arith.constant 0 : index
    %c0_7 = arith.constant 0 : index
    %14 = vector.load %arg2[%c0_6, %c0_7] : memref<64x128xbf16, #tpu.memory_space<vmem>>, vector<64x128xbf16>
    %c1 = arith.constant 1 : index
    %c0_8 = arith.constant 0 : index
    %15 = vector.load %arg7[%c1, %c0_8] : memref<14x1024xf32, #tpu.memory_space<vmem>>, vector<1x128xf32>
    %16 = arith.truncf %13 : vector<8x64xf32> to vector<8x64xbf16>
    %cst_9 = arith.constant dense<0.000000e+00> : vector<8x128xf32>
    %17 = tpu.matmul %16, %14, %cst_9 {dimension_numbers = #tpu.dot_dimension_numbers<[1], [0], [0], [1], [0, 0, 1, 1], [], []>} : vector<8x64xbf16>, vector<64x128xbf16>, vector<8x128xf32> -> vector<8x128xf32>
    %18 = vector.broadcast %15 : vector<1x128xf32> to vector<8x128xf32>
    %19 = arith.addf %17, %18 : vector<8x128xf32>
    %c2 = arith.constant 2 : index
    %c0_10 = arith.constant 0 : index
    %20 = vector.load %arg7[%c2, %c0_10] : memref<14x1024xf32, #tpu.memory_space<vmem>>, vector<1x128xf32>
    %c3 = arith.constant 3 : index
    %c0_11 = arith.constant 0 : index
    %21 = vector.load %arg7[%c3, %c0_11] : memref<14x1024xf32, #tpu.memory_space<vmem>>, vector<1x128xf32>
    %cst_12 = arith.constant dense<0.000000e+00> : vector<128xf32>
    %22 = vector.multi_reduction <add>, %19, %cst_12 [0] : vector<8x128xf32> to vector<128xf32>
    %23 = vector.shape_cast %22 : vector<128xf32> to vector<1x128xf32>
    %cst_13 = arith.constant 8.000000e+00 : f32
    %24 = vector.broadcast %cst_13 : f32 to vector<1x128xf32>
    %25 = arith.divf %23, %24 : vector<1x128xf32>
    %26 = vector.broadcast %25 : vector<1x128xf32> to vector<8x128xf32>
    %27 = arith.subf %19, %26 : vector<8x128xf32>
    %28 = arith.mulf %27, %27 : vector<8x128xf32>
    %cst_14 = arith.constant dense<0.000000e+00> : vector<128xf32>
    %29 = vector.multi_reduction <add>, %28, %cst_14 [0] : vector<8x128xf32> to vector<128xf32>
    %30 = vector.shape_cast %29 : vector<128xf32> to vector<1x128xf32>
    %cst_15 = arith.constant 8.000000e+00 : f32
    %31 = vector.broadcast %cst_15 : f32 to vector<1x128xf32>
    %32 = arith.divf %30, %31 : vector<1x128xf32>
    %cst_16 = arith.constant 8.000000e-01 : f32
    %33 = vector.broadcast %cst_16 : f32 to vector<1x128xf32>
    %34 = arith.addf %32, %33 : vector<1x128xf32>
    %35 = math.rsqrt %34 : vector<1x128xf32>
    %36 = vector.broadcast %35 : vector<1x128xf32> to vector<8x128xf32>
    %37 = arith.mulf %27, %36 : vector<8x128xf32>
    %38 = vector.broadcast %20 : vector<1x128xf32> to vector<8x128xf32>
    %39 = arith.mulf %37, %38 : vector<8x128xf32>
    %40 = vector.broadcast %21 : vector<1x128xf32> to vector<8x128xf32>
    %41 = arith.addf %39, %40 : vector<8x128xf32>
    %cst_17 = arith.constant 2.000000e-01 : f32
    %42 = vector.broadcast %cst_17 : f32 to vector<8x128xf32>
    %43 = arith.mulf %42, %41 : vector<8x128xf32>
    %44 = arith.maximumf %41, %43 : vector<8x128xf32>
    %c0_18 = arith.constant 0 : index
    %c0_19 = arith.constant 0 : index
    %45 = vector.load %arg3[%c0_18, %c0_19] : memref<128x256xbf16, #tpu.memory_space<vmem>>, vector<128x256xbf16>
    %c4 = arith.constant 4 : index
    %c0_20 = arith.constant 0 : index
    %46 = vector.load %arg7[%c4, %c0_20] : memref<14x1024xf32, #tpu.memory_space<vmem>>, vector<1x256xf32>
    %47 = arith.truncf %44 : vector<8x128xf32> to vector<8x128xbf16>
    %cst_21 = arith.constant dense<0.000000e+00> : vector<8x256xf32>
    %48 = tpu.matmul %47, %45, %cst_21 {dimension_numbers = #tpu.dot_dimension_numbers<[1], [0], [0], [1], [0, 0, 1, 1], [], []>} : vector<8x128xbf16>, vector<128x256xbf16>, vector<8x256xf32> -> vector<8x256xf32>
    %49 = vector.broadcast %46 : vector<1x256xf32> to vector<8x256xf32>
    %50 = arith.addf %48, %49 : vector<8x256xf32>
    %c5 = arith.constant 5 : index
    %c0_22 = arith.constant 0 : index
    %51 = vector.load %arg7[%c5, %c0_22] : memref<14x1024xf32, #tpu.memory_space<vmem>>, vector<1x256xf32>
    %c6 = arith.constant 6 : index
    %c0_23 = arith.constant 0 : index
    %52 = vector.load %arg7[%c6, %c0_23] : memref<14x1024xf32, #tpu.memory_space<vmem>>, vector<1x256xf32>
    %cst_24 = arith.constant dense<0.000000e+00> : vector<256xf32>
    %53 = vector.multi_reduction <add>, %50, %cst_24 [0] : vector<8x256xf32> to vector<256xf32>
    %54 = vector.shape_cast %53 : vector<256xf32> to vector<1x256xf32>
    %cst_25 = arith.constant 8.000000e+00 : f32
    %55 = vector.broadcast %cst_25 : f32 to vector<1x256xf32>
    %56 = arith.divf %54, %55 : vector<1x256xf32>
    %57 = vector.broadcast %56 : vector<1x256xf32> to vector<8x256xf32>
    %58 = arith.subf %50, %57 : vector<8x256xf32>
    %59 = arith.mulf %58, %58 : vector<8x256xf32>
    %cst_26 = arith.constant dense<0.000000e+00> : vector<256xf32>
    %60 = vector.multi_reduction <add>, %59, %cst_26 [0] : vector<8x256xf32> to vector<256xf32>
    %61 = vector.shape_cast %60 : vector<256xf32> to vector<1x256xf32>
    %cst_27 = arith.constant 8.000000e+00 : f32
    %62 = vector.broadcast %cst_27 : f32 to vector<1x256xf32>
    %63 = arith.divf %61, %62 : vector<1x256xf32>
    %cst_28 = arith.constant 8.000000e-01 : f32
    %64 = vector.broadcast %cst_28 : f32 to vector<1x256xf32>
    %65 = arith.addf %63, %64 : vector<1x256xf32>
    %66 = math.rsqrt %65 : vector<1x256xf32>
    %67 = vector.broadcast %66 : vector<1x256xf32> to vector<8x256xf32>
    %68 = arith.mulf %58, %67 : vector<8x256xf32>
    %69 = vector.broadcast %51 : vector<1x256xf32> to vector<8x256xf32>
    %70 = arith.mulf %68, %69 : vector<8x256xf32>
    %71 = vector.broadcast %52 : vector<1x256xf32> to vector<8x256xf32>
    %72 = arith.addf %70, %71 : vector<8x256xf32>
    %cst_29 = arith.constant 2.000000e-01 : f32
    %73 = vector.broadcast %cst_29 : f32 to vector<8x256xf32>
    %74 = arith.mulf %73, %72 : vector<8x256xf32>
    %75 = arith.maximumf %72, %74 : vector<8x256xf32>
    %c0_30 = arith.constant 0 : index
    %c0_31 = arith.constant 0 : index
    %76 = vector.load %arg4[%c0_30, %c0_31] : memref<256x512xbf16, #tpu.memory_space<vmem>>, vector<256x512xbf16>
    %c7 = arith.constant 7 : index
    %c0_32 = arith.constant 0 : index
    %77 = vector.load %arg7[%c7, %c0_32] : memref<14x1024xf32, #tpu.memory_space<vmem>>, vector<1x512xf32>
    %78 = arith.truncf %75 : vector<8x256xf32> to vector<8x256xbf16>
    %cst_33 = arith.constant dense<0.000000e+00> : vector<8x512xf32>
    %79 = tpu.matmul %78, %76, %cst_33 {dimension_numbers = #tpu.dot_dimension_numbers<[1], [0], [0], [1], [0, 0, 1, 1], [], []>} : vector<8x256xbf16>, vector<256x512xbf16>, vector<8x512xf32> -> vector<8x512xf32>
    %80 = vector.broadcast %77 : vector<1x512xf32> to vector<8x512xf32>
    %81 = arith.addf %79, %80 : vector<8x512xf32>
    %c8 = arith.constant 8 : index
    %c0_34 = arith.constant 0 : index
    %82 = vector.load %arg7[%c8, %c0_34] : memref<14x1024xf32, #tpu.memory_space<vmem>>, vector<1x512xf32>
    %c9 = arith.constant 9 : index
    %c0_35 = arith.constant 0 : index
    %83 = vector.load %arg7[%c9, %c0_35] : memref<14x1024xf32, #tpu.memory_space<vmem>>, vector<1x512xf32>
    %cst_36 = arith.constant dense<0.000000e+00> : vector<512xf32>
    %84 = vector.multi_reduction <add>, %81, %cst_36 [0] : vector<8x512xf32> to vector<512xf32>
    %85 = vector.shape_cast %84 : vector<512xf32> to vector<1x512xf32>
    %cst_37 = arith.constant 8.000000e+00 : f32
    %86 = vector.broadcast %cst_37 : f32 to vector<1x512xf32>
    %87 = arith.divf %85, %86 : vector<1x512xf32>
    %88 = vector.broadcast %87 : vector<1x512xf32> to vector<8x512xf32>
    %89 = arith.subf %81, %88 : vector<8x512xf32>
    %90 = arith.mulf %89, %89 : vector<8x512xf32>
    %cst_38 = arith.constant dense<0.000000e+00> : vector<512xf32>
    %91 = vector.multi_reduction <add>, %90, %cst_38 [0] : vector<8x512xf32> to vector<512xf32>
    %92 = vector.shape_cast %91 : vector<512xf32> to vector<1x512xf32>
    %cst_39 = arith.constant 8.000000e+00 : f32
    %93 = vector.broadcast %cst_39 : f32 to vector<1x512xf32>
    %94 = arith.divf %92, %93 : vector<1x512xf32>
    %cst_40 = arith.constant 8.000000e-01 : f32
    %95 = vector.broadcast %cst_40 : f32 to vector<1x512xf32>
    %96 = arith.addf %94, %95 : vector<1x512xf32>
    %97 = math.rsqrt %96 : vector<1x512xf32>
    %98 = vector.broadcast %97 : vector<1x512xf32> to vector<8x512xf32>
    %99 = arith.mulf %89, %98 : vector<8x512xf32>
    %100 = vector.broadcast %82 : vector<1x512xf32> to vector<8x512xf32>
    %101 = arith.mulf %99, %100 : vector<8x512xf32>
    %102 = vector.broadcast %83 : vector<1x512xf32> to vector<8x512xf32>
    %103 = arith.addf %101, %102 : vector<8x512xf32>
    %cst_41 = arith.constant 2.000000e-01 : f32
    %104 = vector.broadcast %cst_41 : f32 to vector<8x512xf32>
    %105 = arith.mulf %104, %103 : vector<8x512xf32>
    %106 = arith.maximumf %103, %105 : vector<8x512xf32>
    %c0_i32_42 = arith.constant 0 : i32
    %107 = tpu.memref_slice %arg11[%c0_i32_42] : memref<2x!tpu.dma_semaphore, #tpu.memory_space<semaphore_mem>> -> memref<1x!tpu.dma_semaphore, #tpu.memory_space<semaphore_mem>>
    %108 = tpu.memref_squeeze %107 : memref<1x!tpu.dma_semaphore, #tpu.memory_space<semaphore_mem>> -> memref<!tpu.dma_semaphore, #tpu.memory_space<semaphore_mem>>
    tpu.wait_dma2 semaphore(%108 : memref<!tpu.dma_semaphore, #tpu.memory_space<semaphore_mem>>) src(%arg5 : memref<512x1024xbf16, #tpu.memory_space<any>>) dst(%arg9 : memref<512x1024xbf16, #tpu.memory_space<vmem>>)
    %c0_43 = arith.constant 0 : index
    %c0_44 = arith.constant 0 : index
    %109 = vector.load %arg9[%c0_43, %c0_44] : memref<512x1024xbf16, #tpu.memory_space<vmem>>, vector<512x1024xbf16>
    %c10 = arith.constant 10 : index
    %c0_45 = arith.constant 0 : index
    %110 = vector.load %arg7[%c10, %c0_45] : memref<14x1024xf32, #tpu.memory_space<vmem>>, vector<1x1024xf32>
    %111 = arith.truncf %106 : vector<8x512xf32> to vector<8x512xbf16>
    %cst_46 = arith.constant dense<0.000000e+00> : vector<8x1024xf32>
    %112 = tpu.matmul %111, %109, %cst_46 {dimension_numbers = #tpu.dot_dimension_numbers<[1], [0], [0], [1], [0, 0, 1, 1], [], []>} : vector<8x512xbf16>, vector<512x1024xbf16>, vector<8x1024xf32> -> vector<8x1024xf32>
    %113 = vector.broadcast %110 : vector<1x1024xf32> to vector<8x1024xf32>
    %114 = arith.addf %112, %113 : vector<8x1024xf32>
    %c11 = arith.constant 11 : index
    %c0_47 = arith.constant 0 : index
    %115 = vector.load %arg7[%c11, %c0_47] : memref<14x1024xf32, #tpu.memory_space<vmem>>, vector<1x1024xf32>
    %c12 = arith.constant 12 : index
    %c0_48 = arith.constant 0 : index
    %116 = vector.load %arg7[%c12, %c0_48] : memref<14x1024xf32, #tpu.memory_space<vmem>>, vector<1x1024xf32>
    %cst_49 = arith.constant dense<0.000000e+00> : vector<1024xf32>
    %117 = vector.multi_reduction <add>, %114, %cst_49 [0] : vector<8x1024xf32> to vector<1024xf32>
    %118 = vector.shape_cast %117 : vector<1024xf32> to vector<1x1024xf32>
    %cst_50 = arith.constant 8.000000e+00 : f32
    %119 = vector.broadcast %cst_50 : f32 to vector<1x1024xf32>
    %120 = arith.divf %118, %119 : vector<1x1024xf32>
    %121 = vector.broadcast %120 : vector<1x1024xf32> to vector<8x1024xf32>
    %122 = arith.subf %114, %121 : vector<8x1024xf32>
    %123 = arith.mulf %122, %122 : vector<8x1024xf32>
    %cst_51 = arith.constant dense<0.000000e+00> : vector<1024xf32>
    %124 = vector.multi_reduction <add>, %123, %cst_51 [0] : vector<8x1024xf32> to vector<1024xf32>
    %125 = vector.shape_cast %124 : vector<1024xf32> to vector<1x1024xf32>
    %cst_52 = arith.constant 8.000000e+00 : f32
    %126 = vector.broadcast %cst_52 : f32 to vector<1x1024xf32>
    %127 = arith.divf %125, %126 : vector<1x1024xf32>
    %cst_53 = arith.constant 8.000000e-01 : f32
    %128 = vector.broadcast %cst_53 : f32 to vector<1x1024xf32>
    %129 = arith.addf %127, %128 : vector<1x1024xf32>
    %130 = math.rsqrt %129 : vector<1x1024xf32>
    %131 = vector.broadcast %130 : vector<1x1024xf32> to vector<8x1024xf32>
    %132 = arith.mulf %122, %131 : vector<8x1024xf32>
    %133 = vector.broadcast %115 : vector<1x1024xf32> to vector<8x1024xf32>
    %134 = arith.mulf %132, %133 : vector<8x1024xf32>
    %135 = vector.broadcast %116 : vector<1x1024xf32> to vector<8x1024xf32>
    %136 = arith.addf %134, %135 : vector<8x1024xf32>
    %cst_54 = arith.constant 2.000000e-01 : f32
    %137 = vector.broadcast %cst_54 : f32 to vector<8x1024xf32>
    %138 = arith.mulf %137, %136 : vector<8x1024xf32>
    %139 = arith.maximumf %136, %138 : vector<8x1024xf32>
    %c1_i32_55 = arith.constant 1 : i32
    %140 = tpu.memref_slice %arg11[%c1_i32_55] : memref<2x!tpu.dma_semaphore, #tpu.memory_space<semaphore_mem>> -> memref<1x!tpu.dma_semaphore, #tpu.memory_space<semaphore_mem>>
    %141 = tpu.memref_squeeze %140 : memref<1x!tpu.dma_semaphore, #tpu.memory_space<semaphore_mem>> -> memref<!tpu.dma_semaphore, #tpu.memory_space<semaphore_mem>>
    tpu.wait_dma2 semaphore(%141 : memref<!tpu.dma_semaphore, #tpu.memory_space<semaphore_mem>>) src(%arg6 : memref<1024x1024xbf16, #tpu.memory_space<any>>) dst(%arg10 : memref<1024x1024xbf16, #tpu.memory_space<vmem>>)
    %c0_56 = arith.constant 0 : index
    %c0_57 = arith.constant 0 : index
    %142 = vector.load %arg10[%c0_56, %c0_57] : memref<1024x1024xbf16, #tpu.memory_space<vmem>>, vector<1024x1024xbf16>
    %c13 = arith.constant 13 : index
    %c0_58 = arith.constant 0 : index
    %143 = vector.load %arg7[%c13, %c0_58] : memref<14x1024xf32, #tpu.memory_space<vmem>>, vector<1x1024xf32>
    %144 = arith.truncf %139 : vector<8x1024xf32> to vector<8x1024xbf16>
    %cst_59 = arith.constant dense<0.000000e+00> : vector<8x1024xf32>
    %145 = tpu.matmul %144, %142, %cst_59 {dimension_numbers = #tpu.dot_dimension_numbers<[1], [0], [0], [1], [0, 0, 1, 1], [], []>} : vector<8x1024xbf16>, vector<1024x1024xbf16>, vector<8x1024xf32> -> vector<8x1024xf32>
    %146 = vector.broadcast %143 : vector<1x1024xf32> to vector<8x1024xf32>
    %147 = arith.addf %145, %146 : vector<8x1024xf32>
    %148 = math.tanh %147 : vector<8x1024xf32>
    %c0_60 = arith.constant 0 : index
    %c0_61 = arith.constant 0 : index
    %149 = vector.load %arg8[%c0_60, %c0_61] : memref<8x1024xf32, #tpu.memory_space<vmem>>, vector<8x1024xf32>
    tpu.vector_store %arg8[%c0_60, %c0_61], %148 {strides = array<i32>} : memref<8x1024xf32, #tpu.memory_space<vmem>>, vector<8x1024xf32>,
    return
  }
}

</mosaic_0001>

<bundles_post_ra>
// kernel: generator_forward.1
= control target key start
LH: loop header
LB: loop body
LE: loop exit
PB: predicated region body
PF: predicated region fallthrough
CT: control target
= control target key end

     0   :  { %13 = vsyncpa [#allocation6], 0  ;;  %s4355_s0 = inlined_call_operand.hbm [shape: f32[8,32], index: 0, kind: input, shape index: {}]   ;;  %s4356_s1 = inlined_call_operand.hbm [shape: bf16[32,64], index: 1, kind: input, shape index: {}]   ;;  %s4357_s2 = inlined_call_operand.hbm [shape: bf16[64,128], index: 2, kind: input, shape index: {}]   ;;  %s4358_s3 = inlined_call_operand.hbm [shape: bf16[128,256], index: 3, kind: input, shape index: {}]   ;;  %s4359_s4 = inlined_call_operand.hbm [shape: bf16[256,512], index: 4, kind: input, shape index: {}]   ;;  %s4360_s5 = inlined_call_operand.hbm [shape: bf16[512,1024], index: 5, kind: input, shape index: {}]   ;;  %s4361_s6 = inlined_call_operand.hbm [shape: bf16[1024,1024], index: 6, kind: input, shape index: {}]   ;;  %s4362_s7 = inlined_call_operand.hbm [shape: f32[14,1024], index: 7, kind: input, shape index: {}]   ;;  %s4363_s8 = inlined_call_operand.vmem [shape: f32[8,1024], index: 8, kind: output, shape index: {}]  }
   0x1   :  { %14 = vsyncpa [#allocation8], 0 }
   0x2   :  { %15 = vsyncpa [#allocation11], 0 }
   0x3   :  { %16 = vsyncpa [#allocation14], 0  ;;  %s3912_s27 = smov [#allocation7]   ;;  %s3768_s9 = scalar_lea.hbm %s4356_s1, 256 }
   0x4   :  { %s32_s28 = sshll.u32 %s3912_s27, 4  ;;  %p3769_p0 = scmp.ne.s32.totalorder %s4356_s1, %s3768_s9  ;;  %s33_s28 = int_to_ptr.vmem [resolvable:$true] %s32_s28 }
   0x5   :  { %p3772_p1 = scmp.lt.u32.totalorder %s3768_s9, %s4356_s1 }
   0x7   :  { %p3774_p2 = pnand %p3772_p1, %p3769_p0 }
   0x9   :  { %3777 = shalt.err (!%p3774_p2)
}
   0xa   :  { %s3778_s14 = scalar_lea.vmem %s33_s28, 256  ;;  %p3783_p4 = scmp.lt.s32.totalorder %s33_s28, %s33_s28 }
   0xb   :  { %p3779_p3 = scmp.ne.s32.totalorder %s33_s28, %s3778_s14  ;;  %p3784_p5 = scmp.lt.s32.totalorder %s3778_s14, %s3778_s14 }
   0xd   :  { %p3785_p6 = por %p3784_p5, %p3783_p4 }
   0xf   :  { %p3786_p7 = pnand %p3785_p6, %p3779_p3 }
  0x11   :  { %3789 = shalt.err (!%p3786_p7)
}
  0x12   :  { %s3913_s15 = smov 64   ;;  %s3914_s16 = smov 4  }
  0x13   :  { %38 = dma.hbm_to_vmem [thread:$0]  %s4356_s1, 256, %s33_s28, [#allocation8], %s3913_s15, %s3913_s15, %s3914_s16  }
  0x14   :  { %s3915_s19 = smov [#allocation10]   ;;  %s3790_s23 = scalar_lea.hbm %s4358_s3, 2048 }
  0x15   :  { %s56_s20 = sshll.u32 %s3915_s19, 4  ;;  %p3791_p8 = scmp.ne.s32.totalorder %s4358_s3, %s3790_s23  ;;  %s57_s20 = int_to_ptr.vmem [resolvable:$true] %s56_s20 }
  0x16   :  { %p3794_p9 = scmp.lt.u32.totalorder %s3790_s23, %s4358_s3 }
  0x18   :  { %p3796_p10 = pnand %p3794_p9, %p3791_p8 }
  0x1a   :  { %3799 = shalt.err (!%p3796_p10)
}
  0x1b   :  { %s3800_s29 = scalar_lea.vmem %s57_s20, 2048  ;;  %p3805_p12 = scmp.lt.s32.totalorder %s57_s20, %s57_s20 }
  0x1c   :  { %p3801_p11 = scmp.ne.s32.totalorder %s57_s20, %s3800_s29  ;;  %p3806_p13 = scmp.lt.s32.totalorder %s3800_s29, %s3800_s29 }
  0x1e   :  { %p3807_p0 = por %p3806_p13, %p3805_p12 }
  0x20   :  { %p3808_p1 = pnand %p3807_p0, %p3801_p11 }
  0x22   :  { %3811 = shalt.err (!%p3808_p1)
}
  0x23   :  { %s3916_s1 = smov 128   ;;  %s3917_s28 = smov 8  }
  0x24   :  { %62 = dma.hbm_to_vmem [thread:$0]  %s4358_s3, 2048, %s57_s20, [#allocation11], %s3916_s1, %s3916_s1, %s3917_s28  }
  0x25   :  { %s3918_s10 = smov [#allocation5]   ;;  %s3919_s12 = smov [#allocation9]  }
  0x26   :  { %s23_s11 = sshll.u32 %s3918_s10, 4  ;;  %s44_s13 = sshll.u32 %s3919_s12, 4  ;;  %s24_s11 = int_to_ptr.vmem [resolvable:$true] %s23_s11  ;;  %s4011_s13 = int_to_ptr.vmem [resolvable:$true] %s44_s13 }
  0x27   :  { %s3812_s18 = scalar_lea.hbm %s4355_s0, 128 }
  0x28   :  { %p3813_p2 = scmp.ne.s32.totalorder %s4355_s0, %s3812_s18  ;;  %p3816_p3 = scmp.lt.u32.totalorder %s3812_s18, %s4355_s0 }
  0x2a   :  { %p3818_p4 = pnand %p3816_p3, %p3813_p2 }
  0x2c   :  { %3821 = shalt.err (!%p3818_p4)
}
  0x2d   :  { %s3822_s3 = scalar_lea.vmem %s24_s11, 128  ;;  %p3827_p6 = scmp.lt.s32.totalorder %s24_s11, %s24_s11 }
  0x2e   :  { %p3823_p5 = scmp.ne.s32.totalorder %s24_s11, %s3822_s3  ;;  %p3828_p7 = scmp.lt.s32.totalorder %s3822_s3, %s3822_s3 }
  0x30   :  { %p3829_p8 = por %p3828_p7, %p3827_p6 }
  0x32   :  { %p3830_p9 = pnand %p3829_p8, %p3823_p5 }
  0x34   :  { %3833 = shalt.err (!%p3830_p9)
}
  0x35   :  { %26 = dma.hbm_to_vmem [thread:$0]  %s4355_s0, 128, %s24_s11, [#allocation6]  }
  0x36   :  { %s3834_s27 = scalar_lea.hbm %s4357_s2, 512 }
  0x37   :  { %p3835_p10 = scmp.ne.s32.totalorder %s4357_s2, %s3834_s27  ;;  %p3838_p11 = scmp.lt.u32.totalorder %s3834_s27, %s4357_s2 }
  0x39   :  { %p3840_p12 = pnand %p3838_p11, %p3835_p10 }
  0x3b   :  { %3843 = shalt.err (!%p3840_p12)
}
  0x3c   :  { %s3844_s12 = scalar_lea.vmem %s4011_s13, 512  ;;  %p3849_p0 = scmp.lt.s32.totalorder %s4011_s13, %s4011_s13 }
  0x3d   :  { %p3845_p13 = scmp.ne.s32.totalorder %s4011_s13, %s3844_s12  ;;  %p3850_p1 = scmp.lt.s32.totalorder %s3844_s12, %s3844_s12 }
  0x3f   :  { %p3851_p2 = por %p3850_p1, %p3849_p0 }
  0x41   :  { %p3852_p3 = pnand %p3851_p2, %p3845_p13 }
  0x43   :  { %3855 = shalt.err (!%p3852_p3)
}
  0x44   :  { %50 = dma.hbm_to_vmem [thread:$0]  %s4357_s2, 512, %s4011_s13, [#allocation8], %s3913_s15, %s3913_s15, %s3914_s16  }
  0x45   :  { %s3920_s14 = smov [#allocation12]   ;;  %s3856_s21 = scalar_lea.hbm %s4359_s4, 8192 }
  0x46   :  { %s68_s17 = sshll.u32 %s3920_s14, 4  ;;  %p3857_p4 = scmp.ne.s32.totalorder %s4359_s4, %s3856_s21  ;;  %s69_s17 = int_to_ptr.vmem [resolvable:$true] %s68_s17 }
  0x47   :  { %p3860_p5 = scmp.lt.u32.totalorder %s3856_s21, %s4359_s4 }
  0x49   :  { %p3862_p6 = pnand %p3860_p5, %p3857_p4 }
  0x4b   :  { %3865 = shalt.err (!%p3862_p6)
}
  0x4c   :  { %s3866_s24 = scalar_lea.vmem %s69_s17, 8192  ;;  %p3871_p8 = scmp.lt.s32.totalorder %s69_s17, %s69_s17 }
  0x4d   :  { %p3867_p7 = scmp.ne.s32.totalorder %s69_s17, %s3866_s24  ;;  %p3872_p9 = scmp.lt.s32.totalorder %s3866_s24, %s3866_s24 }
  0x4f   :  { %p3873_p10 = por %p3872_p9, %p3871_p8 }
  0x51   :  { %p3874_p11 = pnand %p3873_p10, %p3867_p7 }
  0x53   :  { %3877 = shalt.err (!%p3874_p11)
}
  0x54   :  { %s3921_s2 = smov 256   ;;  %s3922_s13 = smov 16  }
  0x55   :  { %74 = dma.hbm_to_vmem [thread:$0]  %s4359_s4, 8192, %s69_s17, [#allocation11], %s3921_s2, %s3921_s2, %s3922_s13  }
  0x56   :  { %s3923_s27 = smov [#allocation13]   ;;  %s3878_s10 = scalar_lea.hbm %s4362_s7, 2048 }
  0x57   :  { %s80_s29 = sshll.u32 %s3923_s27, 4  ;;  %p3879_p12 = scmp.ne.s32.totalorder %s4362_s7, %s3878_s10  ;;  %s81_s29 = int_to_ptr.vmem [resolvable:$true] %s80_s29 }
  0x58   :  { %p3882_p13 = scmp.lt.u32.totalorder %s3878_s10, %s4362_s7 }
  0x5a   :  { %p3884_p0 = pnand %p3882_p13, %p3879_p12 }
  0x5c   :  { %3887 = shalt.err (!%p3884_p0)
}
  0x5d   :  { %s3888_s18 = scalar_lea.vmem %s81_s29, 2048  ;;  %p3893_p2 = scmp.lt.s32.totalorder %s81_s29, %s81_s29 }
  0x5e   :  { %p3889_p1 = scmp.ne.s32.totalorder %s81_s29, %s3888_s18  ;;  %p3894_p3 = scmp.lt.s32.totalorder %s3888_s18, %s3888_s18 }
  0x60   :  { %p3895_p4 = por %p3894_p3, %p3893_p2 }
  0x62   :  { %p3896_p5 = pnand %p3895_p4, %p3889_p1 }
  0x64   :  { %3899 = shalt.err (!%p3896_p5)
}
  0x65   :  { %s3924_s4 = smov 1024  }
  0x66   :  { %86 = dma.hbm_to_vmem [thread:$0]  %s4362_s7, 2048, %s81_s29, [#allocation14], %s3924_s4, %s3924_s4, %s3913_s15  }
  0x67   :  { %3900 = dma.done.wait [#allocation6], 128  }
  0x68   :  { %3901 = vsyncadd [#allocation6], 4294967168 }
  0x69   :  { %3902 = dma.done.wait [#allocation8], 768  }
  0x6a   :  { %3903 = vsyncadd [#allocation8], 4294966528 }
  0x6b   :  { %3904 = dma.done.wait [#allocation11], 10240  }
  0x6c   :  { %3905 = vsyncadd [#allocation11], 4294957056 }
  0x6d   :  { %3906 = dma.done.wait [#allocation14], 2048  }
  0x6e   :  { %3907 = vsyncadd [#allocation14], 4294965248  ;;  %s110_s21 = sld [smem:[#allocation0]]   ;;  %122 = sst [smem:[#allocation16]] %s3924_s4  ;;  %v3925_v0 = vmov 0.0   ;;  %vm3926_vm0 = vmmov 0  }
  0x6f   :  { %3472 = vmatprep.subr.bf16.mxu1 %v3925_v0  ;;  %3476 = vmatprep.mubr.msk.bf16.mxu1 %vm3926_vm0, %v3925_v0  ;;  %124 = sst [smem:[#allocation16 + $0x1]] %s3924_s4  ;;  %s3927_s22 = smov [#allocation2]   ;;  %vm195_vm1 = vcmask 261120   ;;  %vm275_vm2 = vcmask 523264   ;;  %v3935_v33 = vmov 0  }
  0x70   :  { %s118_s7 = sshll.u32 %s3927_s22, 4  ;;  %126 = sst [smem:[#allocation16 + $0x2]] %s3917_s28  ;;  %487 = vmatprep.mubr.bf16.mxu0 %v3935_v33  ;;  %s119_s7 = int_to_ptr.vmem [resolvable:$true] %s118_s7 }
  0x71   :  { %128 = sst [smem:[#allocation16 + $0x3]] %s3913_s15  ;;  %s3928_s20 = smov 2  }
  0x72   :  { %130 = sst [smem:[#allocation16 + $0x4]] %s3916_s1  ;;  %s3929_s24 = smov 512  }
  0x73   :  { %136 = sst [smem:[#allocation16 + $0x7]] %s3913_s15  ;;  %s3930_s2 = smov [#allocation4]  }
  0x74   :  { %s3370_s23 = sshll.u32 %s110_s21, 26  ;;  %138 = sst [smem:[#allocation16 + $0x8]] %s3914_s16 }
  0x75   :  { %s3371_s3 = sadd.s32 134217728, %s3370_s23  ;;  %132 = sst [smem:[#allocation16 + $0x5]] %s3928_s20 }
  0x76   :  { %134 = sst [smem:[#allocation16 + $0x6]] %s3929_s24  ;;  %s3931_s13 = smov [#allocation15]  }
  0x77   :  { %140 = dma.general %s4360_s5, 32768, %s119_s7, %s3930_s2, %s3931_s13, [#allocation16], %s3371_s3, 0  }
  0x78   :  { %157 = sst [smem:[#allocation18]] %s3924_s4  ;;  %s3932_s27 = smov [#allocation3]  }
  0x79   :  { %159 = sst [smem:[#allocation18 + $0x1]] %s3924_s4  ;;  %s153_s29 = sshll.u32 %s3932_s27, 4  ;;  %s154_s29 = int_to_ptr.vmem [resolvable:$true] %s153_s29 }
  0x7a   :  { %161 = sst [smem:[#allocation18 + $0x2]] %s3917_s28  ;;  %s3933_s5 = smov [#allocation4 + $0x1]  }
  0x7b   :  { %163 = sst [smem:[#allocation18 + $0x3]] %s3913_s15  ;;  %s3934_s30 = smov [#allocation17]  }
  0x7c   :  { %165 = sst [smem:[#allocation18 + $0x4]] %s3916_s1 }
  0x7d   :  { %167 = sst [smem:[#allocation18 + $0x5]] %s3928_s20 }
  0x7e   :  { %169 = sst [smem:[#allocation18 + $0x6]] %s3929_s24 }
  0x7f   :  { %171 = sst [smem:[#allocation18 + $0x7]] %s3913_s15 }
  0x80   :  { %173 = sst [smem:[#allocation18 + $0x8]] %s3914_s16 }
  0x81   :  { %175 = dma.general %s4361_s6, 65536, %s154_s29, %s3933_s5, %s3934_s30, [#allocation18], %s3371_s3, 0  }
  0x82   :  { %v3596_v1 = vld [vmem:[#allocation7] sm:$0xff]   ;;  %v3597_v2 = vld [vmem:[#allocation7 + $0x8] sm:$0xff]   ;;  %v176_v3 = vld [vmem:[#allocation5] sm:$0xff] }
  0x83   :  { %3473 = vmatpush3.bf16.msra.mxu1 %v3596_v1  ;;  %v3598_v4 = vld [vmem:[#allocation9] sm:$0xff]   ;;  %v182_v5 = vpack.c.bf16 %v176_v3, %v176_v3  ;;  %v3599_v6 = vld [vmem:[#allocation9 + $0x8] sm:$0xff]   ;;  %v3600_v7 = vld [vmem:[#allocation9 + $0x10] sm:$0xff]  }
  0x84   :  { %3474 = vmatprep.subr.bf16.mxu1 %v3925_v0  ;;  %v3601_v8 = vld [vmem:[#allocation9 + $0x18] sm:$0xff]   ;;  %v181_v9 = vld [vmem:[#allocation13] ss:$0 sm:$0xff]  ;;  %v3602_v18 = vld [vmem:[#allocation10 + $0x4] ss:$8 sps:$4 sm:$0xff]  }
  0x85   :  { %v3604_v19 = vld [vmem:[#allocation10] ss:$8 sps:$4 sm:$0xff]   ;;  %455 = vmatprep.subr.bf16.mxu0 %v3602_v18  ;;  %v3605_v20 = vld [vmem:[#allocation10 + $0x14] ss:$8 sps:$4 sm:$0xff]   ;;  %v3607_v21 = vld [vmem:[#allocation10 + $0x10] ss:$8 sps:$4 sm:$0xff]  }
  0x86   :  { %456 = vmatpush1.bf16.msra.mxu0 %v3604_v19  ;;  %v3608_v22 = vld [vmem:[#allocation10 + $0x24] ss:$8 sps:$4 sm:$0xff]   ;;  %v3610_v23 = vld [vmem:[#allocation10 + $0x20] ss:$8 sps:$4 sm:$0xff]   ;;  %v3611_v24 = vld [vmem:[#allocation10 + $0x34] ss:$8 sps:$4 sm:$0xff]  }
  0x87   :  { %3475 = vmatpush3.bf16.msra.mxu1 %v3597_v2  ;;  %457 = vmatprep.subr.bf16.mxu0 %v3605_v20  ;;  %v3613_v25 = vld [vmem:[#allocation10 + $0x30] ss:$8 sps:$4 sm:$0xff]   ;;  %v3614_v26 = vld [vmem:[#allocation10 + $0x44] ss:$8 sps:$4 sm:$0xff]   ;;  %v3616_v27 = vld [vmem:[#allocation10 + $0x40] ss:$8 sps:$4 sm:$0xff]  }
  0x88   :  { %3480 = vmatprep.subr.bf16.mxu1 %v3925_v0  ;;  %v3617_v28 = vld [vmem:[#allocation10 + $0x54] ss:$8 sps:$4 sm:$0xff]   ;;  %v3619_v29 = vld [vmem:[#allocation10 + $0x50] ss:$8 sps:$4 sm:$0xff]   ;;  %v3620_v30 = vld [vmem:[#allocation10 + $0x64] ss:$8 sps:$4 sm:$0xff]  }
  0x89   :  { %v3622_v31 = vld [vmem:[#allocation10 + $0x60] ss:$8 sps:$4 sm:$0xff]   ;;  %v3623_v32 = vld [vmem:[#allocation10 + $0x74] ss:$8 sps:$4 sm:$0xff]   ;;  %v3625_v34 = vld [vmem:[#allocation10 + $0x70] ss:$8 sps:$4 sm:$0xff]  }
  0x8a   :  { %3477 = vmatmul.mubr.msk.bf16.vlgmr.msra.gmra.mrb[0].mxu1 %vm195_vm1, %v182_v5  ;;  %458 = vmatpush1.bf16.msra.mxu0 %v3607_v21  ;;  %v3626_v35 = vld [vmem:[#allocation12] ss:$16 sps:$4 sm:$0xff]   ;;  %v3628_v36 = vld [vmem:[#allocation12 + $0x4] ss:$16 sps:$4 sm:$0xff]   ;;  %v3631_v37 = vld [vmem:[#allocation12 + $0xc] ss:$16 sps:$4 sm:$0xff]  }
  0x8b   :  { %3481 = vmatpush3.bf16.msra.mxu1 %v3598_v4  ;;  %3488 = vmatprep.mubr.msk.bf16.mxu1 %vm3926_vm0, %v3925_v0  ;;  %v249_v38 = vld [vmem:[#allocation13 + $0x1] ss:$0 sm:$0xff]  ;;  %v319_v62 = vld [vmem:[#allocation13 + $0x2] ss:$0 sm:$0xff]  ;;  %v3629_v5 = vld [vmem:[#allocation12 + $0x8] ss:$16 sps:$4 sm:$0xff]  }
  0x8c   :  { %3482 = vmatprep.subr.bf16.mxu1 %v3925_v0  ;;  %459 = vmatprep.subr.bf16.mxu0 %v3608_v22  ;;  %v3647_v18 = vld [vmem:[#allocation12 + $0x68] ss:$16 sps:$4 sm:$0xff]   ;;  %v3652_v19 = vld [vmem:[#allocation12 + $0x84] ss:$16 sps:$4 sm:$0xff]   ;;  %v3655_v20 = vld [vmem:[#allocation12 + $0x8c] ss:$16 sps:$4 sm:$0xff]  }
  0x8d   :  { %v3650_v21 = vld [vmem:[#allocation12 + $0x80] ss:$16 sps:$4 sm:$0xff]   ;;  %v3653_v22 = vld [vmem:[#allocation12 + $0x88] ss:$16 sps:$4 sm:$0xff]  }
  0x8e   :  { %460 = vmatpush1.bf16.msra.mxu0 %v3610_v23  ;;  %v3658_v23 = vld [vmem:[#allocation12 + $0xa4] ss:$16 sps:$4 sm:$0xff]   ;;  %v3668_v33 = vld [vmem:[#allocation12 + $0xe0] ss:$16 sps:$4 sm:$0xff]  }
  0x8f   :  { %3483 = vmatpush3.bf16.msra.mxu1 %v3599_v6  ;;  %461 = vmatprep.subr.bf16.mxu0 %v3611_v24  ;;  %v3661_v24 = vld [vmem:[#allocation12 + $0xac] ss:$16 sps:$4 sm:$0xff]  }
  0x90   :  { %3484 = vmatprep.subr.bf16.mxu1 %v3925_v0 }
  0x92   :  { %462 = vmatpush1.bf16.msra.mxu0 %v3613_v25  ;;  %v3656_v25 = vld [vmem:[#allocation12 + $0xa0] ss:$16 sps:$4 sm:$0xff]  }
  0x93   :  { %3485 = vmatpush3.bf16.msra.mxu1 %v3600_v7  ;;  %463 = vmatprep.subr.bf16.mxu0 %v3614_v26  ;;  %v3634_v7 = vld [vmem:[#allocation12 + $0x24] ss:$16 sps:$4 sm:$0xff]   ;;  %v3659_v26 = vld [vmem:[#allocation12 + $0xa8] ss:$16 sps:$4 sm:$0xff]  }
  0x94   :  { %3486 = vmatprep.subr.bf16.mxu1 %v3925_v0  ;;  %v320_v0 = vld [vmem:[#allocation13 + $0x3] ss:$0 sm:$0xff] }
  0x96   :  { %464 = vmatpush1.bf16.msra.mxu0 %v3616_v27  ;;  %v3664_v27 = vld [vmem:[#allocation12 + $0xc4] ss:$16 sps:$4 sm:$0xff]  }
  0x97   :  { %3487 = vmatpush3.bf16.msra.mxu1 %v3601_v8  ;;  %465 = vmatprep.subr.bf16.mxu0 %v3617_v28  ;;  %v3637_v8 = vld [vmem:[#allocation12 + $0x2c] ss:$16 sps:$4 sm:$0xff]  }
  0x98   :  { %977 = vmatprep.subr.bf16.mxu1 %v3628_v36  ;;  %v3667_v28 = vld [vmem:[#allocation12 + $0xcc] ss:$16 sps:$4 sm:$0xff]  }
  0x99   :  { %v3679_v36 = vld [vmem:[#allocation12 + $0x10c] ss:$16 sps:$4 sm:$0xff]  }
  0x9a   :  { %466 = vmatpush1.bf16.msra.mxu0 %v3619_v29  ;;  %v3662_v29 = vld [vmem:[#allocation12 + $0xc0] ss:$16 sps:$4 sm:$0xff]  }
  0x9b   :  { %467 = vmatprep.subr.bf16.mxu0 %v3620_v30  ;;  %v3665_v30 = vld [vmem:[#allocation12 + $0xc8] ss:$16 sps:$4 sm:$0xff]  }
  0x9e   :  { %468 = vmatpush1.bf16.msra.mxu0 %v3622_v31  ;;  %v3670_v31 = vld [vmem:[#allocation12 + $0xe4] ss:$16 sps:$4 sm:$0xff]  }
  0x9f   :  { %469 = vmatprep.subr.bf16.mxu0 %v3623_v32  ;;  %v3673_v32 = vld [vmem:[#allocation12 + $0xec] ss:$16 sps:$4 sm:$0xff]  }
  0xa2   :  { %470 = vmatpush1.bf16.msra.mxu0 %v3625_v34  ;;  %v3671_v34 = vld [vmem:[#allocation12 + $0xe8] ss:$16 sps:$4 sm:$0xff]  }
  0xa3   :  { %1018 = vmatprep.subr.bf16.mxu0 %v3631_v37  ;;  %v3674_v37 = vld [vmem:[#allocation12 + $0x100] ss:$16 sps:$4 sm:$0xff]  }
 0x15d   :  { %v233_v10 = vpop.f32.mrb[0].mxu1 }
 0x15e   :  { %v234_v11 = vadd.f32 %v233_v10, %v181_v9  ;;  %v3478_v12 = vpop.f32.mrb[1].mxu1  ;;  %v3632_v9 = vld [vmem:[#allocation12 + $0x20] ss:$16 sps:$4 sm:$0xff]   ;;  %v3635_v10 = vld [vmem:[#allocation12 + $0x28] ss:$16 sps:$4 sm:$0xff]  }
 0x15f   :  { %v236_v13 = vpop.f32.mrb[2].mxu1  ;;  %v3643_v12 = vld [vmem:[#allocation12 + $0x4c] ss:$16 sps:$4 sm:$0xff]  }
 0x160   :  { %v239_v14 = vmul.f32 0.2, %v234_v11  ;;  %v3479_v15 = vpop.f32.mrb[3].mxu1  ;;  %v3638_v13 = vld [vmem:[#allocation12 + $0x40] ss:$16 sps:$4 sm:$0xff]  }
 0x161   :  { %v3646_v15 = vld [vmem:[#allocation12 + $0x64] ss:$16 sps:$4 sm:$0xff]  }
 0x162   :  { %v240_v16 = vmax.f32 %v234_v11, %v239_v14  ;;  %v3640_v11 = vld [vmem:[#allocation12 + $0x44] ss:$16 sps:$4 sm:$0xff]   ;;  %v3641_v14 = vld [vmem:[#allocation12 + $0x48] ss:$16 sps:$4 sm:$0xff]  }
 0x164   :  { %v250_v17 = vpack.c.bf16 %v240_v16, %v240_v16  ;;  %v3649_v16 = vld [vmem:[#allocation12 + $0x6c] ss:$16 sps:$4 sm:$0xff]  }
 0x166   :  { %3489 = vmatmul.mubr.msk.bf16.vlgmr.msra.gmra.mrb[4].mxu1 %vm275_vm2, %v250_v17  ;;  %v3644_v17 = vld [vmem:[#allocation12 + $0x60] ss:$16 sps:$4 sm:$0xff]  }
 0x167   :  { %978 = vmatpush1.bf16.msra.mxu1 %v3626_v35  ;;  %v3676_v35 = vld [vmem:[#allocation12 + $0x104] ss:$16 sps:$4 sm:$0xff]  }
 0x168   :  { %979 = vmatprep.subr.bf16.mxu1 %v3634_v7 }
 0x16b   :  { %980 = vmatpush1.bf16.msra.mxu1 %v3632_v9 }
 0x16c   :  { %981 = vmatprep.subr.bf16.mxu1 %v3640_v11 }
 0x16f   :  { %982 = vmatpush1.bf16.msra.mxu1 %v3638_v13 }
 0x170   :  { %983 = vmatprep.subr.bf16.mxu1 %v3646_v15 }
 0x173   :  { %984 = vmatpush1.bf16.msra.mxu1 %v3644_v17 }
 0x174   :  { %985 = vmatprep.subr.bf16.mxu1 %v3652_v19 }
 0x177   :  { %986 = vmatpush1.bf16.msra.mxu1 %v3650_v21 }
 0x178   :  { %987 = vmatprep.subr.bf16.mxu1 %v3658_v23 }
 0x17b   :  { %988 = vmatpush1.bf16.msra.mxu1 %v3656_v25 }
 0x17c   :  { %989 = vmatprep.subr.bf16.mxu1 %v3664_v27 }
 0x17f   :  { %990 = vmatpush1.bf16.msra.mxu1 %v3662_v29 }
 0x180   :  { %991 = vmatprep.subr.bf16.mxu1 %v3670_v31 }
 0x183   :  { %992 = vmatpush1.bf16.msra.mxu1 %v3668_v33 }
 0x184   :  { %993 = vmatprep.subr.bf16.mxu1 %v3676_v35 }
 0x187   :  { %994 = vmatpush1.bf16.msra.mxu1 %v3674_v37 }
 0x239   :  { %v313_v39 = vpop.f32.mrb[4].mxu1 }
 0x23a   :  { %v314_v40 = vadd.f32 %v313_v39, %v249_v38  ;;  %v3490_v41 = vpop.f32.mrb[5].mxu1  ;;  %v3677_v38 = vld [vmem:[#allocation12 + $0x108] ss:$16 sps:$4 sm:$0xff]   ;;  %v3682_v39 = vld [vmem:[#allocation12 + $0x124] ss:$16 sps:$4 sm:$0xff]  }
 0x23b   :  { %v316_v42 = vpop.f32.mrb[6].mxu1  ;;  %v3680_v41 = vld [vmem:[#allocation12 + $0x120] ss:$16 sps:$4 sm:$0xff]   ;;  %995 = vmatprep.subr.bf16.mxu1 %v3682_v39 }
 0x23c   :  { %v321_v43 = vrot.slane %v314_v40, 4  ;;  %v3491_v44 = vpop.f32.mrb[7].mxu1  ;;  %v3683_v42 = vld [vmem:[#allocation12 + $0x128] ss:$16 sps:$4 sm:$0xff]   ;;  %996 = vmatpush1.bf16.msra.mxu1 %v3680_v41 }
 0x23d   :  { %v3691_v44 = vld [vmem:[#allocation12 + $0x14c] ss:$16 sps:$4 sm:$0xff]  }
 0x23e   :  { %v322_v45 = vadd.f32 %v321_v43, %v314_v40  ;;  %v3688_v43 = vld [vmem:[#allocation12 + $0x144] ss:$16 sps:$4 sm:$0xff]  }
 0x23f   :  { %997 = vmatprep.subr.bf16.mxu1 %v3688_v43 }
 0x240   :  { %v323_v46 = vrot.slane %v322_v45, 2 }
 0x242   :  { %v324_v47 = vadd.f32 %v323_v46, %v322_v45  ;;  %v3686_v45 = vld [vmem:[#allocation12 + $0x140] ss:$16 sps:$4 sm:$0xff]   ;;  %v3689_v46 = vld [vmem:[#allocation12 + $0x148] ss:$16 sps:$4 sm:$0xff]  }
 0x243   :  { %998 = vmatpush1.bf16.msra.mxu1 %v3686_v45 }
 0x244   :  { %v325_v48 = vrot.slane %v324_v47, 1 }
 0x246   :  { %v326_v49 = vadd.f32 %v325_v48, %v324_v47  ;;  %v3694_v47 = vld [vmem:[#allocation12 + $0x164] ss:$16 sps:$4 sm:$0xff]   ;;  %v3697_v48 = vld [vmem:[#allocation12 + $0x16c] ss:$16 sps:$4 sm:$0xff]  }
 0x247   :  { %999 = vmatprep.subr.bf16.mxu1 %v3694_v47 }
 0x248   :  { %v328_v50 = vmul.f32 0.125, %v326_v49  ;;  %v3692_v49 = vld [vmem:[#allocation12 + $0x160] ss:$16 sps:$4 sm:$0xff]  }
 0x249   :  { %1000 = vmatpush1.bf16.msra.mxu1 %v3692_v49 }
 0x24a   :  { %v329_v51 = vsub.f32 %v314_v40, %v328_v50  ;;  %v3685_v40 = vld [vmem:[#allocation12 + $0x12c] ss:$16 sps:$4 sm:$0xff]   ;;  %v3695_v50 = vld [vmem:[#allocation12 + $0x168] ss:$16 sps:$4 sm:$0xff]  }
 0x24c   :  { %v330_v52 = vmul.f32 %v329_v51, %v329_v51 }
 0x24e   :  { %v331_v53 = vrot.slane %v330_v52, 4 }
 0x250   :  { %v332_v54 = vadd.f32 %v331_v53, %v330_v52  ;;  %v3703_v52 = vld [vmem:[#allocation12 + $0x18c] ss:$16 sps:$4 sm:$0xff]   ;;  %v3698_v53 = vld [vmem:[#allocation12 + $0x180] ss:$16 sps:$4 sm:$0xff]  }
 0x252   :  { %v333_v55 = vrot.slane %v332_v54, 2 }
 0x254   :  { %v334_v56 = vadd.f32 %v333_v55, %v332_v54  ;;  %v3701_v54 = vld [vmem:[#allocation12 + $0x188] ss:$16 sps:$4 sm:$0xff]   ;;  %v3706_v55 = vld [vmem:[#allocation12 + $0x1a4] ss:$16 sps:$4 sm:$0xff]  }
 0x256   :  { %v335_v57 = vrot.slane %v334_v56, 1 }
 0x258   :  { %v336_v58 = vadd.f32 %v335_v57, %v334_v56  ;;  %v3709_v56 = vld [vmem:[#allocation12 + $0x1ac] ss:$16 sps:$4 sm:$0xff]   ;;  %v3704_v57 = vld [vmem:[#allocation12 + $0x1a0] ss:$16 sps:$4 sm:$0xff]  }
 0x25a   :  { %v337_v59 = vmul.f32 0.125, %v336_v58  ;;  %v3707_v58 = vld [vmem:[#allocation12 + $0x1a8] ss:$16 sps:$4 sm:$0xff]  }
 0x25c   :  { %v338_v60 = vadd.f32 0.8, %v337_v59  ;;  %v3712_v59 = vld [vmem:[#allocation12 + $0x1c4] ss:$16 sps:$4 sm:$0xff]  }
 0x25e   :  { %3722 = vrsqrt.f32 %v338_v60  ;;  %v3710_v60 = vld [vmem:[#allocation12 + $0x1c0] ss:$16 sps:$4 sm:$0xff]  }
 0x268   :  { %v3723_v61 = vpop.eup %3722 }
 0x269   :  { %v340_v63 = vmul.f32 %v3723_v61, %v329_v51  ;;  %v3700_v51 = vld [vmem:[#allocation12 + $0x184] ss:$16 sps:$4 sm:$0xff]   ;;  %v3715_v61 = vld [vmem:[#allocation12 + $0x1cc] ss:$16 sps:$4 sm:$0xff]  }
 0x26a   :  { %1001 = vmatprep.subr.bf16.mxu1 %v3700_v51  ;;  %v499_v51 = vld [vmem:[#allocation13 + $0x6] ss:$8 sm:$0x3] }
 0x26b   :  { %v341_v1 = vmul.f32 %v340_v63, %v319_v62  ;;  %1002 = vmatpush1.bf16.msra.mxu1 %v3698_v53  ;;  %v3713_v62 = vld [vmem:[#allocation12 + $0x1c8] ss:$16 sps:$4 sm:$0xff]   ;;  %v3718_v63 = vld [vmem:[#allocation12 + $0x1e4] ss:$16 sps:$4 sm:$0xff]  }
 0x26c   :  { %1003 = vmatprep.subr.bf16.mxu1 %v3706_v55 }
 0x26d   :  { %v342_v2 = vadd.f32 %v341_v1, %v320_v0  ;;  %v3721_v0 = vld [vmem:[#allocation12 + $0x1ec] ss:$16 sps:$4 sm:$0xff]   ;;  %v3716_v1 = vld [vmem:[#allocation12 + $0x1e0] ss:$16 sps:$4 sm:$0xff]  }
 0x26f   :  { %v343_v3 = vmul.f32 0.2, %v342_v2  ;;  %1004 = vmatpush1.bf16.msra.mxu1 %v3704_v57 }
 0x270   :  { %1005 = vmatprep.subr.bf16.mxu1 %v3712_v59 }
 0x271   :  { %v344_v4 = vmax.f32 %v342_v2, %v343_v3  ;;  %v3719_v2 = vld [vmem:[#allocation12 + $0x1e8] ss:$16 sps:$4 sm:$0xff]   ;;  %v365_v3 = vlaneseq }
 0x273   :  { %v363_v6 = vpack.c.bf16 %v344_v4, %v344_v4  ;;  %1006 = vmatpush1.bf16.msra.mxu1 %v3710_v60  ;;  %v4094_v4 = vshrl.u32 %v365_v3, 7 }
 0x274   :  { %1007 = vmatprep.subr.bf16.mxu1 %v3718_v63 }
 0x275   :  { %488 = vmatmul.mubr.bf16.vlgmr.msra.gmra.mrb[0].mxu0 %v363_v6  ;;  %v362_v6 = vld [vmem:[#allocation13 + $0x4] ss:$8 sm:$0x3]  ;;  %v4100_v7 = vsub.s32 1, %v4094_v4 }
 0x276   :  { %1019 = vmatpush1.bf16.msra.mxu0 %v3629_v5  ;;  %v4097_v5 = vsub.s32 0, %v4094_v4 }
 0x277   :  { %1020 = vmatprep.subr.bf16.mxu0 %v3637_v8  ;;  %1008 = vmatpush1.bf16.msra.mxu1 %v3716_v1  ;;  %v372_v9 = vrot.slane %v362_v6, %v4100_v7  ;;  %v559_v59 = vrot.slane %v499_v51, %v4100_v7 }
 0x278   :  { %v368_v8 = vrot.slane %v362_v6, %v4097_v5  ;;  %v555_v57 = vrot.slane %v499_v51, %v4097_v5 }
 0x27a   :  { %1021 = vmatpush1.bf16.msra.mxu0 %v3635_v10 }
 0x27b   :  { %1022 = vmatprep.subr.bf16.mxu0 %v3643_v12 }
 0x27e   :  { %1023 = vmatpush1.bf16.msra.mxu0 %v3641_v14 }
 0x27f   :  { %1024 = vmatprep.subr.bf16.mxu0 %v3649_v16 }
 0x282   :  { %1025 = vmatpush1.bf16.msra.mxu0 %v3647_v18 }
 0x283   :  { %1026 = vmatprep.subr.bf16.mxu0 %v3655_v20 }
 0x286   :  { %1027 = vmatpush1.bf16.msra.mxu0 %v3653_v22 }
 0x287   :  { %1028 = vmatprep.subr.bf16.mxu0 %v3661_v24 }
 0x28a   :  { %1029 = vmatpush1.bf16.msra.mxu0 %v3659_v26 }
 0x28b   :  { %1030 = vmatprep.subr.bf16.mxu0 %v3667_v28 }
 0x28e   :  { %1031 = vmatpush1.bf16.msra.mxu0 %v3665_v30 }
 0x28f   :  { %1032 = vmatprep.subr.bf16.mxu0 %v3673_v32 }
 0x292   :  { %1033 = vmatpush1.bf16.msra.mxu0 %v3671_v34 }
 0x293   :  { %1034 = vmatprep.subr.bf16.mxu0 %v3679_v36 }
 0x296   :  { %1035 = vmatpush1.bf16.msra.mxu0 %v3677_v38 }
 0x297   :  { %1036 = vmatprep.subr.bf16.mxu0 %v3685_v40 }
 0x29a   :  { %1037 = vmatpush1.bf16.msra.mxu0 %v3683_v42 }
 0x29b   :  { %1038 = vmatprep.subr.bf16.mxu0 %v3691_v44 }
 0x29e   :  { %1039 = vmatpush1.bf16.msra.mxu0 %v3689_v46 }
 0x29f   :  { %1040 = vmatprep.subr.bf16.mxu0 %v3697_v48 }
 0x2a2   :  { %1041 = vmatpush1.bf16.msra.mxu0 %v3695_v50  ;;  %v497_v50 = vld [vmem:[#allocation13 + $0x5] ss:$8 sm:$0x3] }
 0x2a3   :  { %1042 = vmatprep.subr.bf16.mxu0 %v3703_v52  ;;  %v542_v52 = vrot.slane %v497_v50, %v4097_v5 }
 0x2a6   :  { %1043 = vmatpush1.bf16.msra.mxu0 %v3701_v54  ;;  %v546_v54 = vrot.slane %v497_v50, %v4100_v7 }
 0x2a7   :  { %1044 = vmatprep.subr.bf16.mxu0 %v3709_v56 }
 0x2aa   :  { %1045 = vmatpush1.bf16.msra.mxu0 %v3707_v58 }
 0x2ab   :  { %1046 = vmatprep.subr.bf16.mxu0 %v3715_v61 }
 0x2ae   :  { %1047 = vmatpush1.bf16.msra.mxu0 %v3713_v62 }
 0x2af   :  { %1048 = vmatprep.subr.bf16.mxu0 %v3721_v0 }
 0x2b2   :  { %1049 = vmatpush1.bf16.msra.mxu0 %v3719_v2 }
 0x348   :  { %v489_v10 = vpop.f32.mrb[0].mxu0 }
 0x349   :  { %v490_v11 = vadd.f32 %v489_v10, %v368_v8  ;;  %v491_v12 = vpop.f32.mrb[1].mxu0  ;;  %v633_v10 = vld [vmem:[#allocation13 + $0x7] ss:$8 sm:$0xf] }
 0x34a   :  { %v492_v13 = vadd.f32 %v491_v12, %v372_v9  ;;  %v493_v14 = vpop.f32.mrb[2].mxu0  ;;  %v4109_v9 = vsub.s32 2, %v4094_v4  ;;  %v640_v12 = vrot.slane %v633_v10, %v4097_v5 }
 0x34b   :  { %v500_v15 = vrot.slane %v490_v11, 4  ;;  %v494_v16 = vpop.f32.mrb[3].mxu0  ;;  %v644_v14 = vrot.slane %v633_v10, %v4100_v7 }
 0x34c   :  { %v506_v17 = vrot.slane %v492_v13, 4 }
 0x34d   :  { %v501_v18 = vadd.f32 %v500_v15, %v490_v11 }
 0x34e   :  { %v507_v19 = vadd.f32 %v506_v17, %v492_v13 }
 0x34f   :  { %v502_v20 = vrot.slane %v501_v18, 2 }
 0x350   :  { %v508_v21 = vrot.slane %v507_v19, 2 }
 0x351   :  { %v503_v22 = vadd.f32 %v502_v20, %v501_v18 }
 0x352   :  { %v509_v23 = vadd.f32 %v508_v21, %v507_v19 }
 0x353   :  { %v504_v24 = vrot.slane %v503_v22, 1 }
 0x354   :  { %v510_v25 = vrot.slane %v509_v23, 1 }
 0x355   :  { %v505_v26 = vadd.f32 %v504_v24, %v503_v22 }
 0x356   :  { %v511_v27 = vadd.f32 %v510_v25, %v509_v23 }
 0x357   :  { %v512_v28 = vmul.f32 0.125, %v505_v26 }
 0x358   :  { %v513_v29 = vmul.f32 0.125, %v511_v27 }
 0x359   :  { %v514_v30 = vsub.f32 %v490_v11, %v512_v28  ;;  %v4112_v11 = vsub.s32 3, %v4094_v4 }
 0x35a   :  { %v515_v31 = vsub.f32 %v492_v13, %v513_v29  ;;  %v648_v13 = vrot.slane %v633_v10, %v4109_v9 }
 0x35b   :  { %v516_v32 = vmul.f32 %v514_v30, %v514_v30  ;;  %v652_v15 = vrot.slane %v633_v10, %v4112_v11 }
 0x35c   :  { %v517_v33 = vmul.f32 %v515_v31, %v515_v31 }
 0x35d   :  { %v518_v34 = vrot.slane %v516_v32, 4 }
 0x35e   :  { %v524_v35 = vrot.slane %v517_v33, 4 }
 0x35f   :  { %v519_v36 = vadd.f32 %v518_v34, %v516_v32 }
 0x360   :  { %v525_v37 = vadd.f32 %v524_v35, %v517_v33 }
 0x361   :  { %v520_v38 = vrot.slane %v519_v36, 2 }
 0x362   :  { %v526_v39 = vrot.slane %v525_v37, 2 }
 0x363   :  { %v521_v40 = vadd.f32 %v520_v38, %v519_v36 }
 0x364   :  { %v527_v41 = vadd.f32 %v526_v39, %v525_v37 }
 0x365   :  { %v522_v42 = vrot.slane %v521_v40, 1 }
 0x366   :  { %v528_v43 = vrot.slane %v527_v41, 1 }
 0x367   :  { %v523_v44 = vadd.f32 %v522_v42, %v521_v40 }
 0x368   :  { %v529_v45 = vadd.f32 %v528_v43, %v527_v41 }
 0x369   :  { %v530_v46 = vmul.f32 0.125, %v523_v44 }
 0x36a   :  { %v531_v47 = vmul.f32 0.125, %v529_v45 }
 0x36b   :  { %v532_v48 = vadd.f32 0.8, %v530_v46 }
 0x36c   :  { %v533_v49 = vadd.f32 0.8, %v531_v47 }
 0x36d   :  { %3724 = vrsqrt.f32 %v532_v48 }
 0x36e   :  { %3726 = vrsqrt.f32 %v533_v49 }
 0x377   :  { %v3725_v53 = vpop.eup %3724 }
 0x378   :  { %v3727_v55 = vpop.eup %3726  ;;  %v536_v56 = vmul.f32 %v3725_v53, %v514_v30 }
 0x379   :  { %v537_v58 = vmul.f32 %v3727_v55, %v515_v31 }
 0x37a   :  { %v549_v60 = vmul.f32 %v542_v52, %v536_v56 }
 0x37b   :  { %v550_v61 = vmul.f32 %v546_v54, %v537_v58 }
 0x37c   :  { %v562_v62 = vadd.f32 %v555_v57, %v549_v60 }
 0x37d   :  { %v563_v63 = vadd.f32 %v559_v59, %v550_v61 }
 0x37e   :  { %v564_v0 = vmul.f32 0.2, %v562_v62 }
 0x37f   :  { %v565_v1 = vmul.f32 0.2, %v563_v63 }
 0x380   :  { %v566_v2 = vmax.f32 %v562_v62, %v564_v0 }
 0x381   :  { %v567_v3 = vmax.f32 %v563_v63, %v565_v1 }
 0x382   :  { %v634_v8 = vpack.c.bf16 %v566_v2, %v566_v2 }
 0x383   :  { %v635_v6 = vpack.c.bf16 %v567_v3, %v567_v3 }
 0x385   :  { %1009 = vmatprep.mubr.bf16.mxu1 %v635_v6  ;;  %1050 = vmatprep.mubr.bf16.mxu0 %v635_v6 }
 0x386   :  { %1010 = vmatmul.mubr.bf16.vlgmr.msra.gmra.mrb[8].mxu1 %v634_v8  ;;  %1051 = vmatmul.mubr.bf16.vlgmr.msra.gmra.mrb[4].mxu0 %v634_v8 }
 0x459   :  { %v1011_v16 = vpop.f32.mrb[8].mxu1  ;;  %v1052_v17 = vpop.f32.mrb[4].mxu0 }
 0x45a   :  { %v1012_v18 = vadd.f32 %v1011_v16, %v640_v12  ;;  %v1053_v19 = vadd.f32 %v1052_v17, %v648_v13  ;;  %v1013_v20 = vpop.f32.mrb[9].mxu1  ;;  %v1054_v21 = vpop.f32.mrb[5].mxu0 }
 0x45b   :  { %v1014_v22 = vadd.f32 %v1013_v20, %v644_v14  ;;  %v1055_v23 = vadd.f32 %v1054_v21, %v652_v15  ;;  %v1015_v24 = vpop.f32.mrb[10].mxu1  ;;  %v1056_v25 = vpop.f32.mrb[6].mxu0 }
 0x45c   :  { %v1063_v26 = vrot.slane %v1012_v18, 4  ;;  %v1075_v27 = vrot.slane %v1053_v19, 4  ;;  %v1016_v28 = vpop.f32.mrb[11].mxu1  ;;  %v1057_v29 = vpop.f32.mrb[7].mxu0 }
 0x45d   :  { %v1069_v30 = vrot.slane %v1014_v22, 4  ;;  %v1081_v31 = vrot.slane %v1055_v23, 4 }
 0x45e   :  { %v1064_v32 = vadd.f32 %v1063_v26, %v1012_v18  ;;  %v1076_v33 = vadd.f32 %v1075_v27, %v1053_v19 }
 0x45f   :  { %v1070_v34 = vadd.f32 %v1069_v30, %v1014_v22  ;;  %v1082_v35 = vadd.f32 %v1081_v31, %v1055_v23 }
 0x460   :  { %v1065_v36 = vrot.slane %v1064_v32, 2  ;;  %v1077_v37 = vrot.slane %v1076_v33, 2 }
 0x461   :  { %v1071_v38 = vrot.slane %v1070_v34, 2  ;;  %v1083_v39 = vrot.slane %v1082_v35, 2 }
 0x462   :  { %v1066_v40 = vadd.f32 %v1065_v36, %v1064_v32  ;;  %v1078_v41 = vadd.f32 %v1077_v37, %v1076_v33  ;;  %v1060_v37 = vld [vmem:[#allocation13 + $0x40] ss:$8 sm:$0xf] }
 0x463   :  { %v1072_v42 = vadd.f32 %v1071_v38, %v1070_v34  ;;  %v1084_v43 = vadd.f32 %v1083_v39, %v1082_v35  ;;  %v1062_v38 = vld [vmem:[#allocation13 + $0x41] ss:$8 sm:$0xf]  ;;  %v1143_v39 = vrot.slane %v1060_v37, %v4097_v5 }
 0x464   :  { %v1067_v44 = vrot.slane %v1066_v40, 1  ;;  %v1079_v45 = vrot.slane %v1078_v41, 1 }
 0x465   :  { %v1073_v46 = vrot.slane %v1072_v42, 1  ;;  %v1085_v47 = vrot.slane %v1084_v43, 1 }
 0x466   :  { %v1068_v48 = vadd.f32 %v1067_v44, %v1066_v40  ;;  %v1080_v49 = vadd.f32 %v1079_v45, %v1078_v41  ;;  %v1151_v41 = vrot.slane %v1060_v37, %v4109_v9  ;;  %v1168_v44 = vrot.slane %v1062_v38, %v4097_v5 }
 0x467   :  { %v1074_v50 = vadd.f32 %v1073_v46, %v1072_v42  ;;  %v1086_v51 = vadd.f32 %v1085_v47, %v1084_v43  ;;  %v1147_v45 = vrot.slane %v1060_v37, %v4100_v7 }
 0x468   :  { %v1087_v52 = vmul.f32 0.125, %v1068_v48  ;;  %v1089_v53 = vmul.f32 0.125, %v1080_v49  ;;  %v1176_v48 = vrot.slane %v1062_v38, %v4109_v9  ;;  %v1155_v49 = vrot.slane %v1060_v37, %v4112_v11 }
 0x469   :  { %v1088_v54 = vmul.f32 0.125, %v1074_v50  ;;  %v1090_v55 = vmul.f32 0.125, %v1086_v51 }
 0x46a   :  { %v1091_v56 = vsub.f32 %v1012_v18, %v1087_v52  ;;  %v1093_v57 = vsub.f32 %v1053_v19, %v1089_v53  ;;  %v1172_v53 = vrot.slane %v1062_v38, %v4100_v7 }
 0x46b   :  { %v1092_v58 = vsub.f32 %v1014_v22, %v1088_v54  ;;  %v1094_v59 = vsub.f32 %v1055_v23, %v1090_v55 }
 0x46c   :  { %v1095_v60 = vmul.f32 %v1091_v56, %v1091_v56  ;;  %v1097_v61 = vmul.f32 %v1093_v57, %v1093_v57 }
 0x46d   :  { %v1096_v62 = vmul.f32 %v1092_v58, %v1092_v58  ;;  %v1098_v63 = vmul.f32 %v1094_v59, %v1094_v59 }
 0x46e   :  { %v1099_v0 = vrot.slane %v1095_v60, 4  ;;  %v1111_v1 = vrot.slane %v1097_v61, 4 }
 0x46f   :  { %v1105_v2 = vrot.slane %v1096_v62, 4  ;;  %v1117_v3 = vrot.slane %v1098_v63, 4 }
 0x470   :  { %v1100_v6 = vadd.f32 %v1099_v0, %v1095_v60  ;;  %v1112_v8 = vadd.f32 %v1111_v1, %v1097_v61  ;;  %v1180_v60 = vrot.slane %v1062_v38, %v4112_v11 }
 0x471   :  { %v1106_v10 = vadd.f32 %v1105_v2, %v1096_v62  ;;  %v1118_v12 = vadd.f32 %v1117_v3, %v1098_v63 }
 0x472   :  { %v1101_v13 = vrot.slane %v1100_v6, 2  ;;  %v1113_v14 = vrot.slane %v1112_v8, 2 }
 0x473   :  { %v1107_v15 = vrot.slane %v1106_v10, 2  ;;  %v1119_v16 = vrot.slane %v1118_v12, 2 }
 0x474   :  { %v1102_v17 = vadd.f32 %v1101_v13, %v1100_v6  ;;  %v1114_v18 = vadd.f32 %v1113_v14, %v1112_v8 }
 0x475   :  { %v1108_v19 = vadd.f32 %v1107_v15, %v1106_v10  ;;  %v1120_v20 = vadd.f32 %v1119_v16, %v1118_v12 }
 0x476   :  { %v1103_v21 = vrot.slane %v1102_v17, 1  ;;  %v1115_v22 = vrot.slane %v1114_v18, 1 }
 0x477   :  { %v1109_v23 = vrot.slane %v1108_v19, 1  ;;  %v1121_v24 = vrot.slane %v1120_v20, 1 }
 0x478   :  { %v1104_v25 = vadd.f32 %v1103_v21, %v1102_v17  ;;  %v1116_v26 = vadd.f32 %v1115_v22, %v1114_v18 }
 0x479   :  { %v1110_v27 = vadd.f32 %v1109_v23, %v1108_v19  ;;  %v1122_v28 = vadd.f32 %v1121_v24, %v1120_v20 }
 0x47a   :  { %v1123_v29 = vmul.f32 0.125, %v1104_v25  ;;  %v1125_v30 = vmul.f32 0.125, %v1116_v26 }
 0x47b   :  { %v1124_v31 = vmul.f32 0.125, %v1110_v27  ;;  %v1126_v32 = vmul.f32 0.125, %v1122_v28 }
 0x47c   :  { %v1127_v33 = vadd.f32 0.8, %v1123_v29  ;;  %v1129_v34 = vadd.f32 0.8, %v1125_v30 }
 0x47d   :  { %v1128_v35 = vadd.f32 0.8, %v1124_v31  ;;  %v1130_v36 = vadd.f32 0.8, %v1126_v32 }
 0x47e   :  { %3728 = vrsqrt.f32 %v1127_v33 }
 0x47f   :  { %3730 = vrsqrt.f32 %v1129_v34 }
 0x480   :  { %3732 = vrsqrt.f32 %v1128_v35 }
 0x481   :  { %3734 = vrsqrt.f32 %v1130_v36 }
 0x488   :  { %v3729_v40 = vpop.eup %3728 }
 0x489   :  { %v3731_v42 = vpop.eup %3730  ;;  %v1135_v43 = vmul.f32 %v3729_v40, %v1091_v56 }
 0x48a   :  { %v3733_v46 = vpop.eup %3732  ;;  %v1137_v47 = vmul.f32 %v3731_v42, %v1093_v57 }
 0x48b   :  { %v3735_v50 = vpop.eup %3734  ;;  %v1160_v51 = vmul.f32 %v1143_v39, %v1135_v43  ;;  %v1136_v52 = vmul.f32 %v3733_v46, %v1092_v58 }
 0x48c   :  { %v1162_v54 = vmul.f32 %v1151_v41, %v1137_v47  ;;  %v1138_v55 = vmul.f32 %v3735_v50, %v1094_v59 }
 0x48d   :  { %v1185_v56 = vadd.f32 %v1168_v44, %v1160_v51  ;;  %v1161_v61 = vmul.f32 %v1147_v45, %v1136_v52 }
 0x48e   :  { %v1187_v62 = vadd.f32 %v1176_v48, %v1162_v54  ;;  %v1163_v63 = vmul.f32 %v1155_v49, %v1138_v55 }
 0x48f   :  { %v1189_v0 = vmul.f32 0.2, %v1185_v56  ;;  %v1186_v1 = vadd.f32 %v1172_v53, %v1161_v61 }
 0x490   :  { %v1191_v57 = vmul.f32 0.2, %v1187_v62  ;;  %v1188_v2 = vadd.f32 %v1180_v60, %v1163_v63 }
 0x491   :  { %v4126_v3 = vmax.f32 %v1185_v56, %v1189_v0  ;;  %v1190_v6 = vmul.f32 0.2, %v1186_v1 }
 0x492   :  { %v4128_v8 = vmax.f32 %v1187_v62, %v1191_v57  ;;  %v1192_v58 = vmul.f32 0.2, %v1188_v2 }
 0x493   :  { %v1194_v10 = vmax.f32 %v1186_v1, %v1190_v6 }
 0x494   :  { %v4130_v12 = vmax.f32 %v1188_v2, %v1192_v58 }
 0x495   :  { %3908 = dma.done.wait [#allocation4], 32768 }
 0x496   :  { %3909 = vsyncadd [#allocation4], 4294934528  ;;  %v4132_v59 = vpack.c.bf16 %v1194_v10, %v1194_v10  ;;  %v1202_v13 = vld [vmem:[#allocation2 + $0x8] sm:$0xff]  ;;  %v1204_v14 = vld [vmem:[#allocation2 + $0x18] sm:$0xff] }
 0x497   :  { %v1201_v15 = vld [vmem:[#allocation2] sm:$0xff]  ;;  %1506 = vmatprep.subr.bf16.mxu1 %v1202_v13  ;;  %1588 = vmatprep.subr.bf16.mxu0 %v1204_v14  ;;  %v1203_v16 = vld [vmem:[#allocation2 + $0x10] sm:$0xff]  ;;  %v1210_v17 = vld [vmem:[#allocation2 + $0x48] sm:$0xff] }
 0x498   :  { %1538 = vmatprep.mubr.bf16.mxu1 %v4132_v59  ;;  %1620 = vmatprep.mubr.bf16.mxu0 %v4132_v59  ;;  %v1212_v18 = vld [vmem:[#allocation2 + $0x58] sm:$0xff]  ;;  %v1209_v19 = vld [vmem:[#allocation2 + $0x40] sm:$0xff]  ;;  %v1211_v20 = vld [vmem:[#allocation2 + $0x50] sm:$0xff] }
 0x499   :  { %1507 = vmatpush1.bf16.msra.mxu1 %v1201_v15  ;;  %1589 = vmatpush1.bf16.msra.mxu0 %v1203_v16  ;;  %v1218_v21 = vld [vmem:[#allocation2 + $0x88] sm:$0xff]  ;;  %v1220_v22 = vld [vmem:[#allocation2 + $0x98] sm:$0xff]  ;;  %v1217_v23 = vld [vmem:[#allocation2 + $0x80] sm:$0xff] }
 0x49a   :  { %1508 = vmatprep.subr.bf16.mxu1 %v1210_v17  ;;  %1590 = vmatprep.subr.bf16.mxu0 %v1212_v18  ;;  %v1219_v24 = vld [vmem:[#allocation2 + $0x90] sm:$0xff]  ;;  %v1226_v25 = vld [vmem:[#allocation2 + $0xc8] sm:$0xff]  ;;  %v1228_v26 = vld [vmem:[#allocation2 + $0xd8] sm:$0xff] }
 0x49b   :  { %v1225_v27 = vld [vmem:[#allocation2 + $0xc0] sm:$0xff]  ;;  %v1227_v28 = vld [vmem:[#allocation2 + $0xd0] sm:$0xff]  ;;  %v1234_v29 = vld [vmem:[#allocation2 + $0x108] sm:$0xff] }
 0x49c   :  { %v1236_v30 = vld [vmem:[#allocation2 + $0x118] sm:$0xff]  ;;  %v1233_v31 = vld [vmem:[#allocation2 + $0x100] sm:$0xff]  ;;  %v1235_v32 = vld [vmem:[#allocation2 + $0x110] sm:$0xff] }
 0x49d   :  { %1509 = vmatpush1.bf16.msra.mxu1 %v1209_v19  ;;  %1591 = vmatpush1.bf16.msra.mxu0 %v1211_v20  ;;  %v1242_v33 = vld [vmem:[#allocation2 + $0x148] sm:$0xff]  ;;  %v1244_v34 = vld [vmem:[#allocation2 + $0x158] sm:$0xff]  ;;  %v1241_v35 = vld [vmem:[#allocation2 + $0x140] sm:$0xff] }
 0x49e   :  { %1510 = vmatprep.subr.bf16.mxu1 %v1218_v21  ;;  %1592 = vmatprep.subr.bf16.mxu0 %v1220_v22  ;;  %v1243_v36 = vld [vmem:[#allocation2 + $0x150] sm:$0xff]  ;;  %v1250_v37 = vld [vmem:[#allocation2 + $0x188] sm:$0xff]  ;;  %v1252_v38 = vld [vmem:[#allocation2 + $0x198] sm:$0xff] }
 0x49f   :  { %v1249_v39 = vld [vmem:[#allocation2 + $0x180] sm:$0xff]  ;;  %v1251_v40 = vld [vmem:[#allocation2 + $0x190] sm:$0xff]  ;;  %v1258_v41 = vld [vmem:[#allocation2 + $0x1c8] sm:$0xff] }
 0x4a0   :  { %v1260_v42 = vld [vmem:[#allocation2 + $0x1d8] sm:$0xff]  ;;  %v1257_v43 = vld [vmem:[#allocation2 + $0x1c0] sm:$0xff]  ;;  %v1259_v44 = vld [vmem:[#allocation2 + $0x1d0] sm:$0xff] }
 0x4a1   :  { %1511 = vmatpush1.bf16.msra.mxu1 %v1217_v23  ;;  %1593 = vmatpush1.bf16.msra.mxu0 %v1219_v24  ;;  %v1266_v45 = vld [vmem:[#allocation2 + $0x208] sm:$0xff]  ;;  %v1268_v46 = vld [vmem:[#allocation2 + $0x218] sm:$0xff]  ;;  %v1265_v47 = vld [vmem:[#allocation2 + $0x200] sm:$0xff]  ;;  %v4138_v24 = vpack.c.bf16 %v4126_v3, %v4126_v3 }
 0x4a2   :  { %1512 = vmatprep.subr.bf16.mxu1 %v1226_v25  ;;  %1594 = vmatprep.subr.bf16.mxu0 %v1228_v26  ;;  %v1267_v48 = vld [vmem:[#allocation2 + $0x210] sm:$0xff]  ;;  %v1274_v49 = vld [vmem:[#allocation2 + $0x248] sm:$0xff]  ;;  %v1276_v50 = vld [vmem:[#allocation2 + $0x258] sm:$0xff] }
 0x4a3   :  { %v1273_v51 = vld [vmem:[#allocation2 + $0x240] sm:$0xff]  ;;  %v1275_v52 = vld [vmem:[#allocation2 + $0x250] sm:$0xff]  ;;  %v1282_v53 = vld [vmem:[#allocation2 + $0x288] sm:$0xff] }
 0x4a4   :  { %v1284_v54 = vld [vmem:[#allocation2 + $0x298] sm:$0xff]  ;;  %v1281_v55 = vld [vmem:[#allocation2 + $0x280] sm:$0xff]  ;;  %v1283_v60 = vld [vmem:[#allocation2 + $0x290] sm:$0xff] }
 0x4a5   :  { %1513 = vmatpush1.bf16.msra.mxu1 %v1225_v27  ;;  %1595 = vmatpush1.bf16.msra.mxu0 %v1227_v28  ;;  %v1290_v56 = vld [vmem:[#allocation2 + $0x2c8] sm:$0xff]  ;;  %v1292_v61 = vld [vmem:[#allocation2 + $0x2d8] sm:$0xff]  ;;  %v1289_v62 = vld [vmem:[#allocation2 + $0x2c0] sm:$0xff] }
 0x4a6   :  { %1514 = vmatprep.subr.bf16.mxu1 %v1234_v29  ;;  %1596 = vmatprep.subr.bf16.mxu0 %v1236_v30  ;;  %v1291_v63 = vld [vmem:[#allocation2 + $0x2d0] sm:$0xff]  ;;  %v1298_v0 = vld [vmem:[#allocation2 + $0x308] sm:$0xff]  ;;  %v1300_v1 = vld [vmem:[#allocation2 + $0x318] sm:$0xff]  ;;  %v4142_v29 = vpack.c.bf16 %v4130_v12, %v4130_v12 }
 0x4a7   :  { %v1297_v57 = vld [vmem:[#allocation2 + $0x300] sm:$0xff]  ;;  %v1299_v2 = vld [vmem:[#allocation2 + $0x310] sm:$0xff]  ;;  %v1306_v6 = vld [vmem:[#allocation2 + $0x348] sm:$0xff] }
 0x4a8   :  { %v1308_v58 = vld [vmem:[#allocation2 + $0x358] sm:$0xff]  ;;  %v1305_v10 = vld [vmem:[#allocation2 + $0x340] sm:$0xff]  ;;  %v1307_v13 = vld [vmem:[#allocation2 + $0x350] sm:$0xff] }
 0x4a9   :  { %1515 = vmatpush1.bf16.msra.mxu1 %v1233_v31  ;;  %1597 = vmatpush1.bf16.msra.mxu0 %v1235_v32  ;;  %v1314_v14 = vld [vmem:[#allocation2 + $0x388] sm:$0xff]  ;;  %v1316_v15 = vld [vmem:[#allocation2 + $0x398] sm:$0xff]  ;;  %v1313_v16 = vld [vmem:[#allocation2 + $0x380] sm:$0xff] }
 0x4aa   :  { %1516 = vmatprep.subr.bf16.mxu1 %v1242_v33  ;;  %1598 = vmatprep.subr.bf16.mxu0 %v1244_v34  ;;  %v1315_v17 = vld [vmem:[#allocation2 + $0x390] sm:$0xff]  ;;  %v1322_v18 = vld [vmem:[#allocation2 + $0x3c8] sm:$0xff]  ;;  %v1324_v19 = vld [vmem:[#allocation2 + $0x3d8] sm:$0xff] }
 0x4ab   :  { %v1321_v20 = vld [vmem:[#allocation2 + $0x3c0] sm:$0xff]  ;;  %v1323_v21 = vld [vmem:[#allocation2 + $0x3d0] sm:$0xff]  ;;  %v1330_v22 = vld [vmem:[#allocation2 + $0x408] sm:$0xff] }
 0x4ac   :  { %v1332_v23 = vld [vmem:[#allocation2 + $0x418] sm:$0xff]  ;;  %v1329_v25 = vld [vmem:[#allocation2 + $0x400] sm:$0xff]  ;;  %v1331_v26 = vld [vmem:[#allocation2 + $0x410] sm:$0xff] }
 0x4ad   :  { %1517 = vmatpush1.bf16.msra.mxu1 %v1241_v35  ;;  %1599 = vmatpush1.bf16.msra.mxu0 %v1243_v36  ;;  %v1338_v27 = vld [vmem:[#allocation2 + $0x448] sm:$0xff]  ;;  %v1340_v28 = vld [vmem:[#allocation2 + $0x458] sm:$0xff]  ;;  %v1337_v3 = vld [vmem:[#allocation2 + $0x440] sm:$0xff] }
 0x4ae   :  { %1518 = vmatprep.subr.bf16.mxu1 %v1250_v37  ;;  %1600 = vmatprep.subr.bf16.mxu0 %v1252_v38  ;;  %v1339_v30 = vld [vmem:[#allocation2 + $0x450] sm:$0xff]  ;;  %v1346_v31 = vld [vmem:[#allocation2 + $0x488] sm:$0xff]  ;;  %v1348_v32 = vld [vmem:[#allocation2 + $0x498] sm:$0xff] }
 0x4af   :  { %v1345_v12 = vld [vmem:[#allocation2 + $0x480] sm:$0xff]  ;;  %v1347_v33 = vld [vmem:[#allocation2 + $0x490] sm:$0xff]  ;;  %v1354_v34 = vld [vmem:[#allocation2 + $0x4c8] sm:$0xff] }
 0x4b0   :  { %v1356_v35 = vld [vmem:[#allocation2 + $0x4d8] sm:$0xff]  ;;  %v1353_v36 = vld [vmem:[#allocation2 + $0x4c0] sm:$0xff]  ;;  %v1355_v37 = vld [vmem:[#allocation2 + $0x4d0] sm:$0xff] }
 0x4b1   :  { %1519 = vmatpush1.bf16.msra.mxu1 %v1249_v39  ;;  %1601 = vmatpush1.bf16.msra.mxu0 %v1251_v40  ;;  %v1362_v38 = vld [vmem:[#allocation2 + $0x508] sm:$0xff]  ;;  %v1364_v39 = vld [vmem:[#allocation2 + $0x518] sm:$0xff]  ;;  %v1361_v40 = vld [vmem:[#allocation2 + $0x500] sm:$0xff] }
 0x4b2   :  { %1520 = vmatprep.subr.bf16.mxu1 %v1258_v41  ;;  %1602 = vmatprep.subr.bf16.mxu0 %v1260_v42  ;;  %v1363_v41 = vld [vmem:[#allocation2 + $0x510] sm:$0xff]  ;;  %v1370_v42 = vld [vmem:[#allocation2 + $0x548] sm:$0xff] }
 0x4b5   :  { %1521 = vmatpush1.bf16.msra.mxu1 %v1257_v43  ;;  %1603 = vmatpush1.bf16.msra.mxu0 %v1259_v44  ;;  %v1372_v43 = vld [vmem:[#allocation2 + $0x558] sm:$0xff]  ;;  %v1369_v44 = vld [vmem:[#allocation2 + $0x540] sm:$0xff] }
 0x4b6   :  { %1522 = vmatprep.subr.bf16.mxu1 %v1266_v45  ;;  %1604 = vmatprep.subr.bf16.mxu0 %v1268_v46  ;;  %v1371_v45 = vld [vmem:[#allocation2 + $0x550] sm:$0xff]  ;;  %v1378_v46 = vld [vmem:[#allocation2 + $0x588] sm:$0xff] }
 0x4b9   :  { %1523 = vmatpush1.bf16.msra.mxu1 %v1265_v47  ;;  %1605 = vmatpush1.bf16.msra.mxu0 %v1267_v48  ;;  %v1380_v47 = vld [vmem:[#allocation2 + $0x598] sm:$0xff]  ;;  %v1377_v48 = vld [vmem:[#allocation2 + $0x580] sm:$0xff] }
 0x4ba   :  { %1524 = vmatprep.subr.bf16.mxu1 %v1274_v49  ;;  %1606 = vmatprep.subr.bf16.mxu0 %v1276_v50  ;;  %v1379_v49 = vld [vmem:[#allocation2 + $0x590] sm:$0xff]  ;;  %v1386_v50 = vld [vmem:[#allocation2 + $0x5c8] sm:$0xff] }
 0x4bd   :  { %1525 = vmatpush1.bf16.msra.mxu1 %v1273_v51  ;;  %1607 = vmatpush1.bf16.msra.mxu0 %v1275_v52  ;;  %v1388_v51 = vld [vmem:[#allocation2 + $0x5d8] sm:$0xff]  ;;  %v1385_v52 = vld [vmem:[#allocation2 + $0x5c0] sm:$0xff] }
 0x4be   :  { %1526 = vmatprep.subr.bf16.mxu1 %v1282_v53  ;;  %1608 = vmatprep.subr.bf16.mxu0 %v1284_v54  ;;  %v1387_v53 = vld [vmem:[#allocation2 + $0x5d0] sm:$0xff]  ;;  %v1394_v54 = vld [vmem:[#allocation2 + $0x608] sm:$0xff] }
 0x4c1   :  { %1527 = vmatpush1.bf16.msra.mxu1 %v1281_v55  ;;  %1609 = vmatpush1.bf16.msra.mxu0 %v1283_v60  ;;  %v1396_v55 = vld [vmem:[#allocation2 + $0x618] sm:$0xff]  ;;  %v1393_v60 = vld [vmem:[#allocation2 + $0x600] sm:$0xff] }
 0x4c2   :  { %1528 = vmatprep.subr.bf16.mxu1 %v1290_v56  ;;  %1610 = vmatprep.subr.bf16.mxu0 %v1292_v61  ;;  %v1395_v56 = vld [vmem:[#allocation2 + $0x610] sm:$0xff]  ;;  %v1402_v61 = vld [vmem:[#allocation2 + $0x648] sm:$0xff] }
 0x4c5   :  { %1529 = vmatpush1.bf16.msra.mxu1 %v1289_v62  ;;  %1611 = vmatpush1.bf16.msra.mxu0 %v1291_v63  ;;  %v1404_v62 = vld [vmem:[#allocation2 + $0x658] sm:$0xff]  ;;  %v1401_v63 = vld [vmem:[#allocation2 + $0x640] sm:$0xff] }
 0x4c6   :  { %1530 = vmatprep.subr.bf16.mxu1 %v1298_v0  ;;  %1612 = vmatprep.subr.bf16.mxu0 %v1300_v1  ;;  %v1403_v0 = vld [vmem:[#allocation2 + $0x650] sm:$0xff]  ;;  %v1410_v1 = vld [vmem:[#allocation2 + $0x688] sm:$0xff] }
 0x4c9   :  { %1531 = vmatpush1.bf16.msra.mxu1 %v1297_v57  ;;  %1613 = vmatpush1.bf16.msra.mxu0 %v1299_v2  ;;  %v1412_v57 = vld [vmem:[#allocation2 + $0x698] sm:$0xff]  ;;  %v1409_v2 = vld [vmem:[#allocation2 + $0x680] sm:$0xff] }
 0x4ca   :  { %1532 = vmatprep.subr.bf16.mxu1 %v1306_v6  ;;  %1614 = vmatprep.subr.bf16.mxu0 %v1308_v58  ;;  %v1411_v6 = vld [vmem:[#allocation2 + $0x690] sm:$0xff]  ;;  %v1418_v58 = vld [vmem:[#allocation2 + $0x6c8] sm:$0xff] }
 0x4cd   :  { %1533 = vmatpush1.bf16.msra.mxu1 %v1305_v10  ;;  %1615 = vmatpush1.bf16.msra.mxu0 %v1307_v13  ;;  %v1420_v10 = vld [vmem:[#allocation2 + $0x6d8] sm:$0xff]  ;;  %v1417_v13 = vld [vmem:[#allocation2 + $0x6c0] sm:$0xff] }
 0x4ce   :  { %1534 = vmatprep.subr.bf16.mxu1 %v1314_v14  ;;  %1616 = vmatprep.subr.bf16.mxu0 %v1316_v15  ;;  %v1419_v14 = vld [vmem:[#allocation2 + $0x6d0] sm:$0xff]  ;;  %v1426_v15 = vld [vmem:[#allocation2 + $0x708] sm:$0xff] }
 0x4d1   :  { %1535 = vmatpush1.bf16.msra.mxu1 %v1313_v16  ;;  %1617 = vmatpush1.bf16.msra.mxu0 %v1315_v17  ;;  %v1428_v16 = vld [vmem:[#allocation2 + $0x718] sm:$0xff]  ;;  %v1425_v17 = vld [vmem:[#allocation2 + $0x700] sm:$0xff] }
 0x4d2   :  { %1536 = vmatprep.subr.bf16.mxu1 %v1322_v18  ;;  %1618 = vmatprep.subr.bf16.mxu0 %v1324_v19  ;;  %v1427_v18 = vld [vmem:[#allocation2 + $0x710] sm:$0xff]  ;;  %v1434_v19 = vld [vmem:[#allocation2 + $0x748] sm:$0xff] }
 0x4d5   :  { %1537 = vmatpush1.bf16.msra.mxu1 %v1321_v20  ;;  %1619 = vmatpush1.bf16.msra.mxu0 %v1323_v21  ;;  %v1436_v20 = vld [vmem:[#allocation2 + $0x758] sm:$0xff]  ;;  %v1433_v21 = vld [vmem:[#allocation2 + $0x740] sm:$0xff] }
 0x4d6   :  { %1547 = vmatprep.subr.bf16.mxu1 %v1330_v22  ;;  %1629 = vmatprep.subr.bf16.mxu0 %v1332_v23  ;;  %v1435_v22 = vld [vmem:[#allocation2 + $0x750] sm:$0xff]  ;;  %v1442_v23 = vld [vmem:[#allocation2 + $0x788] sm:$0xff] }
 0x4d8   :  { %1539 = vmatmul.mubr.bf16.vlgmr.msra.gmra.mrb[12].mxu1 %v4138_v24  ;;  %1621 = vmatmul.mubr.bf16.vlgmr.msra.gmra.mrb[8].mxu0 %v4138_v24 }
 0x4d9   :  { %1548 = vmatpush1.bf16.msra.mxu1 %v1329_v25  ;;  %1630 = vmatpush1.bf16.msra.mxu0 %v1331_v26  ;;  %v1444_v25 = vld [vmem:[#allocation2 + $0x798] sm:$0xff]  ;;  %v1441_v26 = vld [vmem:[#allocation2 + $0x780] sm:$0xff] }
 0x4da   :  { %1549 = vmatprep.subr.bf16.mxu1 %v1338_v27  ;;  %1631 = vmatprep.subr.bf16.mxu0 %v1340_v28  ;;  %v1443_v27 = vld [vmem:[#allocation2 + $0x790] sm:$0xff]  ;;  %v1450_v28 = vld [vmem:[#allocation2 + $0x7c8] sm:$0xff] }
 0x4db   :  { %1579 = vmatprep.mubr.bf16.mxu1 %v4142_v29  ;;  %1661 = vmatprep.mubr.bf16.mxu0 %v4142_v29 }
 0x4dd   :  { %1550 = vmatpush1.bf16.msra.mxu1 %v1337_v3  ;;  %1632 = vmatpush1.bf16.msra.mxu0 %v1339_v30  ;;  %v1452_v3 = vld [vmem:[#allocation2 + $0x7d8] sm:$0xff]  ;;  %v1449_v30 = vld [vmem:[#allocation2 + $0x7c0] sm:$0xff] }
 0x4de   :  { %1551 = vmatprep.subr.bf16.mxu1 %v1346_v31  ;;  %1633 = vmatprep.subr.bf16.mxu0 %v1348_v32  ;;  %v1451_v31 = vld [vmem:[#allocation2 + $0x7d0] sm:$0xff]  ;;  %v1206_v32 = vld [vmem:[#allocation2 + $0x28] sm:$0xff] }
 0x4e1   :  { %1552 = vmatpush1.bf16.msra.mxu1 %v1345_v12  ;;  %1634 = vmatpush1.bf16.msra.mxu0 %v1347_v33  ;;  %v1208_v12 = vld [vmem:[#allocation2 + $0x38] sm:$0xff]  ;;  %v4150_v33 = vpack.c.bf16 %v4128_v8, %v4128_v8  ;;  %v1222_v8 = vld [vmem:[#allocation2 + $0xa8] sm:$0xff] }
 0x4e2   :  { %1553 = vmatprep.subr.bf16.mxu1 %v1354_v34  ;;  %1635 = vmatprep.subr.bf16.mxu0 %v1356_v35  ;;  %v1205_v34 = vld [vmem:[#allocation2 + $0x20] sm:$0xff]  ;;  %v1207_v35 = vld [vmem:[#allocation2 + $0x30] sm:$0xff] }
 0x4e5   :  { %1554 = vmatpush1.bf16.msra.mxu1 %v1353_v36  ;;  %1636 = vmatpush1.bf16.msra.mxu0 %v1355_v37  ;;  %v1214_v36 = vld [vmem:[#allocation2 + $0x68] sm:$0xff]  ;;  %v1216_v37 = vld [vmem:[#allocation2 + $0x78] sm:$0xff] }
 0x4e6   :  { %1555 = vmatprep.subr.bf16.mxu1 %v1362_v38  ;;  %1637 = vmatprep.subr.bf16.mxu0 %v1364_v39  ;;  %v1213_v38 = vld [vmem:[#allocation2 + $0x60] sm:$0xff]  ;;  %v1215_v39 = vld [vmem:[#allocation2 + $0x70] sm:$0xff] }
 0x4e9   :  { %1556 = vmatpush1.bf16.msra.mxu1 %v1361_v40  ;;  %1638 = vmatpush1.bf16.msra.mxu0 %v1363_v41  ;;  %v1224_v40 = vld [vmem:[#allocation2 + $0xb8] sm:$0xff]  ;;  %v1221_v41 = vld [vmem:[#allocation2 + $0xa0] sm:$0xff] }
 0x4ea   :  { %1557 = vmatprep.subr.bf16.mxu1 %v1370_v42  ;;  %1639 = vmatprep.subr.bf16.mxu0 %v1372_v43  ;;  %v1223_v42 = vld [vmem:[#allocation2 + $0xb0] sm:$0xff]  ;;  %v1230_v43 = vld [vmem:[#allocation2 + $0xe8] sm:$0xff] }
 0x4ed   :  { %1558 = vmatpush1.bf16.msra.mxu1 %v1369_v44  ;;  %1640 = vmatpush1.bf16.msra.mxu0 %v1371_v45  ;;  %v1232_v44 = vld [vmem:[#allocation2 + $0xf8] sm:$0xff]  ;;  %v1229_v45 = vld [vmem:[#allocation2 + $0xe0] sm:$0xff] }
 0x4ee   :  { %1559 = vmatprep.subr.bf16.mxu1 %v1378_v46  ;;  %1641 = vmatprep.subr.bf16.mxu0 %v1380_v47  ;;  %v1231_v46 = vld [vmem:[#allocation2 + $0xf0] sm:$0xff]  ;;  %v1238_v47 = vld [vmem:[#allocation2 + $0x128] sm:$0xff] }
 0x4f1   :  { %1560 = vmatpush1.bf16.msra.mxu1 %v1377_v48  ;;  %1642 = vmatpush1.bf16.msra.mxu0 %v1379_v49  ;;  %v1240_v48 = vld [vmem:[#allocation2 + $0x138] sm:$0xff]  ;;  %v1239_v49 = vld [vmem:[#allocation2 + $0x130] sm:$0xff] }
 0x4f2   :  { %1561 = vmatprep.subr.bf16.mxu1 %v1386_v50  ;;  %1643 = vmatprep.subr.bf16.mxu0 %v1388_v51  ;;  %v1246_v50 = vld [vmem:[#allocation2 + $0x168] sm:$0xff]  ;;  %v1248_v51 = vld [vmem:[#allocation2 + $0x178] sm:$0xff] }
 0x4f5   :  { %1562 = vmatpush1.bf16.msra.mxu1 %v1385_v52  ;;  %1644 = vmatpush1.bf16.msra.mxu0 %v1387_v53  ;;  %v1245_v52 = vld [vmem:[#allocation2 + $0x160] sm:$0xff]  ;;  %v1247_v53 = vld [vmem:[#allocation2 + $0x170] sm:$0xff] }
 0x4f6   :  { %1563 = vmatprep.subr.bf16.mxu1 %v1394_v54  ;;  %1645 = vmatprep.subr.bf16.mxu0 %v1396_v55  ;;  %v1254_v54 = vld [vmem:[#allocation2 + $0x1a8] sm:$0xff]  ;;  %v1256_v55 = vld [vmem:[#allocation2 + $0x1b8] sm:$0xff] }
 0x4f9   :  { %1564 = vmatpush1.bf16.msra.mxu1 %v1393_v60  ;;  %1646 = vmatpush1.bf16.msra.mxu0 %v1395_v56  ;;  %v1253_v60 = vld [vmem:[#allocation2 + $0x1a0] sm:$0xff]  ;;  %v1255_v56 = vld [vmem:[#allocation2 + $0x1b0] sm:$0xff] }
 0x4fa   :  { %1565 = vmatprep.subr.bf16.mxu1 %v1402_v61  ;;  %1647 = vmatprep.subr.bf16.mxu0 %v1404_v62  ;;  %v1262_v61 = vld [vmem:[#allocation2 + $0x1e8] sm:$0xff]  ;;  %v1264_v62 = vld [vmem:[#allocation2 + $0x1f8] sm:$0xff] }
 0x4fd   :  { %1566 = vmatpush1.bf16.msra.mxu1 %v1401_v63  ;;  %1648 = vmatpush1.bf16.msra.mxu0 %v1403_v0  ;;  %v1261_v63 = vld [vmem:[#allocation2 + $0x1e0] sm:$0xff]  ;;  %v1263_v0 = vld [vmem:[#allocation2 + $0x1f0] sm:$0xff] }
 0x4fe   :  { %1567 = vmatprep.subr.bf16.mxu1 %v1410_v1  ;;  %1649 = vmatprep.subr.bf16.mxu0 %v1412_v57  ;;  %v1270_v1 = vld [vmem:[#allocation2 + $0x228] sm:$0xff]  ;;  %v1272_v57 = vld [vmem:[#allocation2 + $0x238] sm:$0xff] }
 0x501   :  { %1568 = vmatpush1.bf16.msra.mxu1 %v1409_v2  ;;  %1650 = vmatpush1.bf16.msra.mxu0 %v1411_v6  ;;  %v1269_v2 = vld [vmem:[#allocation2 + $0x220] sm:$0xff]  ;;  %v1271_v6 = vld [vmem:[#allocation2 + $0x230] sm:$0xff] }
 0x502   :  { %1569 = vmatprep.subr.bf16.mxu1 %v1418_v58  ;;  %1651 = vmatprep.subr.bf16.mxu0 %v1420_v10  ;;  %v1278_v58 = vld [vmem:[#allocation2 + $0x268] sm:$0xff]  ;;  %v1280_v10 = vld [vmem:[#allocation2 + $0x278] sm:$0xff] }
 0x505   :  { %1570 = vmatpush1.bf16.msra.mxu1 %v1417_v13  ;;  %1652 = vmatpush1.bf16.msra.mxu0 %v1419_v14  ;;  %v1277_v13 = vld [vmem:[#allocation2 + $0x260] sm:$0xff]  ;;  %v1279_v14 = vld [vmem:[#allocation2 + $0x270] sm:$0xff] }
 0x506   :  { %1571 = vmatprep.subr.bf16.mxu1 %v1426_v15  ;;  %1653 = vmatprep.subr.bf16.mxu0 %v1428_v16  ;;  %v1286_v15 = vld [vmem:[#allocation2 + $0x2a8] sm:$0xff]  ;;  %v1288_v16 = vld [vmem:[#allocation2 + $0x2b8] sm:$0xff] }
 0x509   :  { %1572 = vmatpush1.bf16.msra.mxu1 %v1425_v17  ;;  %1654 = vmatpush1.bf16.msra.mxu0 %v1427_v18  ;;  %v1285_v17 = vld [vmem:[#allocation2 + $0x2a0] sm:$0xff]  ;;  %v1287_v18 = vld [vmem:[#allocation2 + $0x2b0] sm:$0xff] }
 0x50a   :  { %1573 = vmatprep.subr.bf16.mxu1 %v1434_v19  ;;  %1655 = vmatprep.subr.bf16.mxu0 %v1436_v20  ;;  %v1294_v19 = vld [vmem:[#allocation2 + $0x2e8] sm:$0xff]  ;;  %v1296_v20 = vld [vmem:[#allocation2 + $0x2f8] sm:$0xff] }
 0x50d   :  { %1574 = vmatpush1.bf16.msra.mxu1 %v1433_v21  ;;  %1656 = vmatpush1.bf16.msra.mxu0 %v1435_v22  ;;  %v1293_v21 = vld [vmem:[#allocation2 + $0x2e0] sm:$0xff]  ;;  %v1295_v22 = vld [vmem:[#allocation2 + $0x2f0] sm:$0xff] }
 0x50e   :  { %1575 = vmatprep.subr.bf16.mxu1 %v1442_v23  ;;  %1657 = vmatprep.subr.bf16.mxu0 %v1444_v25  ;;  %v1302_v23 = vld [vmem:[#allocation2 + $0x328] sm:$0xff]  ;;  %v1304_v25 = vld [vmem:[#allocation2 + $0x338] sm:$0xff] }
 0x511   :  { %1576 = vmatpush1.bf16.msra.mxu1 %v1441_v26  ;;  %1658 = vmatpush1.bf16.msra.mxu0 %v1443_v27  ;;  %v1301_v26 = vld [vmem:[#allocation2 + $0x320] sm:$0xff]  ;;  %v1303_v27 = vld [vmem:[#allocation2 + $0x330] sm:$0xff] }
 0x512   :  { %1577 = vmatprep.subr.bf16.mxu1 %v1450_v28  ;;  %1659 = vmatprep.subr.bf16.mxu0 %v1452_v3  ;;  %v1310_v28 = vld [vmem:[#allocation2 + $0x368] sm:$0xff]  ;;  %v1312_v3 = vld [vmem:[#allocation2 + $0x378] sm:$0xff] }
 0x515   :  { %1578 = vmatpush1.bf16.msra.mxu1 %v1449_v30  ;;  %1660 = vmatpush1.bf16.msra.mxu0 %v1451_v31  ;;  %v1309_v30 = vld [vmem:[#allocation2 + $0x360] sm:$0xff]  ;;  %v1311_v31 = vld [vmem:[#allocation2 + $0x370] sm:$0xff] }
 0x516   :  { %1670 = vmatprep.subr.bf16.mxu1 %v1206_v32  ;;  %1752 = vmatprep.subr.bf16.mxu0 %v1208_v12  ;;  %v1318_v32 = vld [vmem:[#allocation2 + $0x3a8] sm:$0xff]  ;;  %v1320_v12 = vld [vmem:[#allocation2 + $0x3b8] sm:$0xff] }
 0x518   :  { %1580 = vmatmul.mubr.bf16.vlgmr.msra.gmra.mrb[12].mxu1 %v4150_v33  ;;  %1662 = vmatmul.mubr.bf16.vlgmr.msra.gmra.mrb[8].mxu0 %v4150_v33 }
 0x519   :  { %1671 = vmatpush1.bf16.msra.mxu1 %v1205_v34  ;;  %1753 = vmatpush1.bf16.msra.mxu0 %v1207_v35  ;;  %v1317_v34 = vld [vmem:[#allocation2 + $0x3a0] sm:$0xff]  ;;  %v1319_v35 = vld [vmem:[#allocation2 + $0x3b0] sm:$0xff] }
 0x51a   :  { %1672 = vmatprep.subr.bf16.mxu1 %v1214_v36  ;;  %1754 = vmatprep.subr.bf16.mxu0 %v1216_v37  ;;  %v1326_v36 = vld [vmem:[#allocation2 + $0x3e8] sm:$0xff]  ;;  %v1328_v37 = vld [vmem:[#allocation2 + $0x3f8] sm:$0xff] }
 0x51b   :  { %1702 = vmatprep.mubr.bf16.mxu1 %v4132_v59  ;;  %1784 = vmatprep.mubr.bf16.mxu0 %v4132_v59  ;;  %v1237_v59 = vld [vmem:[#allocation2 + $0x120] sm:$0xff] }
 0x51d   :  { %1673 = vmatpush1.bf16.msra.mxu1 %v1213_v38  ;;  %1755 = vmatpush1.bf16.msra.mxu0 %v1215_v39  ;;  %v1325_v38 = vld [vmem:[#allocation2 + $0x3e0] sm:$0xff]  ;;  %v1327_v39 = vld [vmem:[#allocation2 + $0x3f0] sm:$0xff] }
 0x51e   :  { %1674 = vmatprep.subr.bf16.mxu1 %v1222_v8  ;;  %1756 = vmatprep.subr.bf16.mxu0 %v1224_v40  ;;  %v1334_v8 = vld [vmem:[#allocation2 + $0x428] sm:$0xff]  ;;  %v1336_v40 = vld [vmem:[#allocation2 + $0x438] sm:$0xff] }
 0x521   :  { %1675 = vmatpush1.bf16.msra.mxu1 %v1221_v41  ;;  %1757 = vmatpush1.bf16.msra.mxu0 %v1223_v42  ;;  %v1333_v41 = vld [vmem:[#allocation2 + $0x420] sm:$0xff]  ;;  %v1335_v42 = vld [vmem:[#allocation2 + $0x430] sm:$0xff] }
 0x522   :  { %1676 = vmatprep.subr.bf16.mxu1 %v1230_v43  ;;  %1758 = vmatprep.subr.bf16.mxu0 %v1232_v44  ;;  %v1342_v43 = vld [vmem:[#allocation2 + $0x468] sm:$0xff]  ;;  %v1344_v44 = vld [vmem:[#allocation2 + $0x478] sm:$0xff] }
 0x525   :  { %1677 = vmatpush1.bf16.msra.mxu1 %v1229_v45  ;;  %1759 = vmatpush1.bf16.msra.mxu0 %v1231_v46  ;;  %v1341_v45 = vld [vmem:[#allocation2 + $0x460] sm:$0xff]  ;;  %v1343_v46 = vld [vmem:[#allocation2 + $0x470] sm:$0xff] }
 0x526   :  { %1678 = vmatprep.subr.bf16.mxu1 %v1238_v47  ;;  %1760 = vmatprep.subr.bf16.mxu0 %v1240_v48  ;;  %v1350_v47 = vld [vmem:[#allocation2 + $0x4a8] sm:$0xff]  ;;  %v1352_v48 = vld [vmem:[#allocation2 + $0x4b8] sm:$0xff] }
 0x529   :  { %1679 = vmatpush1.bf16.msra.mxu1 %v1237_v59  ;;  %1761 = vmatpush1.bf16.msra.mxu0 %v1239_v49  ;;  %v1349_v59 = vld [vmem:[#allocation2 + $0x4a0] sm:$0xff]  ;;  %v1351_v49 = vld [vmem:[#allocation2 + $0x4b0] sm:$0xff] }
 0x52a   :  { %1680 = vmatprep.subr.bf16.mxu1 %v1246_v50  ;;  %1762 = vmatprep.subr.bf16.mxu0 %v1248_v51  ;;  %v1358_v50 = vld [vmem:[#allocation2 + $0x4e8] sm:$0xff]  ;;  %v1357_v51 = vld [vmem:[#allocation2 + $0x4e0] sm:$0xff] }
 0x52d   :  { %1681 = vmatpush1.bf16.msra.mxu1 %v1245_v52  ;;  %1763 = vmatpush1.bf16.msra.mxu0 %v1247_v53  ;;  %v1359_v52 = vld [vmem:[#allocation2 + $0x4f0] sm:$0xff]  ;;  %v1366_v53 = vld [vmem:[#allocation2 + $0x528] sm:$0xff] }
 0x52e   :  { %1682 = vmatprep.subr.bf16.mxu1 %v1254_v54  ;;  %1764 = vmatprep.subr.bf16.mxu0 %v1256_v55  ;;  %v1368_v54 = vld [vmem:[#allocation2 + $0x538] sm:$0xff]  ;;  %v1367_v55 = vld [vmem:[#allocation2 + $0x530] sm:$0xff] }
 0x531   :  { %1683 = vmatpush1.bf16.msra.mxu1 %v1253_v60  ;;  %1765 = vmatpush1.bf16.msra.mxu0 %v1255_v56  ;;  %v1374_v60 = vld [vmem:[#allocation2 + $0x568] sm:$0xff]  ;;  %v1376_v56 = vld [vmem:[#allocation2 + $0x578] sm:$0xff] }
 0x532   :  { %1684 = vmatprep.subr.bf16.mxu1 %v1262_v61  ;;  %1766 = vmatprep.subr.bf16.mxu0 %v1264_v62  ;;  %v1373_v61 = vld [vmem:[#allocation2 + $0x560] sm:$0xff]  ;;  %v1375_v62 = vld [vmem:[#allocation2 + $0x570] sm:$0xff] }
 0x535   :  { %1685 = vmatpush1.bf16.msra.mxu1 %v1261_v63  ;;  %1767 = vmatpush1.bf16.msra.mxu0 %v1263_v0  ;;  %v1382_v63 = vld [vmem:[#allocation2 + $0x5a8] sm:$0xff]  ;;  %v1384_v0 = vld [vmem:[#allocation2 + $0x5b8] sm:$0xff] }
 0x536   :  { %1686 = vmatprep.subr.bf16.mxu1 %v1270_v1  ;;  %1768 = vmatprep.subr.bf16.mxu0 %v1272_v57  ;;  %v1381_v1 = vld [vmem:[#allocation2 + $0x5a0] sm:$0xff]  ;;  %v1383_v57 = vld [vmem:[#allocation2 + $0x5b0] sm:$0xff] }
 0x539   :  { %1687 = vmatpush1.bf16.msra.mxu1 %v1269_v2  ;;  %1769 = vmatpush1.bf16.msra.mxu0 %v1271_v6  ;;  %v1390_v2 = vld [vmem:[#allocation2 + $0x5e8] sm:$0xff]  ;;  %v1392_v6 = vld [vmem:[#allocation2 + $0x5f8] sm:$0xff] }
 0x53a   :  { %1688 = vmatprep.subr.bf16.mxu1 %v1278_v58  ;;  %1770 = vmatprep.subr.bf16.mxu0 %v1280_v10  ;;  %v1389_v58 = vld [vmem:[#allocation2 + $0x5e0] sm:$0xff]  ;;  %v1391_v10 = vld [vmem:[#allocation2 + $0x5f0] sm:$0xff] }
 0x53d   :  { %1689 = vmatpush1.bf16.msra.mxu1 %v1277_v13  ;;  %1771 = vmatpush1.bf16.msra.mxu0 %v1279_v14  ;;  %v1398_v13 = vld [vmem:[#allocation2 + $0x628] sm:$0xff]  ;;  %v1400_v14 = vld [vmem:[#allocation2 + $0x638] sm:$0xff] }
 0x53e   :  { %1690 = vmatprep.subr.bf16.mxu1 %v1286_v15  ;;  %1772 = vmatprep.subr.bf16.mxu0 %v1288_v16  ;;  %v1397_v15 = vld [vmem:[#allocation2 + $0x620] sm:$0xff]  ;;  %v1399_v16 = vld [vmem:[#allocation2 + $0x630] sm:$0xff] }
 0x541   :  { %1691 = vmatpush1.bf16.msra.mxu1 %v1285_v17  ;;  %1773 = vmatpush1.bf16.msra.mxu0 %v1287_v18  ;;  %v1406_v17 = vld [vmem:[#allocation2 + $0x668] sm:$0xff]  ;;  %v1408_v18 = vld [vmem:[#allocation2 + $0x678] sm:$0xff] }
 0x542   :  { %1692 = vmatprep.subr.bf16.mxu1 %v1294_v19  ;;  %1774 = vmatprep.subr.bf16.mxu0 %v1296_v20  ;;  %v1405_v19 = vld [vmem:[#allocation2 + $0x660] sm:$0xff]  ;;  %v1407_v20 = vld [vmem:[#allocation2 + $0x670] sm:$0xff] }
 0x545   :  { %1693 = vmatpush1.bf16.msra.mxu1 %v1293_v21  ;;  %1775 = vmatpush1.bf16.msra.mxu0 %v1295_v22  ;;  %v1414_v21 = vld [vmem:[#allocation2 + $0x6a8] sm:$0xff]  ;;  %v1416_v22 = vld [vmem:[#allocation2 + $0x6b8] sm:$0xff] }
 0x546   :  { %1694 = vmatprep.subr.bf16.mxu1 %v1302_v23  ;;  %1776 = vmatprep.subr.bf16.mxu0 %v1304_v25  ;;  %v1413_v23 = vld [vmem:[#allocation2 + $0x6a0] sm:$0xff]  ;;  %v1415_v25 = vld [vmem:[#allocation2 + $0x6b0] sm:$0xff] }
 0x549   :  { %1695 = vmatpush1.bf16.msra.mxu1 %v1301_v26  ;;  %1777 = vmatpush1.bf16.msra.mxu0 %v1303_v27  ;;  %v1422_v26 = vld [vmem:[#allocation2 + $0x6e8] sm:$0xff]  ;;  %v1424_v27 = vld [vmem:[#allocation2 + $0x6f8] sm:$0xff] }
 0x54a   :  { %1696 = vmatprep.subr.bf16.mxu1 %v1310_v28  ;;  %1778 = vmatprep.subr.bf16.mxu0 %v1312_v3  ;;  %v1421_v28 = vld [vmem:[#allocation2 + $0x6e0] sm:$0xff]  ;;  %v1423_v3 = vld [vmem:[#allocation2 + $0x6f0] sm:$0xff] }
 0x54d   :  { %1697 = vmatpush1.bf16.msra.mxu1 %v1309_v30  ;;  %1779 = vmatpush1.bf16.msra.mxu0 %v1311_v31  ;;  %v1430_v30 = vld [vmem:[#allocation2 + $0x728] sm:$0xff]  ;;  %v1432_v31 = vld [vmem:[#allocation2 + $0x738] sm:$0xff] }
 0x54e   :  { %1698 = vmatprep.subr.bf16.mxu1 %v1318_v32  ;;  %1780 = vmatprep.subr.bf16.mxu0 %v1320_v12  ;;  %v1429_v32 = vld [vmem:[#allocation2 + $0x720] sm:$0xff]  ;;  %v1431_v12 = vld [vmem:[#allocation2 + $0x730] sm:$0xff] }
 0x551   :  { %1699 = vmatpush1.bf16.msra.mxu1 %v1317_v34  ;;  %1781 = vmatpush1.bf16.msra.mxu0 %v1319_v35  ;;  %v1438_v34 = vld [vmem:[#allocation2 + $0x768] sm:$0xff]  ;;  %v1440_v35 = vld [vmem:[#allocation2 + $0x778] sm:$0xff] }
 0x552   :  { %1700 = vmatprep.subr.bf16.mxu1 %v1326_v36  ;;  %1782 = vmatprep.subr.bf16.mxu0 %v1328_v37  ;;  %v1437_v36 = vld [vmem:[#allocation2 + $0x760] sm:$0xff]  ;;  %v1439_v37 = vld [vmem:[#allocation2 + $0x770] sm:$0xff] }
 0x555   :  { %1701 = vmatpush1.bf16.msra.mxu1 %v1325_v38  ;;  %1783 = vmatpush1.bf16.msra.mxu0 %v1327_v39  ;;  %v1446_v38 = vld [vmem:[#allocation2 + $0x7a8] sm:$0xff]  ;;  %v1448_v39 = vld [vmem:[#allocation2 + $0x7b8] sm:$0xff] }
 0x556   :  { %1711 = vmatprep.subr.bf16.mxu1 %v1334_v8  ;;  %1793 = vmatprep.subr.bf16.mxu0 %v1336_v40  ;;  %v1445_v8 = vld [vmem:[#allocation2 + $0x7a0] sm:$0xff]  ;;  %v1447_v40 = vld [vmem:[#allocation2 + $0x7b0] sm:$0xff] }
 0x558   :  { %1703 = vmatmul.mubr.bf16.vlgmr.msra.gmra.mrb[16].mxu1 %v4138_v24  ;;  %1785 = vmatmul.mubr.bf16.vlgmr.msra.gmra.mrb[12].mxu0 %v4138_v24  ;;  %v1360_v24 = vld [vmem:[#allocation2 + $0x4f8] sm:$0xff] }
 0x559   :  { %1712 = vmatpush1.bf16.msra.mxu1 %v1333_v41  ;;  %1794 = vmatpush1.bf16.msra.mxu0 %v1335_v42  ;;  %v1454_v41 = vld [vmem:[#allocation2 + $0x7e8] sm:$0xff]  ;;  %v1456_v42 = vld [vmem:[#allocation2 + $0x7f8] sm:$0xff] }
 0x55a   :  { %1713 = vmatprep.subr.bf16.mxu1 %v1342_v43  ;;  %1795 = vmatprep.subr.bf16.mxu0 %v1344_v44  ;;  %v1453_v43 = vld [vmem:[#allocation2 + $0x7e0] sm:$0xff]  ;;  %v1455_v44 = vld [vmem:[#allocation2 + $0x7f0] sm:$0xff] }
 0x55b   :  { %1743 = vmatprep.mubr.bf16.mxu1 %v4142_v29  ;;  %1825 = vmatprep.mubr.bf16.mxu0 %v4142_v29  ;;  %v1365_v29 = vld [vmem:[#allocation2 + $0x520] sm:$0xff] }
 0x55d   :  { %1714 = vmatpush1.bf16.msra.mxu1 %v1341_v45  ;;  %1796 = vmatpush1.bf16.msra.mxu0 %v1343_v46  ;;  %v1458_v45 = vld [vmem:[#allocation13 + $0x42] ss:$8 sm:$0xf] }
 0x55e   :  { %1715 = vmatprep.subr.bf16.mxu1 %v1350_v47  ;;  %1797 = vmatprep.subr.bf16.mxu0 %v1352_v48  ;;  %v1459_v46 = vld [vmem:[#allocation13 + $0x42] ss:$8 sm:$0xf0] }
 0x55f   :  { %v4162_v47 = vor.u32 %v1459_v46, %v1458_v45 }
 0x561   :  { %1716 = vmatpush1.bf16.msra.mxu1 %v1349_v59  ;;  %1798 = vmatpush1.bf16.msra.mxu0 %v1351_v49  ;;  %v1469_v48 = vrot.slane %v4162_v47, %v4097_v5  ;;  %v1477_v59 = vrot.slane %v4162_v47, %v4109_v9  ;;  %v1473_v49 = vrot.slane %v4162_v47, %v4100_v7 }
 0x562   :  { %1717 = vmatprep.subr.bf16.mxu1 %v1358_v50  ;;  %1799 = vmatprep.subr.bf16.mxu0 %v1360_v24  ;;  %v1481_v50 = vrot.slane %v4162_v47, %v4112_v11 }
 0x565   :  { %1718 = vmatpush1.bf16.msra.mxu1 %v1357_v51  ;;  %1800 = vmatpush1.bf16.msra.mxu0 %v1359_v52 }
 0x566   :  { %1719 = vmatprep.subr.bf16.mxu1 %v1366_v53  ;;  %1801 = vmatprep.subr.bf16.mxu0 %v1368_v54 }
 0x569   :  { %1720 = vmatpush1.bf16.msra.mxu1 %v1365_v29  ;;  %1802 = vmatpush1.bf16.msra.mxu0 %v1367_v55 }
 0x56a   :  { %1721 = vmatprep.subr.bf16.mxu1 %v1374_v60  ;;  %1803 = vmatprep.subr.bf16.mxu0 %v1376_v56 }
 0x56d   :  { %1722 = vmatpush1.bf16.msra.mxu1 %v1373_v61  ;;  %1804 = vmatpush1.bf16.msra.mxu0 %v1375_v62 }
 0x56e   :  { %1723 = vmatprep.subr.bf16.mxu1 %v1382_v63  ;;  %1805 = vmatprep.subr.bf16.mxu0 %v1384_v0 }
 0x571   :  { %1724 = vmatpush1.bf16.msra.mxu1 %v1381_v1  ;;  %1806 = vmatpush1.bf16.msra.mxu0 %v1383_v57 }
 0x572   :  { %1725 = vmatprep.subr.bf16.mxu1 %v1390_v2  ;;  %1807 = vmatprep.subr.bf16.mxu0 %v1392_v6 }
 0x575   :  { %1726 = vmatpush1.bf16.msra.mxu1 %v1389_v58  ;;  %1808 = vmatpush1.bf16.msra.mxu0 %v1391_v10 }
 0x576   :  { %1727 = vmatprep.subr.bf16.mxu1 %v1398_v13  ;;  %1809 = vmatprep.subr.bf16.mxu0 %v1400_v14 }
 0x579   :  { %1728 = vmatpush1.bf16.msra.mxu1 %v1397_v15  ;;  %1810 = vmatpush1.bf16.msra.mxu0 %v1399_v16 }
 0x57a   :  { %1729 = vmatprep.subr.bf16.mxu1 %v1406_v17  ;;  %1811 = vmatprep.subr.bf16.mxu0 %v1408_v18 }
 0x57d   :  { %1730 = vmatpush1.bf16.msra.mxu1 %v1405_v19  ;;  %1812 = vmatpush1.bf16.msra.mxu0 %v1407_v20 }
 0x57e   :  { %1731 = vmatprep.subr.bf16.mxu1 %v1414_v21  ;;  %1813 = vmatprep.subr.bf16.mxu0 %v1416_v22 }
 0x581   :  { %1732 = vmatpush1.bf16.msra.mxu1 %v1413_v23  ;;  %1814 = vmatpush1.bf16.msra.mxu0 %v1415_v25 }
 0x582   :  { %1733 = vmatprep.subr.bf16.mxu1 %v1422_v26  ;;  %1815 = vmatprep.subr.bf16.mxu0 %v1424_v27 }
 0x585   :  { %1734 = vmatpush1.bf16.msra.mxu1 %v1421_v28  ;;  %1816 = vmatpush1.bf16.msra.mxu0 %v1423_v3 }
 0x586   :  { %1735 = vmatprep.subr.bf16.mxu1 %v1430_v30  ;;  %1817 = vmatprep.subr.bf16.mxu0 %v1432_v31 }
 0x589   :  { %1736 = vmatpush1.bf16.msra.mxu1 %v1429_v32  ;;  %1818 = vmatpush1.bf16.msra.mxu0 %v1431_v12 }
 0x58a   :  { %1737 = vmatprep.subr.bf16.mxu1 %v1438_v34  ;;  %1819 = vmatprep.subr.bf16.mxu0 %v1440_v35 }
 0x58d   :  { %1738 = vmatpush1.bf16.msra.mxu1 %v1437_v36  ;;  %1820 = vmatpush1.bf16.msra.mxu0 %v1439_v37 }
 0x58e   :  { %1739 = vmatprep.subr.bf16.mxu1 %v1446_v38  ;;  %1821 = vmatprep.subr.bf16.mxu0 %v1448_v39 }
 0x591   :  { %1740 = vmatpush1.bf16.msra.mxu1 %v1445_v8  ;;  %1822 = vmatpush1.bf16.msra.mxu0 %v1447_v40 }
 0x592   :  { %1741 = vmatprep.subr.bf16.mxu1 %v1454_v41  ;;  %1823 = vmatprep.subr.bf16.mxu0 %v1456_v42 }
 0x595   :  { %1742 = vmatpush1.bf16.msra.mxu1 %v1453_v43  ;;  %1824 = vmatpush1.bf16.msra.mxu0 %v1455_v44 }
 0x598   :  { %1744 = vmatmul.mubr.bf16.vlgmr.msra.gmra.mrb[16].mxu1 %v4150_v33  ;;  %1826 = vmatmul.mubr.bf16.vlgmr.msra.gmra.mrb[12].mxu0 %v4150_v33 }
 0x5eb   :  { %v1581_v24 = vpop.f32.mrb[12].mxu1  ;;  %v1663_v51 = vpop.f32.mrb[8].mxu0 }
 0x5ec   :  { %v3492_v52 = vadd.f32 %v1581_v24, %v1469_v48  ;;  %v3494_v33 = vadd.f32 %v1663_v51, %v1477_v59  ;;  %v1583_v53 = vpop.f32.mrb[13].mxu1  ;;  %v1665_v54 = vpop.f32.mrb[9].mxu0 }
 0x5ed   :  { %v3493_v29 = vadd.f32 %v1583_v53, %v1473_v49  ;;  %v3495_v55 = vadd.f32 %v1665_v54, %v1481_v50  ;;  %v1585_v60 = vpop.f32.mrb[14].mxu1  ;;  %v1667_v56 = vpop.f32.mrb[10].mxu0 }
 0x5ee   :  { %v1842_v61 = vrot.slane %v3492_v52, 4  ;;  %v1854_v62 = vrot.slane %v3494_v33, 4  ;;  %v1586_v63 = vpop.f32.mrb[15].mxu1  ;;  %v1668_v0 = vpop.f32.mrb[11].mxu0 }
 0x5ef   :  { %v1848_v1 = vrot.slane %v3493_v29, 4  ;;  %v1860_v57 = vrot.slane %v3495_v55, 4 }
 0x5f0   :  { %v1843_v2 = vadd.f32 %v3492_v52, %v1842_v61  ;;  %v1855_v6 = vadd.f32 %v3494_v33, %v1854_v62 }
 0x5f1   :  { %v1849_v58 = vadd.f32 %v3493_v29, %v1848_v1  ;;  %v1861_v10 = vadd.f32 %v3495_v55, %v1860_v57 }
 0x5f2   :  { %v1844_v13 = vrot.slane %v1843_v2, 2  ;;  %v1856_v14 = vrot.slane %v1855_v6, 2 }
 0x5f3   :  { %v1850_v15 = vrot.slane %v1849_v58, 2  ;;  %v1862_v16 = vrot.slane %v1861_v10, 2 }
 0x5f4   :  { %v1845_v17 = vadd.f32 %v1844_v13, %v1843_v2  ;;  %v1857_v18 = vadd.f32 %v1856_v14, %v1855_v6 }
 0x5f5   :  { %v1851_v19 = vadd.f32 %v1850_v15, %v1849_v58  ;;  %v1863_v20 = vadd.f32 %v1862_v16, %v1861_v10  ;;  %v1835_v15 = vld [vmem:[#allocation13 + $0x43] ss:$8 sm:$0xf] }
 0x5f6   :  { %v1846_v21 = vrot.slane %v1845_v17, 1  ;;  %v1858_v22 = vrot.slane %v1857_v18, 1  ;;  %v1836_v16 = vld [vmem:[#allocation13 + $0x43] ss:$8 sm:$0xf0] }
 0x5f7   :  { %v1852_v23 = vrot.slane %v1851_v19, 1  ;;  %v1864_v25 = vrot.slane %v1863_v20, 1 }
 0x5f8   :  { %v1847_v26 = vadd.f32 %v1846_v21, %v1845_v17  ;;  %v1859_v27 = vadd.f32 %v1858_v22, %v1857_v18  ;;  %v1839_v17 = vld [vmem:[#allocation13 + $0x44] ss:$8 sm:$0xf] }
 0x5f9   :  { %v1853_v28 = vadd.f32 %v1852_v23, %v1851_v19  ;;  %v1865_v3 = vadd.f32 %v1864_v25, %v1863_v20  ;;  %v1840_v18 = vld [vmem:[#allocation13 + $0x44] ss:$8 sm:$0xf0]  ;;  %v4176_v19 = vor.u32 %v1836_v16, %v1835_v15 }
 0x5fa   :  { %v1890_v30 = vmul.f32 0.125, %v1847_v26  ;;  %v1892_v31 = vmul.f32 0.125, %v1859_v27  ;;  %v4178_v20 = vor.u32 %v1840_v18, %v1839_v17 }
 0x5fb   :  { %v1891_v32 = vmul.f32 0.125, %v1853_v28  ;;  %v1893_v12 = vmul.f32 0.125, %v1865_v3  ;;  %v1998_v21 = vrot.slane %v4176_v19, %v4097_v5  ;;  %v2006_v23 = vrot.slane %v4176_v19, %v4109_v9 }
 0x5fc   :  { %v1898_v34 = vsub.f32 %v3492_v52, %v1890_v30  ;;  %v1900_v35 = vsub.f32 %v3494_v33, %v1892_v31  ;;  %v2047_v27 = vrot.slane %v4178_v20, %v4097_v5  ;;  %v2002_v28 = vrot.slane %v4176_v19, %v4100_v7 }
 0x5fd   :  { %v1899_v36 = vsub.f32 %v3493_v29, %v1891_v32  ;;  %v4172_v37 = vsub.f32 %v3495_v55, %v1893_v12  ;;  %v2055_v31 = vrot.slane %v4178_v20, %v4109_v9  ;;  %v2010_v32 = vrot.slane %v4176_v19, %v4112_v11 }
 0x5fe   :  { %v1906_v38 = vmul.f32 %v1898_v34, %v1898_v34  ;;  %v1908_v39 = vmul.f32 %v1900_v35, %v1900_v35 }
 0x5ff   :  { %v1907_v8 = vmul.f32 %v1899_v36, %v1899_v36  ;;  %v1909_v40 = vmul.f32 %v4172_v37, %v4172_v37 }
 0x600   :  { %v1914_v41 = vrot.slane %v1906_v38, 4  ;;  %v1926_v42 = vrot.slane %v1908_v39, 4 }
 0x601   :  { %v1920_v43 = vrot.slane %v1907_v8, 4  ;;  %v1932_v44 = vrot.slane %v1909_v40, 4 }
 0x602   :  { %v1915_v45 = vadd.f32 %v1914_v41, %v1906_v38  ;;  %v1927_v46 = vadd.f32 %v1926_v42, %v1908_v39  ;;  %v2059_v41 = vrot.slane %v4178_v20, %v4112_v11 }
 0x603   :  { %v1921_v48 = vadd.f32 %v1920_v43, %v1907_v8  ;;  %v1933_v59 = vadd.f32 %v1932_v44, %v1909_v40 }
 0x604   :  { %v1916_v49 = vrot.slane %v1915_v45, 2  ;;  %v1928_v50 = vrot.slane %v1927_v46, 2 }
 0x605   :  { %v1922_v24 = vrot.slane %v1921_v48, 2  ;;  %v1934_v51 = vrot.slane %v1933_v59, 2 }
 0x606   :  { %v1917_v52 = vadd.f32 %v1916_v49, %v1915_v45  ;;  %v1929_v33 = vadd.f32 %v1928_v50, %v1927_v46 }
 0x607   :  { %v1923_v53 = vadd.f32 %v1922_v24, %v1921_v48  ;;  %v1935_v54 = vadd.f32 %v1934_v51, %v1933_v59 }
 0x608   :  { %v1918_v29 = vrot.slane %v1917_v52, 1  ;;  %v1930_v55 = vrot.slane %v1929_v33, 1 }
 0x609   :  { %v1924_v60 = vrot.slane %v1923_v53, 1  ;;  %v1936_v56 = vrot.slane %v1935_v54, 1 }
 0x60a   :  { %v1919_v61 = vadd.f32 %v1918_v29, %v1917_v52  ;;  %v1931_v62 = vadd.f32 %v1930_v55, %v1929_v33  ;;  %v4206_v52 = vsub.s32 4, %v4094_v4  ;;  %v4209_v33 = vsub.s32 6, %v4094_v4 }
 0x60b   :  { %v1925_v63 = vadd.f32 %v1924_v60, %v1923_v53  ;;  %v1937_v0 = vadd.f32 %v1936_v56, %v1935_v54  ;;  %v4212_v53 = vsub.s32 5, %v4094_v4  ;;  %v4215_v54 = vsub.s32 7, %v4094_v4 }
 0x60c   :  { %v1962_v1 = vmul.f32 0.125, %v1919_v61  ;;  %v1964_v57 = vmul.f32 0.125, %v1931_v62  ;;  %v1485_v29 = vrot.slane %v4162_v47, %v4206_v52  ;;  %v1493_v55 = vrot.slane %v4162_v47, %v4209_v33 }
 0x60d   :  { %v1963_v2 = vmul.f32 0.125, %v1925_v63  ;;  %v1965_v6 = vmul.f32 0.125, %v1937_v0  ;;  %v1489_v60 = vrot.slane %v4162_v47, %v4212_v53  ;;  %v1497_v56 = vrot.slane %v4162_v47, %v4215_v54 }
 0x60e   :  { %v1970_v58 = vadd.f32 0.8, %v1962_v1  ;;  %v1972_v10 = vadd.f32 0.8, %v1964_v57 }
 0x60f   :  { %v1971_v13 = vadd.f32 0.8, %v1963_v2  ;;  %v1973_v14 = vadd.f32 0.8, %v1965_v6 }
 0x610   :  { %3736 = vrsqrt.f32 %v1970_v58 }
 0x611   :  { %3738 = vrsqrt.f32 %v1972_v10 }
 0x612   :  { %3740 = vrsqrt.f32 %v1971_v13 }
 0x613   :  { %3742 = vrsqrt.f32 %v1973_v14 }
 0x61a   :  { %v3737_v22 = vpop.eup %3736 }
 0x61b   :  { %v3739_v25 = vpop.eup %3738  ;;  %v1986_v26 = vmul.f32 %v3737_v22, %v1898_v34  ;;  %v2051_v34 = vrot.slane %v4178_v20, %v4100_v7 }
 0x61c   :  { %v3741_v3 = vpop.eup %3740  ;;  %v1988_v30 = vmul.f32 %v3739_v25, %v1900_v35 }
 0x61d   :  { %v3743_v12 = vpop.eup %3742  ;;  %v2035_v38 = vmul.f32 %v1998_v21, %v1986_v26  ;;  %v1987_v39 = vmul.f32 %v3741_v3, %v1899_v36 }
 0x61e   :  { %v2037_v8 = vmul.f32 %v2006_v23, %v1988_v30  ;;  %v1989_v40 = vmul.f32 %v3743_v12, %v4172_v37 }
 0x61f   :  { %v2084_v42 = vadd.f32 %v2047_v27, %v2035_v38  ;;  %v2036_v35 = vmul.f32 %v2002_v28, %v1987_v39 }
 0x620   :  { %v2086_v43 = vadd.f32 %v2055_v31, %v2037_v8  ;;  %v2038_v44 = vmul.f32 %v2010_v32, %v1989_v40 }
 0x621   :  { %v2092_v45 = vmul.f32 0.2, %v2084_v42  ;;  %v2085_v46 = vadd.f32 %v2051_v34, %v2036_v35 }
 0x622   :  { %v2094_v48 = vmul.f32 0.2, %v2086_v43  ;;  %v2087_v59 = vadd.f32 %v2059_v41, %v2038_v44 }
 0x623   :  { %v4197_v49 = vmax.f32 %v2084_v42, %v2092_v45  ;;  %v2093_v36 = vmul.f32 0.2, %v2085_v46 }
 0x624   :  { %v4199_v50 = vmax.f32 %v2086_v43, %v2094_v48  ;;  %v2095_v24 = vmul.f32 0.2, %v2087_v59 }
 0x625   :  { %v4201_v51 = vmax.f32 %v2085_v46, %v2093_v36 }
 0x626   :  { %v4203_v37 = vmax.f32 %v2087_v59, %v2095_v24 }
 0x66b   :  { %v1745_v61 = vpop.f32.mrb[16].mxu1  ;;  %v1827_v62 = vpop.f32.mrb[12].mxu0 }
 0x66c   :  { %v3496_v63 = vadd.f32 %v1745_v61, %v1485_v29  ;;  %v3498_v0 = vadd.f32 %v1827_v62, %v1493_v55  ;;  %v1747_v1 = vpop.f32.mrb[17].mxu1  ;;  %v1829_v57 = vpop.f32.mrb[13].mxu0 }
 0x66d   :  { %v3497_v4 = vadd.f32 %v1747_v1, %v1489_v60  ;;  %v3499_v2 = vadd.f32 %v1829_v57, %v1497_v56  ;;  %v1749_v6 = vpop.f32.mrb[18].mxu1  ;;  %v1831_v58 = vpop.f32.mrb[14].mxu0 }
 0x66e   :  { %v1866_v10 = vrot.slane %v3496_v63, 4  ;;  %v1878_v13 = vrot.slane %v3498_v0, 4  ;;  %v1750_v14 = vpop.f32.mrb[19].mxu1  ;;  %v1832_v15 = vpop.f32.mrb[15].mxu0 }
 0x66f   :  { %v1872_v16 = vrot.slane %v3497_v4, 4  ;;  %v1884_v17 = vrot.slane %v3499_v2, 4 }
 0x670   :  { %v1867_v18 = vadd.f32 %v3496_v63, %v1866_v10  ;;  %v1879_v21 = vadd.f32 %v3498_v0, %v1878_v13 }
 0x671   :  { %v1873_v22 = vadd.f32 %v3497_v4, %v1872_v16  ;;  %v1885_v47 = vadd.f32 %v3499_v2, %v1884_v17 }
 0x672   :  { %v1868_v23 = vrot.slane %v1867_v18, 2  ;;  %v1880_v25 = vrot.slane %v1879_v21, 2 }
 0x673   :  { %v1874_v26 = vrot.slane %v1873_v22, 2  ;;  %v1886_v27 = vrot.slane %v1885_v47, 2 }
 0x674   :  { %v1869_v28 = vadd.f32 %v1868_v23, %v1867_v18  ;;  %v1881_v3 = vadd.f32 %v1880_v25, %v1879_v21 }
 0x675   :  { %v1875_v30 = vadd.f32 %v1874_v26, %v1873_v22  ;;  %v1887_v31 = vadd.f32 %v1886_v27, %v1885_v47 }
 0x676   :  { %v1870_v32 = vrot.slane %v1869_v28, 1  ;;  %v1882_v12 = vrot.slane %v1881_v3, 1 }
 0x677   :  { %v1876_v38 = vrot.slane %v1875_v30, 1  ;;  %v1888_v39 = vrot.slane %v1887_v31, 1 }
 0x678   :  { %v1871_v34 = vadd.f32 %v1870_v32, %v1869_v28  ;;  %v1883_v8 = vadd.f32 %v1882_v12, %v1881_v3 }
 0x679   :  { %v1877_v40 = vadd.f32 %v1876_v38, %v1875_v30  ;;  %v1889_v41 = vadd.f32 %v1888_v39, %v1887_v31  ;;  %v2014_v38 = vrot.slane %v4176_v19, %v4206_v52 }
 0x67a   :  { %v1894_v42 = vmul.f32 0.125, %v1871_v34  ;;  %v1896_v35 = vmul.f32 0.125, %v1883_v8  ;;  %v2022_v34 = vrot.slane %v4176_v19, %v4209_v33 }
 0x67b   :  { %v1895_v43 = vmul.f32 0.125, %v1877_v40  ;;  %v1897_v44 = vmul.f32 0.125, %v1889_v41  ;;  %v2063_v41 = vrot.slane %v4178_v20, %v4206_v52 }
 0x67c   :  { %v1902_v45 = vsub.f32 %v3496_v63, %v1894_v42  ;;  %v1904_v46 = vsub.f32 %v3498_v0, %v1896_v35  ;;  %v2018_v42 = vrot.slane %v4176_v19, %v4212_v53 }
 0x67d   :  { %v1903_v48 = vsub.f32 %v3497_v4, %v1895_v43  ;;  %v1905_v59 = vsub.f32 %v3499_v2, %v1897_v44  ;;  %v2071_v44 = vrot.slane %v4178_v20, %v4209_v33 }
 0x67e   :  { %v1910_v36 = vmul.f32 %v1902_v45, %v1902_v45  ;;  %v1912_v24 = vmul.f32 %v1904_v46, %v1904_v46 }
 0x67f   :  { %v1911_v29 = vmul.f32 %v1903_v48, %v1903_v48  ;;  %v1913_v55 = vmul.f32 %v1905_v59, %v1905_v59 }
 0x680   :  { %v1938_v60 = vrot.slane %v1910_v36, 4  ;;  %v1950_v56 = vrot.slane %v1912_v24, 4 }
 0x681   :  { %v1944_v61 = vrot.slane %v1911_v29, 4  ;;  %v1956_v62 = vrot.slane %v1913_v55, 4 }
 0x682   :  { %v1939_v1 = vadd.f32 %v1938_v60, %v1910_v36  ;;  %v1951_v57 = vadd.f32 %v1950_v56, %v1912_v24  ;;  %v2026_v36 = vrot.slane %v4176_v19, %v4215_v54 }
 0x683   :  { %v1945_v6 = vadd.f32 %v1944_v61, %v1911_v29  ;;  %v1957_v58 = vadd.f32 %v1956_v62, %v1913_v55  ;;  %v2075_v61 = vrot.slane %v4178_v20, %v4215_v54 }
 0x684   :  { %v1940_v10 = vrot.slane %v1939_v1, 2  ;;  %v1952_v13 = vrot.slane %v1951_v57, 2 }
 0x685   :  { %v1946_v14 = vrot.slane %v1945_v6, 2  ;;  %v1958_v15 = vrot.slane %v1957_v58, 2 }
 0x686   :  { %v1941_v63 = vadd.f32 %v1940_v10, %v1939_v1  ;;  %v1953_v0 = vadd.f32 %v1952_v13, %v1951_v57 }
 0x687   :  { %v1947_v4 = vadd.f32 %v1946_v14, %v1945_v6  ;;  %v1959_v2 = vadd.f32 %v1958_v15, %v1957_v58 }
 0x688   :  { %v1942_v16 = vrot.slane %v1941_v63, 1  ;;  %v1954_v17 = vrot.slane %v1953_v0, 1 }
 0x689   :  { %v1948_v18 = vrot.slane %v1947_v4, 1  ;;  %v1960_v21 = vrot.slane %v1959_v2, 1 }
 0x68a   :  { %v1943_v22 = vadd.f32 %v1942_v16, %v1941_v63  ;;  %v1955_v47 = vadd.f32 %v1954_v17, %v1953_v0 }
 0x68b   :  { %v1949_v23 = vadd.f32 %v1948_v18, %v1947_v4  ;;  %v1961_v25 = vadd.f32 %v1960_v21, %v1959_v2 }
 0x68c   :  { %v1966_v26 = vmul.f32 0.125, %v1943_v22  ;;  %v1968_v27 = vmul.f32 0.125, %v1955_v47 }
 0x68d   :  { %v1967_v28 = vmul.f32 0.125, %v1949_v23  ;;  %v1969_v3 = vmul.f32 0.125, %v1961_v25 }
 0x68e   :  { %v1974_v30 = vadd.f32 0.8, %v1966_v26  ;;  %v1976_v31 = vadd.f32 0.8, %v1968_v27 }
 0x68f   :  { %v1975_v32 = vadd.f32 0.8, %v1967_v28  ;;  %v1977_v12 = vadd.f32 0.8, %v1969_v3 }
 0x690   :  { %3744 = vrsqrt.f32 %v1974_v30 }
 0x691   :  { %3746 = vrsqrt.f32 %v1976_v31 }
 0x692   :  { %3748 = vrsqrt.f32 %v1975_v32 }
 0x693   :  { %3750 = vrsqrt.f32 %v1977_v12 }
 0x69a   :  { %v3745_v39 = vpop.eup %3744 }
 0x69b   :  { %v3747_v8 = vpop.eup %3746  ;;  %v1990_v40 = vmul.f32 %v3745_v39, %v1902_v45  ;;  %v2067_v45 = vrot.slane %v4178_v20, %v4212_v53 }
 0x69c   :  { %v3749_v35 = vpop.eup %3748  ;;  %v1992_v43 = vmul.f32 %v3747_v8, %v1904_v46 }
 0x69d   :  { %v3751_v24 = vpop.eup %3750  ;;  %v2039_v29 = vmul.f32 %v2014_v38, %v1990_v40  ;;  %v1991_v55 = vmul.f32 %v3749_v35, %v1903_v48 }
 0x69e   :  { %v2041_v60 = vmul.f32 %v2022_v34, %v1992_v43  ;;  %v1993_v56 = vmul.f32 %v3751_v24, %v1905_v59 }
 0x69f   :  { %v2088_v62 = vadd.f32 %v2063_v41, %v2039_v29  ;;  %v2040_v1 = vmul.f32 %v2018_v42, %v1991_v55 }
 0x6a0   :  { %v2090_v46 = vadd.f32 %v2071_v44, %v2041_v60  ;;  %v2042_v57 = vmul.f32 %v2026_v36, %v1993_v56 }
 0x6a1   :  { %v2096_v6 = vmul.f32 0.2, %v2088_v62  ;;  %v2089_v58 = vadd.f32 %v2067_v45, %v2040_v1 }
 0x6a2   :  { %v2098_v10 = vmul.f32 0.2, %v2090_v46  ;;  %v2091_v13 = vadd.f32 %v2075_v61, %v2042_v57 }
 0x6a3   :  { %v4241_v19 = vmax.f32 %v2088_v62, %v2096_v6  ;;  %v2097_v14 = vmul.f32 0.2, %v2089_v58 }
 0x6a4   :  { %v4243_v48 = vmax.f32 %v2090_v46, %v2098_v10  ;;  %v2099_v15 = vmul.f32 0.2, %v2091_v13 }
 0x6a5   :  { %v4245_v63 = vmax.f32 %v2089_v58, %v2097_v14 }
 0x6a6   :  { %v4247_v59 = vmax.f32 %v2091_v13, %v2099_v15 }
 0x6a7   :  { %3910 = dma.done.wait [#allocation4 + $0x1], 65536 }
 0x6a8   :  { %3911 = vsyncadd [#allocation4 + $0x1], 4294901760  ;;  %v4251_v20 = vpack.c.bf16 %v4201_v51, %v4201_v51  ;;  %v2113_v0 = vld [vmem:[#allocation3 + $0x8] sm:$0xff]  ;;  %v2115_v4 = vld [vmem:[#allocation3 + $0x18] sm:$0xff] }
 0x6a9   :  { %v2112_v2 = vld [vmem:[#allocation3] sm:$0xff]  ;;  %2677 = vmatprep.subr.bf16.mxu1 %v2113_v0  ;;  %2841 = vmatprep.subr.bf16.mxu0 %v2115_v4  ;;  %v2114_v16 = vld [vmem:[#allocation3 + $0x10] sm:$0xff]  ;;  %v2121_v17 = vld [vmem:[#allocation3 + $0x48] sm:$0xff] }
 0x6aa   :  { %2709 = vmatprep.mubr.bf16.mxu1 %v4251_v20  ;;  %2873 = vmatprep.mubr.bf16.mxu0 %v4251_v20  ;;  %v2123_v18 = vld [vmem:[#allocation3 + $0x58] sm:$0xff]  ;;  %v2120_v21 = vld [vmem:[#allocation3 + $0x40] sm:$0xff]  ;;  %v2122_v22 = vld [vmem:[#allocation3 + $0x50] sm:$0xff] }
 0x6ab   :  { %2678 = vmatpush1.bf16.msra.mxu1 %v2112_v2  ;;  %2842 = vmatpush1.bf16.msra.mxu0 %v2114_v16  ;;  %v2129_v51 = vld [vmem:[#allocation3 + $0x88] sm:$0xff]  ;;  %v2131_v47 = vld [vmem:[#allocation3 + $0x98] sm:$0xff]  ;;  %v2128_v23 = vld [vmem:[#allocation3 + $0x80] sm:$0xff] }
 0x6ac   :  { %2679 = vmatprep.subr.bf16.mxu1 %v2121_v17  ;;  %2843 = vmatprep.subr.bf16.mxu0 %v2123_v18  ;;  %v2130_v25 = vld [vmem:[#allocation3 + $0x90] sm:$0xff]  ;;  %v2137_v26 = vld [vmem:[#allocation3 + $0xc8] sm:$0xff]  ;;  %v2139_v27 = vld [vmem:[#allocation3 + $0xd8] sm:$0xff] }
 0x6ad   :  { %v2136_v28 = vld [vmem:[#allocation3 + $0xc0] sm:$0xff]  ;;  %v2138_v3 = vld [vmem:[#allocation3 + $0xd0] sm:$0xff]  ;;  %v2145_v30 = vld [vmem:[#allocation3 + $0x108] sm:$0xff] }
 0x6ae   :  { %v2147_v31 = vld [vmem:[#allocation3 + $0x118] sm:$0xff]  ;;  %v2144_v32 = vld [vmem:[#allocation3 + $0x100] sm:$0xff]  ;;  %v2146_v12 = vld [vmem:[#allocation3 + $0x110] sm:$0xff] }
 0x6af   :  { %2680 = vmatpush1.bf16.msra.mxu1 %v2120_v21  ;;  %2844 = vmatpush1.bf16.msra.mxu0 %v2122_v22  ;;  %v2153_v38 = vld [vmem:[#allocation3 + $0x148] sm:$0xff]  ;;  %v2155_v39 = vld [vmem:[#allocation3 + $0x158] sm:$0xff]  ;;  %v2152_v34 = vld [vmem:[#allocation3 + $0x140] sm:$0xff] }
 0x6b0   :  { %2681 = vmatprep.subr.bf16.mxu1 %v2129_v51  ;;  %2845 = vmatprep.subr.bf16.mxu0 %v2131_v47  ;;  %v2154_v8 = vld [vmem:[#allocation3 + $0x150] sm:$0xff]  ;;  %v2161_v40 = vld [vmem:[#allocation3 + $0x188] sm:$0xff]  ;;  %v2163_v41 = vld [vmem:[#allocation3 + $0x198] sm:$0xff] }
 0x6b1   :  { %v2160_v42 = vld [vmem:[#allocation3 + $0x180] sm:$0xff]  ;;  %v2162_v35 = vld [vmem:[#allocation3 + $0x190] sm:$0xff]  ;;  %v2169_v43 = vld [vmem:[#allocation3 + $0x1c8] sm:$0xff] }
 0x6b2   :  { %v2171_v44 = vld [vmem:[#allocation3 + $0x1d8] sm:$0xff]  ;;  %v2168_v36 = vld [vmem:[#allocation3 + $0x1c0] sm:$0xff]  ;;  %v2170_v24 = vld [vmem:[#allocation3 + $0x1d0] sm:$0xff] }
 0x6b3   :  { %2682 = vmatpush1.bf16.msra.mxu1 %v2128_v23  ;;  %2846 = vmatpush1.bf16.msra.mxu0 %v2130_v25  ;;  %v2177_v29 = vld [vmem:[#allocation3 + $0x208] sm:$0xff]  ;;  %v2179_v55 = vld [vmem:[#allocation3 + $0x218] sm:$0xff]  ;;  %v2176_v45 = vld [vmem:[#allocation3 + $0x200] sm:$0xff] }
 0x6b4   :  { %2683 = vmatprep.subr.bf16.mxu1 %v2137_v26  ;;  %2847 = vmatprep.subr.bf16.mxu0 %v2139_v27  ;;  %v2178_v60 = vld [vmem:[#allocation3 + $0x210] sm:$0xff]  ;;  %v2185_v56 = vld [vmem:[#allocation3 + $0x248] sm:$0xff]  ;;  %v2187_v61 = vld [vmem:[#allocation3 + $0x258] sm:$0xff] }
 0x6b5   :  { %v2184_v62 = vld [vmem:[#allocation3 + $0x240] sm:$0xff]  ;;  %v2186_v1 = vld [vmem:[#allocation3 + $0x250] sm:$0xff]  ;;  %v2193_v46 = vld [vmem:[#allocation3 + $0x288] sm:$0xff] }
 0x6b6   :  { %v2195_v57 = vld [vmem:[#allocation3 + $0x298] sm:$0xff]  ;;  %v2192_v6 = vld [vmem:[#allocation3 + $0x280] sm:$0xff]  ;;  %v2194_v58 = vld [vmem:[#allocation3 + $0x290] sm:$0xff] }
 0x6b7   :  { %2684 = vmatpush1.bf16.msra.mxu1 %v2136_v28  ;;  %2848 = vmatpush1.bf16.msra.mxu0 %v2138_v3  ;;  %v2201_v10 = vld [vmem:[#allocation3 + $0x2c8] sm:$0xff]  ;;  %v2203_v13 = vld [vmem:[#allocation3 + $0x2d8] sm:$0xff]  ;;  %v2200_v14 = vld [vmem:[#allocation3 + $0x2c0] sm:$0xff] }
 0x6b8   :  { %2685 = vmatprep.subr.bf16.mxu1 %v2145_v30  ;;  %2849 = vmatprep.subr.bf16.mxu0 %v2147_v31  ;;  %v2202_v15 = vld [vmem:[#allocation3 + $0x2d0] sm:$0xff]  ;;  %v2209_v0 = vld [vmem:[#allocation3 + $0x308] sm:$0xff]  ;;  %v2211_v4 = vld [vmem:[#allocation3 + $0x318] sm:$0xff] }
 0x6b9   :  { %v2208_v2 = vld [vmem:[#allocation3 + $0x300] sm:$0xff]  ;;  %v2210_v16 = vld [vmem:[#allocation3 + $0x310] sm:$0xff]  ;;  %v2217_v17 = vld [vmem:[#allocation3 + $0x348] sm:$0xff] }
 0x6ba   :  { %v2219_v18 = vld [vmem:[#allocation3 + $0x358] sm:$0xff]  ;;  %v2216_v21 = vld [vmem:[#allocation3 + $0x340] sm:$0xff]  ;;  %v2218_v22 = vld [vmem:[#allocation3 + $0x350] sm:$0xff] }
 0x6bb   :  { %2686 = vmatpush1.bf16.msra.mxu1 %v2144_v32  ;;  %2850 = vmatpush1.bf16.msra.mxu0 %v2146_v12  ;;  %v2225_v51 = vld [vmem:[#allocation3 + $0x388] sm:$0xff]  ;;  %v2227_v47 = vld [vmem:[#allocation3 + $0x398] sm:$0xff]  ;;  %v2224_v23 = vld [vmem:[#allocation3 + $0x380] sm:$0xff]  ;;  %v4257_v32 = vpack.c.bf16 %v4197_v49, %v4197_v49 }
 0x6bc   :  { %2687 = vmatprep.subr.bf16.mxu1 %v2153_v38  ;;  %2851 = vmatprep.subr.bf16.mxu0 %v2155_v39  ;;  %v2226_v25 = vld [vmem:[#allocation3 + $0x390] sm:$0xff]  ;;  %v2233_v26 = vld [vmem:[#allocation3 + $0x3c8] sm:$0xff]  ;;  %v2235_v27 = vld [vmem:[#allocation3 + $0x3d8] sm:$0xff] }
 0x6bd   :  { %v2232_v28 = vld [vmem:[#allocation3 + $0x3c0] sm:$0xff]  ;;  %v2234_v3 = vld [vmem:[#allocation3 + $0x3d0] sm:$0xff]  ;;  %v2241_v30 = vld [vmem:[#allocation3 + $0x408] sm:$0xff] }
 0x6be   :  { %v2243_v31 = vld [vmem:[#allocation3 + $0x418] sm:$0xff]  ;;  %v2240_v12 = vld [vmem:[#allocation3 + $0x400] sm:$0xff]  ;;  %v2242_v38 = vld [vmem:[#allocation3 + $0x410] sm:$0xff] }
 0x6bf   :  { %2688 = vmatpush1.bf16.msra.mxu1 %v2152_v34  ;;  %2852 = vmatpush1.bf16.msra.mxu0 %v2154_v8  ;;  %v2249_v39 = vld [vmem:[#allocation3 + $0x448] sm:$0xff]  ;;  %v2251_v34 = vld [vmem:[#allocation3 + $0x458] sm:$0xff]  ;;  %v4261_v8 = vpack.c.bf16 %v4203_v37, %v4203_v37  ;;  %v2248_v49 = vld [vmem:[#allocation3 + $0x440] sm:$0xff] }
 0x6c0   :  { %2689 = vmatprep.subr.bf16.mxu1 %v2161_v40  ;;  %2853 = vmatprep.subr.bf16.mxu0 %v2163_v41  ;;  %v2250_v40 = vld [vmem:[#allocation3 + $0x450] sm:$0xff]  ;;  %v2257_v41 = vld [vmem:[#allocation3 + $0x488] sm:$0xff]  ;;  %v2256_v37 = vld [vmem:[#allocation3 + $0x480] sm:$0xff] }
 0x6c3   :  { %2690 = vmatpush1.bf16.msra.mxu1 %v2160_v42  ;;  %2854 = vmatpush1.bf16.msra.mxu0 %v2162_v35  ;;  %v2259_v42 = vld [vmem:[#allocation3 + $0x498] sm:$0xff]  ;;  %v2258_v35 = vld [vmem:[#allocation3 + $0x490] sm:$0xff] }
 0x6c4   :  { %2691 = vmatprep.subr.bf16.mxu1 %v2169_v43  ;;  %2855 = vmatprep.subr.bf16.mxu0 %v2171_v44  ;;  %v2265_v43 = vld [vmem:[#allocation3 + $0x4c8] sm:$0xff]  ;;  %v2267_v44 = vld [vmem:[#allocation3 + $0x4d8] sm:$0xff] }
 0x6c7   :  { %2692 = vmatpush1.bf16.msra.mxu1 %v2168_v36  ;;  %2856 = vmatpush1.bf16.msra.mxu0 %v2170_v24  ;;  %v2264_v36 = vld [vmem:[#allocation3 + $0x4c0] sm:$0xff]  ;;  %v2266_v24 = vld [vmem:[#allocation3 + $0x4d0] sm:$0xff] }
 0x6c8   :  { %2693 = vmatprep.subr.bf16.mxu1 %v2177_v29  ;;  %2857 = vmatprep.subr.bf16.mxu0 %v2179_v55  ;;  %v2273_v29 = vld [vmem:[#allocation3 + $0x508] sm:$0xff]  ;;  %v2275_v55 = vld [vmem:[#allocation3 + $0x518] sm:$0xff] }
 0x6cb   :  { %2694 = vmatpush1.bf16.msra.mxu1 %v2176_v45  ;;  %2858 = vmatpush1.bf16.msra.mxu0 %v2178_v60  ;;  %v2272_v45 = vld [vmem:[#allocation3 + $0x500] sm:$0xff]  ;;  %v2274_v60 = vld [vmem:[#allocation3 + $0x510] sm:$0xff] }
 0x6cc   :  { %2695 = vmatprep.subr.bf16.mxu1 %v2185_v56  ;;  %2859 = vmatprep.subr.bf16.mxu0 %v2187_v61  ;;  %v2281_v56 = vld [vmem:[#allocation3 + $0x548] sm:$0xff]  ;;  %v2283_v61 = vld [vmem:[#allocation3 + $0x558] sm:$0xff] }
 0x6cf   :  { %2696 = vmatpush1.bf16.msra.mxu1 %v2184_v62  ;;  %2860 = vmatpush1.bf16.msra.mxu0 %v2186_v1  ;;  %v2280_v62 = vld [vmem:[#allocation3 + $0x540] sm:$0xff]  ;;  %v2282_v1 = vld [vmem:[#allocation3 + $0x550] sm:$0xff] }
 0x6d0   :  { %2697 = vmatprep.subr.bf16.mxu1 %v2193_v46  ;;  %2861 = vmatprep.subr.bf16.mxu0 %v2195_v57  ;;  %v2289_v46 = vld [vmem:[#allocation3 + $0x588] sm:$0xff]  ;;  %v2291_v57 = vld [vmem:[#allocation3 + $0x598] sm:$0xff] }
 0x6d3   :  { %2698 = vmatpush1.bf16.msra.mxu1 %v2192_v6  ;;  %2862 = vmatpush1.bf16.msra.mxu0 %v2194_v58  ;;  %v2288_v6 = vld [vmem:[#allocation3 + $0x580] sm:$0xff]  ;;  %v2290_v58 = vld [vmem:[#allocation3 + $0x590] sm:$0xff] }
 0x6d4   :  { %2699 = vmatprep.subr.bf16.mxu1 %v2201_v10  ;;  %2863 = vmatprep.subr.bf16.mxu0 %v2203_v13  ;;  %v2297_v10 = vld [vmem:[#allocation3 + $0x5c8] sm:$0xff]  ;;  %v2299_v13 = vld [vmem:[#allocation3 + $0x5d8] sm:$0xff] }
 0x6d7   :  { %2700 = vmatpush1.bf16.msra.mxu1 %v2200_v14  ;;  %2864 = vmatpush1.bf16.msra.mxu0 %v2202_v15  ;;  %v2296_v14 = vld [vmem:[#allocation3 + $0x5c0] sm:$0xff]  ;;  %v2298_v15 = vld [vmem:[#allocation3 + $0x5d0] sm:$0xff] }
 0x6d8   :  { %2701 = vmatprep.subr.bf16.mxu1 %v2209_v0  ;;  %2865 = vmatprep.subr.bf16.mxu0 %v2211_v4  ;;  %v2305_v0 = vld [vmem:[#allocation3 + $0x608] sm:$0xff]  ;;  %v2307_v4 = vld [vmem:[#allocation3 + $0x618] sm:$0xff] }
 0x6db   :  { %2702 = vmatpush1.bf16.msra.mxu1 %v2208_v2  ;;  %2866 = vmatpush1.bf16.msra.mxu0 %v2210_v16  ;;  %v2304_v2 = vld [vmem:[#allocation3 + $0x600] sm:$0xff]  ;;  %v2306_v16 = vld [vmem:[#allocation3 + $0x610] sm:$0xff] }
 0x6dc   :  { %2703 = vmatprep.subr.bf16.mxu1 %v2217_v17  ;;  %2867 = vmatprep.subr.bf16.mxu0 %v2219_v18  ;;  %v2313_v17 = vld [vmem:[#allocation3 + $0x648] sm:$0xff]  ;;  %v2315_v18 = vld [vmem:[#allocation3 + $0x658] sm:$0xff] }
 0x6df   :  { %2704 = vmatpush1.bf16.msra.mxu1 %v2216_v21  ;;  %2868 = vmatpush1.bf16.msra.mxu0 %v2218_v22  ;;  %v2312_v21 = vld [vmem:[#allocation3 + $0x640] sm:$0xff]  ;;  %v2314_v22 = vld [vmem:[#allocation3 + $0x650] sm:$0xff] }
 0x6e0   :  { %2705 = vmatprep.subr.bf16.mxu1 %v2225_v51  ;;  %2869 = vmatprep.subr.bf16.mxu0 %v2227_v47  ;;  %v2321_v51 = vld [vmem:[#allocation3 + $0x688] sm:$0xff]  ;;  %v2323_v47 = vld [vmem:[#allocation3 + $0x698] sm:$0xff] }
 0x6e3   :  { %2706 = vmatpush1.bf16.msra.mxu1 %v2224_v23  ;;  %2870 = vmatpush1.bf16.msra.mxu0 %v2226_v25  ;;  %v2320_v23 = vld [vmem:[#allocation3 + $0x680] sm:$0xff]  ;;  %v2322_v25 = vld [vmem:[#allocation3 + $0x690] sm:$0xff] }
 0x6e4   :  { %2707 = vmatprep.subr.bf16.mxu1 %v2233_v26  ;;  %2871 = vmatprep.subr.bf16.mxu0 %v2235_v27  ;;  %v2329_v26 = vld [vmem:[#allocation3 + $0x6c8] sm:$0xff]  ;;  %v2331_v27 = vld [vmem:[#allocation3 + $0x6d8] sm:$0xff] }
 0x6e7   :  { %2708 = vmatpush1.bf16.msra.mxu1 %v2232_v28  ;;  %2872 = vmatpush1.bf16.msra.mxu0 %v2234_v3  ;;  %v2328_v28 = vld [vmem:[#allocation3 + $0x6c0] sm:$0xff]  ;;  %v2330_v3 = vld [vmem:[#allocation3 + $0x6d0] sm:$0xff] }
 0x6e8   :  { %2718 = vmatprep.subr.bf16.mxu1 %v2241_v30  ;;  %2882 = vmatprep.subr.bf16.mxu0 %v2243_v31  ;;  %v2337_v30 = vld [vmem:[#allocation3 + $0x708] sm:$0xff]  ;;  %v2339_v31 = vld [vmem:[#allocation3 + $0x718] sm:$0xff] }
 0x6ea   :  { %2710 = vmatmul.mubr.bf16.vlgmr.msra.gmra.mrb[20].mxu1 %v4257_v32  ;;  %2874 = vmatmul.mubr.bf16.vlgmr.msra.gmra.mrb[16].mxu0 %v4257_v32 }
 0x6eb   :  { %2719 = vmatpush1.bf16.msra.mxu1 %v2240_v12  ;;  %2883 = vmatpush1.bf16.msra.mxu0 %v2242_v38  ;;  %v2336_v12 = vld [vmem:[#allocation3 + $0x700] sm:$0xff]  ;;  %v2338_v38 = vld [vmem:[#allocation3 + $0x710] sm:$0xff] }
 0x6ec   :  { %2720 = vmatprep.subr.bf16.mxu1 %v2249_v39  ;;  %2884 = vmatprep.subr.bf16.mxu0 %v2251_v34  ;;  %v2345_v39 = vld [vmem:[#allocation3 + $0x748] sm:$0xff]  ;;  %v2347_v34 = vld [vmem:[#allocation3 + $0x758] sm:$0xff] }
 0x6ed   :  { %2750 = vmatprep.mubr.bf16.mxu1 %v4261_v8  ;;  %2914 = vmatprep.mubr.bf16.mxu0 %v4261_v8 }
 0x6ef   :  { %2721 = vmatpush1.bf16.msra.mxu1 %v2248_v49  ;;  %2885 = vmatpush1.bf16.msra.mxu0 %v2250_v40  ;;  %v2344_v49 = vld [vmem:[#allocation3 + $0x740] sm:$0xff]  ;;  %v2346_v40 = vld [vmem:[#allocation3 + $0x750] sm:$0xff] }
 0x6f0   :  { %2722 = vmatprep.subr.bf16.mxu1 %v2257_v41  ;;  %2886 = vmatprep.subr.bf16.mxu0 %v2259_v42  ;;  %v2353_v41 = vld [vmem:[#allocation3 + $0x788] sm:$0xff]  ;;  %v2355_v42 = vld [vmem:[#allocation3 + $0x798] sm:$0xff] }
 0x6f3   :  { %2723 = vmatpush1.bf16.msra.mxu1 %v2256_v37  ;;  %2887 = vmatpush1.bf16.msra.mxu0 %v2258_v35  ;;  %v2352_v37 = vld [vmem:[#allocation3 + $0x780] sm:$0xff]  ;;  %v2354_v35 = vld [vmem:[#allocation3 + $0x790] sm:$0xff] }
 0x6f4   :  { %2724 = vmatprep.subr.bf16.mxu1 %v2265_v43  ;;  %2888 = vmatprep.subr.bf16.mxu0 %v2267_v44  ;;  %v2361_v43 = vld [vmem:[#allocation3 + $0x7c8] sm:$0xff]  ;;  %v2363_v44 = vld [vmem:[#allocation3 + $0x7d8] sm:$0xff] }
 0x6f7   :  { %2725 = vmatpush1.bf16.msra.mxu1 %v2264_v36  ;;  %2889 = vmatpush1.bf16.msra.mxu0 %v2266_v24  ;;  %v2360_v36 = vld [vmem:[#allocation3 + $0x7c0] sm:$0xff]  ;;  %v2362_v24 = vld [vmem:[#allocation3 + $0x7d0] sm:$0xff] }
 0x6f8   :  { %2726 = vmatprep.subr.bf16.mxu1 %v2273_v29  ;;  %2890 = vmatprep.subr.bf16.mxu0 %v2275_v55  ;;  %v2369_v29 = vld [vmem:[#allocation3 + $0x808] sm:$0xff]  ;;  %v2371_v55 = vld [vmem:[#allocation3 + $0x818] sm:$0xff] }
 0x6fb   :  { %2727 = vmatpush1.bf16.msra.mxu1 %v2272_v45  ;;  %2891 = vmatpush1.bf16.msra.mxu0 %v2274_v60  ;;  %v4269_v45 = vpack.c.bf16 %v4199_v50, %v4199_v50  ;;  %v2368_v60 = vld [vmem:[#allocation3 + $0x800] sm:$0xff] }
 0x6fc   :  { %2728 = vmatprep.subr.bf16.mxu1 %v2281_v56  ;;  %2892 = vmatprep.subr.bf16.mxu0 %v2283_v61  ;;  %v2370_v56 = vld [vmem:[#allocation3 + $0x810] sm:$0xff]  ;;  %v2377_v61 = vld [vmem:[#allocation3 + $0x848] sm:$0xff]  ;;  %v2376_v50 = vld [vmem:[#allocation3 + $0x840] sm:$0xff] }
 0x6ff   :  { %2729 = vmatpush1.bf16.msra.mxu1 %v2280_v62  ;;  %2893 = vmatpush1.bf16.msra.mxu0 %v2282_v1  ;;  %v2379_v62 = vld [vmem:[#allocation3 + $0x858] sm:$0xff]  ;;  %v4273_v1 = vpack.c.bf16 %v4245_v63, %v4245_v63  ;;  %v2384_v63 = vld [vmem:[#allocation3 + $0x880] sm:$0xff] }
 0x700   :  { %2730 = vmatprep.subr.bf16.mxu1 %v2289_v46  ;;  %2894 = vmatprep.subr.bf16.mxu0 %v2291_v57  ;;  %v2378_v46 = vld [vmem:[#allocation3 + $0x850] sm:$0xff]  ;;  %v2385_v57 = vld [vmem:[#allocation3 + $0x888] sm:$0xff] }
 0x703   :  { %2731 = vmatpush1.bf16.msra.mxu1 %v2288_v6  ;;  %2895 = vmatpush1.bf16.msra.mxu0 %v2290_v58  ;;  %v2387_v6 = vld [vmem:[#allocation3 + $0x898] sm:$0xff]  ;;  %v2386_v58 = vld [vmem:[#allocation3 + $0x890] sm:$0xff] }
 0x704   :  { %2732 = vmatprep.subr.bf16.mxu1 %v2297_v10  ;;  %2896 = vmatprep.subr.bf16.mxu0 %v2299_v13  ;;  %v2393_v10 = vld [vmem:[#allocation3 + $0x8c8] sm:$0xff]  ;;  %v2395_v13 = vld [vmem:[#allocation3 + $0x8d8] sm:$0xff] }
 0x707   :  { %2733 = vmatpush1.bf16.msra.mxu1 %v2296_v14  ;;  %2897 = vmatpush1.bf16.msra.mxu0 %v2298_v15  ;;  %v2392_v14 = vld [vmem:[#allocation3 + $0x8c0] sm:$0xff]  ;;  %v2394_v15 = vld [vmem:[#allocation3 + $0x8d0] sm:$0xff] }
 0x708   :  { %2734 = vmatprep.subr.bf16.mxu1 %v2305_v0  ;;  %2898 = vmatprep.subr.bf16.mxu0 %v2307_v4  ;;  %v2401_v0 = vld [vmem:[#allocation3 + $0x908] sm:$0xff]  ;;  %v2403_v4 = vld [vmem:[#allocation3 + $0x918] sm:$0xff] }
 0x70b   :  { %2735 = vmatpush1.bf16.msra.mxu1 %v2304_v2  ;;  %2899 = vmatpush1.bf16.msra.mxu0 %v2306_v16  ;;  %v2400_v2 = vld [vmem:[#allocation3 + $0x900] sm:$0xff]  ;;  %v2402_v16 = vld [vmem:[#allocation3 + $0x910] sm:$0xff] }
 0x70c   :  { %2736 = vmatprep.subr.bf16.mxu1 %v2313_v17  ;;  %2900 = vmatprep.subr.bf16.mxu0 %v2315_v18  ;;  %v2409_v17 = vld [vmem:[#allocation3 + $0x948] sm:$0xff]  ;;  %v2411_v18 = vld [vmem:[#allocation3 + $0x958] sm:$0xff] }
 0x70f   :  { %2737 = vmatpush1.bf16.msra.mxu1 %v2312_v21  ;;  %2901 = vmatpush1.bf16.msra.mxu0 %v2314_v22  ;;  %v2408_v21 = vld [vmem:[#allocation3 + $0x940] sm:$0xff]  ;;  %v2410_v22 = vld [vmem:[#allocation3 + $0x950] sm:$0xff] }
 0x710   :  { %2738 = vmatprep.subr.bf16.mxu1 %v2321_v51  ;;  %2902 = vmatprep.subr.bf16.mxu0 %v2323_v47  ;;  %v2417_v51 = vld [vmem:[#allocation3 + $0x988] sm:$0xff]  ;;  %v2419_v47 = vld [vmem:[#allocation3 + $0x998] sm:$0xff] }
 0x713   :  { %2739 = vmatpush1.bf16.msra.mxu1 %v2320_v23  ;;  %2903 = vmatpush1.bf16.msra.mxu0 %v2322_v25  ;;  %v2416_v23 = vld [vmem:[#allocation3 + $0x980] sm:$0xff]  ;;  %v2418_v25 = vld [vmem:[#allocation3 + $0x990] sm:$0xff] }
 0x714   :  { %2740 = vmatprep.subr.bf16.mxu1 %v2329_v26  ;;  %2904 = vmatprep.subr.bf16.mxu0 %v2331_v27  ;;  %v2425_v26 = vld [vmem:[#allocation3 + $0x9c8] sm:$0xff]  ;;  %v2427_v27 = vld [vmem:[#allocation3 + $0x9d8] sm:$0xff] }
 0x717   :  { %2741 = vmatpush1.bf16.msra.mxu1 %v2328_v28  ;;  %2905 = vmatpush1.bf16.msra.mxu0 %v2330_v3  ;;  %v2424_v28 = vld [vmem:[#allocation3 + $0x9c0] sm:$0xff]  ;;  %v2426_v3 = vld [vmem:[#allocation3 + $0x9d0] sm:$0xff] }
 0x718   :  { %2742 = vmatprep.subr.bf16.mxu1 %v2337_v30  ;;  %2906 = vmatprep.subr.bf16.mxu0 %v2339_v31  ;;  %v2433_v30 = vld [vmem:[#allocation3 + $0xa08] sm:$0xff]  ;;  %v2435_v31 = vld [vmem:[#allocation3 + $0xa18] sm:$0xff] }
 0x71b   :  { %2743 = vmatpush1.bf16.msra.mxu1 %v2336_v12  ;;  %2907 = vmatpush1.bf16.msra.mxu0 %v2338_v38  ;;  %v2432_v12 = vld [vmem:[#allocation3 + $0xa00] sm:$0xff]  ;;  %v2434_v38 = vld [vmem:[#allocation3 + $0xa10] sm:$0xff] }
 0x71c   :  { %2744 = vmatprep.subr.bf16.mxu1 %v2345_v39  ;;  %2908 = vmatprep.subr.bf16.mxu0 %v2347_v34  ;;  %v2441_v39 = vld [vmem:[#allocation3 + $0xa48] sm:$0xff]  ;;  %v2443_v34 = vld [vmem:[#allocation3 + $0xa58] sm:$0xff] }
 0x71f   :  { %2745 = vmatpush1.bf16.msra.mxu1 %v2344_v49  ;;  %2909 = vmatpush1.bf16.msra.mxu0 %v2346_v40  ;;  %v2440_v49 = vld [vmem:[#allocation3 + $0xa40] sm:$0xff]  ;;  %v2442_v40 = vld [vmem:[#allocation3 + $0xa50] sm:$0xff] }
 0x720   :  { %2746 = vmatprep.subr.bf16.mxu1 %v2353_v41  ;;  %2910 = vmatprep.subr.bf16.mxu0 %v2355_v42  ;;  %v2449_v41 = vld [vmem:[#allocation3 + $0xa88] sm:$0xff]  ;;  %v2451_v42 = vld [vmem:[#allocation3 + $0xa98] sm:$0xff] }
 0x723   :  { %2747 = vmatpush1.bf16.msra.mxu1 %v2352_v37  ;;  %2911 = vmatpush1.bf16.msra.mxu0 %v2354_v35  ;;  %v2448_v37 = vld [vmem:[#allocation3 + $0xa80] sm:$0xff]  ;;  %v2450_v35 = vld [vmem:[#allocation3 + $0xa90] sm:$0xff] }
 0x724   :  { %2748 = vmatprep.subr.bf16.mxu1 %v2361_v43  ;;  %2912 = vmatprep.subr.bf16.mxu0 %v2363_v44  ;;  %v2457_v43 = vld [vmem:[#allocation3 + $0xac8] sm:$0xff]  ;;  %v2459_v44 = vld [vmem:[#allocation3 + $0xad8] sm:$0xff] }
 0x727   :  { %2749 = vmatpush1.bf16.msra.mxu1 %v2360_v36  ;;  %2913 = vmatpush1.bf16.msra.mxu0 %v2362_v24  ;;  %v2456_v36 = vld [vmem:[#allocation3 + $0xac0] sm:$0xff]  ;;  %v2458_v24 = vld [vmem:[#allocation3 + $0xad0] sm:$0xff] }
 0x728   :  { %2759 = vmatprep.subr.bf16.mxu1 %v2369_v29  ;;  %2923 = vmatprep.subr.bf16.mxu0 %v2371_v55  ;;  %v2465_v29 = vld [vmem:[#allocation3 + $0xb08] sm:$0xff]  ;;  %v2467_v55 = vld [vmem:[#allocation3 + $0xb18] sm:$0xff] }
 0x72a   :  { %2751 = vmatmul.mubr.bf16.vlgmr.msra.gmra.mrb[20].mxu1 %v4269_v45  ;;  %2915 = vmatmul.mubr.bf16.vlgmr.msra.gmra.mrb[16].mxu0 %v4269_v45 }
 0x72b   :  { %2760 = vmatpush1.bf16.msra.mxu1 %v2368_v60  ;;  %2924 = vmatpush1.bf16.msra.mxu0 %v2370_v56  ;;  %v2464_v60 = vld [vmem:[#allocation3 + $0xb00] sm:$0xff]  ;;  %v2466_v56 = vld [vmem:[#allocation3 + $0xb10] sm:$0xff] }
 0x72c   :  { %2761 = vmatprep.subr.bf16.mxu1 %v2377_v61  ;;  %2925 = vmatprep.subr.bf16.mxu0 %v2379_v62  ;;  %v2473_v61 = vld [vmem:[#allocation3 + $0xb48] sm:$0xff]  ;;  %v2475_v62 = vld [vmem:[#allocation3 + $0xb58] sm:$0xff] }
 0x72d   :  { %2791 = vmatprep.mubr.bf16.mxu1 %v4273_v1  ;;  %2955 = vmatprep.mubr.bf16.mxu0 %v4273_v1 }
 0x72f   :  { %2762 = vmatpush1.bf16.msra.mxu1 %v2376_v50  ;;  %2926 = vmatpush1.bf16.msra.mxu0 %v2378_v46  ;;  %v2472_v50 = vld [vmem:[#allocation3 + $0xb40] sm:$0xff]  ;;  %v2474_v46 = vld [vmem:[#allocation3 + $0xb50] sm:$0xff] }
 0x730   :  { %2763 = vmatprep.subr.bf16.mxu1 %v2385_v57  ;;  %2927 = vmatprep.subr.bf16.mxu0 %v2387_v6  ;;  %v2481_v57 = vld [vmem:[#allocation3 + $0xb88] sm:$0xff]  ;;  %v2483_v6 = vld [vmem:[#allocation3 + $0xb98] sm:$0xff] }
 0x733   :  { %2764 = vmatpush1.bf16.msra.mxu1 %v2384_v63  ;;  %2928 = vmatpush1.bf16.msra.mxu0 %v2386_v58  ;;  %v2480_v63 = vld [vmem:[#allocation3 + $0xb80] sm:$0xff]  ;;  %v2482_v58 = vld [vmem:[#allocation3 + $0xb90] sm:$0xff] }
 0x734   :  { %2765 = vmatprep.subr.bf16.mxu1 %v2393_v10  ;;  %2929 = vmatprep.subr.bf16.mxu0 %v2395_v13  ;;  %v2489_v10 = vld [vmem:[#allocation3 + $0xbc8] sm:$0xff]  ;;  %v2491_v13 = vld [vmem:[#allocation3 + $0xbd8] sm:$0xff] }
 0x737   :  { %2766 = vmatpush1.bf16.msra.mxu1 %v2392_v14  ;;  %2930 = vmatpush1.bf16.msra.mxu0 %v2394_v15  ;;  %v2488_v14 = vld [vmem:[#allocation3 + $0xbc0] sm:$0xff]  ;;  %v2490_v15 = vld [vmem:[#allocation3 + $0xbd0] sm:$0xff] }
 0x738   :  { %2767 = vmatprep.subr.bf16.mxu1 %v2401_v0  ;;  %2931 = vmatprep.subr.bf16.mxu0 %v2403_v4  ;;  %v2497_v0 = vld [vmem:[#allocation3 + $0xc08] sm:$0xff]  ;;  %v2499_v4 = vld [vmem:[#allocation3 + $0xc18] sm:$0xff] }
 0x73b   :  { %2768 = vmatpush1.bf16.msra.mxu1 %v2400_v2  ;;  %2932 = vmatpush1.bf16.msra.mxu0 %v2402_v16  ;;  %v4281_v2 = vpack.c.bf16 %v4241_v19, %v4241_v19  ;;  %v2496_v16 = vld [vmem:[#allocation3 + $0xc00] sm:$0xff] }
 0x73c   :  { %2769 = vmatprep.subr.bf16.mxu1 %v2409_v17  ;;  %2933 = vmatprep.subr.bf16.mxu0 %v2411_v18  ;;  %v2498_v17 = vld [vmem:[#allocation3 + $0xc10] sm:$0xff]  ;;  %v2505_v18 = vld [vmem:[#allocation3 + $0xc48] sm:$0xff]  ;;  %v2504_v19 = vld [vmem:[#allocation3 + $0xc40] sm:$0xff] }
 0x73f   :  { %2770 = vmatpush1.bf16.msra.mxu1 %v2408_v21  ;;  %2934 = vmatpush1.bf16.msra.mxu0 %v2410_v22  ;;  %v2507_v21 = vld [vmem:[#allocation3 + $0xc58] sm:$0xff]  ;;  %v4285_v22 = vpack.c.bf16 %v4247_v59, %v4247_v59  ;;  %v2512_v59 = vld [vmem:[#allocation3 + $0xc80] sm:$0xff] }
 0x740   :  { %2771 = vmatprep.subr.bf16.mxu1 %v2417_v51  ;;  %2935 = vmatprep.subr.bf16.mxu0 %v2419_v47  ;;  %v2506_v51 = vld [vmem:[#allocation3 + $0xc50] sm:$0xff]  ;;  %v2513_v47 = vld [vmem:[#allocation3 + $0xc88] sm:$0xff] }
 0x743   :  { %2772 = vmatpush1.bf16.msra.mxu1 %v2416_v23  ;;  %2936 = vmatpush1.bf16.msra.mxu0 %v2418_v25  ;;  %v2515_v23 = vld [vmem:[#allocation3 + $0xc98] sm:$0xff]  ;;  %v2514_v25 = vld [vmem:[#allocation3 + $0xc90] sm:$0xff] }
 0x744   :  { %2773 = vmatprep.subr.bf16.mxu1 %v2425_v26  ;;  %2937 = vmatprep.subr.bf16.mxu0 %v2427_v27  ;;  %v2521_v26 = vld [vmem:[#allocation3 + $0xcc8] sm:$0xff]  ;;  %v2523_v27 = vld [vmem:[#allocation3 + $0xcd8] sm:$0xff] }
 0x747   :  { %2774 = vmatpush1.bf16.msra.mxu1 %v2424_v28  ;;  %2938 = vmatpush1.bf16.msra.mxu0 %v2426_v3  ;;  %v2520_v28 = vld [vmem:[#allocation3 + $0xcc0] sm:$0xff]  ;;  %v2522_v3 = vld [vmem:[#allocation3 + $0xcd0] sm:$0xff] }
 0x748   :  { %2775 = vmatprep.subr.bf16.mxu1 %v2433_v30  ;;  %2939 = vmatprep.subr.bf16.mxu0 %v2435_v31  ;;  %v2529_v30 = vld [vmem:[#allocation3 + $0xd08] sm:$0xff]  ;;  %v2531_v31 = vld [vmem:[#allocation3 + $0xd18] sm:$0xff] }
 0x74b   :  { %2776 = vmatpush1.bf16.msra.mxu1 %v2432_v12  ;;  %2940 = vmatpush1.bf16.msra.mxu0 %v2434_v38  ;;  %v2528_v12 = vld [vmem:[#allocation3 + $0xd00] sm:$0xff]  ;;  %v2530_v38 = vld [vmem:[#allocation3 + $0xd10] sm:$0xff] }
 0x74c   :  { %2777 = vmatprep.subr.bf16.mxu1 %v2441_v39  ;;  %2941 = vmatprep.subr.bf16.mxu0 %v2443_v34  ;;  %v2537_v39 = vld [vmem:[#allocation3 + $0xd48] sm:$0xff]  ;;  %v2539_v34 = vld [vmem:[#allocation3 + $0xd58] sm:$0xff] }
 0x74f   :  { %2778 = vmatpush1.bf16.msra.mxu1 %v2440_v49  ;;  %2942 = vmatpush1.bf16.msra.mxu0 %v2442_v40  ;;  %v2536_v49 = vld [vmem:[#allocation3 + $0xd40] sm:$0xff]  ;;  %v2538_v40 = vld [vmem:[#allocation3 + $0xd50] sm:$0xff] }
 0x750   :  { %2779 = vmatprep.subr.bf16.mxu1 %v2449_v41  ;;  %2943 = vmatprep.subr.bf16.mxu0 %v2451_v42  ;;  %v2545_v41 = vld [vmem:[#allocation3 + $0xd88] sm:$0xff]  ;;  %v2547_v42 = vld [vmem:[#allocation3 + $0xd98] sm:$0xff] }
 0x753   :  { %2780 = vmatpush1.bf16.msra.mxu1 %v2448_v37  ;;  %2944 = vmatpush1.bf16.msra.mxu0 %v2450_v35  ;;  %v2544_v37 = vld [vmem:[#allocation3 + $0xd80] sm:$0xff]  ;;  %v2546_v35 = vld [vmem:[#allocation3 + $0xd90] sm:$0xff] }
 0x754   :  { %2781 = vmatprep.subr.bf16.mxu1 %v2457_v43  ;;  %2945 = vmatprep.subr.bf16.mxu0 %v2459_v44  ;;  %v2553_v43 = vld [vmem:[#allocation3 + $0xdc8] sm:$0xff]  ;;  %v2555_v44 = vld [vmem:[#allocation3 + $0xdd8] sm:$0xff] }
 0x757   :  { %2782 = vmatpush1.bf16.msra.mxu1 %v2456_v36  ;;  %2946 = vmatpush1.bf16.msra.mxu0 %v2458_v24  ;;  %v2552_v36 = vld [vmem:[#allocation3 + $0xdc0] sm:$0xff]  ;;  %v2554_v24 = vld [vmem:[#allocation3 + $0xdd0] sm:$0xff] }
 0x758   :  { %2783 = vmatprep.subr.bf16.mxu1 %v2465_v29  ;;  %2947 = vmatprep.subr.bf16.mxu0 %v2467_v55  ;;  %v2561_v29 = vld [vmem:[#allocation3 + $0xe08] sm:$0xff]  ;;  %v2563_v55 = vld [vmem:[#allocation3 + $0xe18] sm:$0xff] }
 0x75b   :  { %2784 = vmatpush1.bf16.msra.mxu1 %v2464_v60  ;;  %2948 = vmatpush1.bf16.msra.mxu0 %v2466_v56  ;;  %v2560_v60 = vld [vmem:[#allocation3 + $0xe00] sm:$0xff]  ;;  %v2562_v56 = vld [vmem:[#allocation3 + $0xe10] sm:$0xff] }
 0x75c   :  { %2785 = vmatprep.subr.bf16.mxu1 %v2473_v61  ;;  %2949 = vmatprep.subr.bf16.mxu0 %v2475_v62  ;;  %v2569_v61 = vld [vmem:[#allocation3 + $0xe48] sm:$0xff]  ;;  %v2571_v62 = vld [vmem:[#allocation3 + $0xe58] sm:$0xff] }
 0x75f   :  { %2786 = vmatpush1.bf16.msra.mxu1 %v2472_v50  ;;  %2950 = vmatpush1.bf16.msra.mxu0 %v2474_v46  ;;  %v2568_v50 = vld [vmem:[#allocation3 + $0xe40] sm:$0xff]  ;;  %v2570_v46 = vld [vmem:[#allocation3 + $0xe50] sm:$0xff] }
 0x760   :  { %2787 = vmatprep.subr.bf16.mxu1 %v2481_v57  ;;  %2951 = vmatprep.subr.bf16.mxu0 %v2483_v6  ;;  %v2577_v57 = vld [vmem:[#allocation3 + $0xe88] sm:$0xff]  ;;  %v2579_v6 = vld [vmem:[#allocation3 + $0xe98] sm:$0xff] }
 0x763   :  { %2788 = vmatpush1.bf16.msra.mxu1 %v2480_v63  ;;  %2952 = vmatpush1.bf16.msra.mxu0 %v2482_v58  ;;  %v2576_v63 = vld [vmem:[#allocation3 + $0xe80] sm:$0xff]  ;;  %v2578_v58 = vld [vmem:[#allocation3 + $0xe90] sm:$0xff] }
 0x764   :  { %2789 = vmatprep.subr.bf16.mxu1 %v2489_v10  ;;  %2953 = vmatprep.subr.bf16.mxu0 %v2491_v13  ;;  %v2585_v10 = vld [vmem:[#allocation3 + $0xec8] sm:$0xff]  ;;  %v2587_v13 = vld [vmem:[#allocation3 + $0xed8] sm:$0xff] }
 0x767   :  { %2790 = vmatpush1.bf16.msra.mxu1 %v2488_v14  ;;  %2954 = vmatpush1.bf16.msra.mxu0 %v2490_v15  ;;  %v2584_v14 = vld [vmem:[#allocation3 + $0xec0] sm:$0xff]  ;;  %v2586_v15 = vld [vmem:[#allocation3 + $0xed0] sm:$0xff] }
 0x768   :  { %2800 = vmatprep.subr.bf16.mxu1 %v2497_v0  ;;  %2964 = vmatprep.subr.bf16.mxu0 %v2499_v4  ;;  %v2593_v0 = vld [vmem:[#allocation3 + $0xf08] sm:$0xff]  ;;  %v2595_v4 = vld [vmem:[#allocation3 + $0xf18] sm:$0xff] }
 0x76a   :  { %2792 = vmatmul.mubr.bf16.vlgmr.msra.gmra.mrb[20].mxu1 %v4281_v2  ;;  %2956 = vmatmul.mubr.bf16.vlgmr.msra.gmra.mrb[16].mxu0 %v4281_v2 }
 0x76b   :  { %2801 = vmatpush1.bf16.msra.mxu1 %v2496_v16  ;;  %2965 = vmatpush1.bf16.msra.mxu0 %v2498_v17  ;;  %v2592_v16 = vld [vmem:[#allocation3 + $0xf00] sm:$0xff]  ;;  %v2594_v17 = vld [vmem:[#allocation3 + $0xf10] sm:$0xff] }
 0x76c   :  { %2802 = vmatprep.subr.bf16.mxu1 %v2505_v18  ;;  %2966 = vmatprep.subr.bf16.mxu0 %v2507_v21  ;;  %v2601_v18 = vld [vmem:[#allocation3 + $0xf48] sm:$0xff]  ;;  %v2603_v21 = vld [vmem:[#allocation3 + $0xf58] sm:$0xff] }
 0x76d   :  { %2832 = vmatprep.mubr.bf16.mxu1 %v4285_v22  ;;  %2996 = vmatprep.mubr.bf16.mxu0 %v4285_v22 }
 0x76f   :  { %2803 = vmatpush1.bf16.msra.mxu1 %v2504_v19  ;;  %2967 = vmatpush1.bf16.msra.mxu0 %v2506_v51  ;;  %v2600_v19 = vld [vmem:[#allocation3 + $0xf40] sm:$0xff]  ;;  %v2602_v51 = vld [vmem:[#allocation3 + $0xf50] sm:$0xff] }
 0x770   :  { %2804 = vmatprep.subr.bf16.mxu1 %v2513_v47  ;;  %2968 = vmatprep.subr.bf16.mxu0 %v2515_v23  ;;  %v2609_v47 = vld [vmem:[#allocation3 + $0xf88] sm:$0xff]  ;;  %v2611_v23 = vld [vmem:[#allocation3 + $0xf98] sm:$0xff] }
 0x773   :  { %2805 = vmatpush1.bf16.msra.mxu1 %v2512_v59  ;;  %2969 = vmatpush1.bf16.msra.mxu0 %v2514_v25  ;;  %v2608_v59 = vld [vmem:[#allocation3 + $0xf80] sm:$0xff]  ;;  %v2610_v25 = vld [vmem:[#allocation3 + $0xf90] sm:$0xff] }
 0x774   :  { %2806 = vmatprep.subr.bf16.mxu1 %v2521_v26  ;;  %2970 = vmatprep.subr.bf16.mxu0 %v2523_v27  ;;  %v2617_v26 = vld [vmem:[#allocation3 + $0xfc8] sm:$0xff]  ;;  %v2619_v27 = vld [vmem:[#allocation3 + $0xfd8] sm:$0xff] }
 0x777   :  { %2807 = vmatpush1.bf16.msra.mxu1 %v2520_v28  ;;  %2971 = vmatpush1.bf16.msra.mxu0 %v2522_v3  ;;  %v2616_v28 = vld [vmem:[#allocation3 + $0xfc0] sm:$0xff]  ;;  %v2618_v3 = vld [vmem:[#allocation3 + $0xfd0] sm:$0xff] }
 0x778   :  { %2808 = vmatprep.subr.bf16.mxu1 %v2529_v30  ;;  %2972 = vmatprep.subr.bf16.mxu0 %v2531_v31  ;;  %v2117_v30 = vld [vmem:[#allocation3 + $0x28] sm:$0xff]  ;;  %v2119_v31 = vld [vmem:[#allocation3 + $0x38] sm:$0xff] }
 0x77b   :  { %2809 = vmatpush1.bf16.msra.mxu1 %v2528_v12  ;;  %2973 = vmatpush1.bf16.msra.mxu0 %v2530_v38  ;;  %v4293_v12 = vpack.c.bf16 %v4243_v48, %v4243_v48  ;;  %v2116_v38 = vld [vmem:[#allocation3 + $0x20] sm:$0xff]  ;;  %v2133_v48 = vld [vmem:[#allocation3 + $0xa8] sm:$0xff] }
 0x77c   :  { %2810 = vmatprep.subr.bf16.mxu1 %v2537_v39  ;;  %2974 = vmatprep.subr.bf16.mxu0 %v2539_v34  ;;  %v2118_v39 = vld [vmem:[#allocation3 + $0x30] sm:$0xff]  ;;  %v2125_v34 = vld [vmem:[#allocation3 + $0x68] sm:$0xff] }
 0x77f   :  { %2811 = vmatpush1.bf16.msra.mxu1 %v2536_v49  ;;  %2975 = vmatpush1.bf16.msra.mxu0 %v2538_v40  ;;  %v2127_v49 = vld [vmem:[#allocation3 + $0x78] sm:$0xff]  ;;  %v2124_v40 = vld [vmem:[#allocation3 + $0x60] sm:$0xff] }
 0x780   :  { %2812 = vmatprep.subr.bf16.mxu1 %v2545_v41  ;;  %2976 = vmatprep.subr.bf16.mxu0 %v2547_v42  ;;  %v2126_v41 = vld [vmem:[#allocation3 + $0x70] sm:$0xff]  ;;  %v2135_v42 = vld [vmem:[#allocation3 + $0xb8] sm:$0xff] }
 0x783   :  { %2813 = vmatpush1.bf16.msra.mxu1 %v2544_v37  ;;  %2977 = vmatpush1.bf16.msra.mxu0 %v2546_v35  ;;  %v2132_v37 = vld [vmem:[#allocation3 + $0xa0] sm:$0xff]  ;;  %v2134_v35 = vld [vmem:[#allocation3 + $0xb0] sm:$0xff] }
 0x784   :  { %2814 = vmatprep.subr.bf16.mxu1 %v2553_v43  ;;  %2978 = vmatprep.subr.bf16.mxu0 %v2555_v44  ;;  %v2141_v43 = vld [vmem:[#allocation3 + $0xe8] sm:$0xff]  ;;  %v2143_v44 = vld [vmem:[#allocation3 + $0xf8] sm:$0xff] }
 0x787   :  { %2815 = vmatpush1.bf16.msra.mxu1 %v2552_v36  ;;  %2979 = vmatpush1.bf16.msra.mxu0 %v2554_v24  ;;  %v2140_v36 = vld [vmem:[#allocation3 + $0xe0] sm:$0xff]  ;;  %v2142_v24 = vld [vmem:[#allocation3 + $0xf0] sm:$0xff] }
 0x788   :  { %2816 = vmatprep.subr.bf16.mxu1 %v2561_v29  ;;  %2980 = vmatprep.subr.bf16.mxu0 %v2563_v55  ;;  %v2149_v29 = vld [vmem:[#allocation3 + $0x128] sm:$0xff]  ;;  %v2151_v55 = vld [vmem:[#allocation3 + $0x138] sm:$0xff] }
 0x78b   :  { %2817 = vmatpush1.bf16.msra.mxu1 %v2560_v60  ;;  %2981 = vmatpush1.bf16.msra.mxu0 %v2562_v56  ;;  %v2150_v60 = vld [vmem:[#allocation3 + $0x130] sm:$0xff]  ;;  %v2157_v56 = vld [vmem:[#allocation3 + $0x168] sm:$0xff] }
 0x78c   :  { %2818 = vmatprep.subr.bf16.mxu1 %v2569_v61  ;;  %2982 = vmatprep.subr.bf16.mxu0 %v2571_v62  ;;  %v2159_v61 = vld [vmem:[#allocation3 + $0x178] sm:$0xff]  ;;  %v2156_v62 = vld [vmem:[#allocation3 + $0x160] sm:$0xff] }
 0x78f   :  { %2819 = vmatpush1.bf16.msra.mxu1 %v2568_v50  ;;  %2983 = vmatpush1.bf16.msra.mxu0 %v2570_v46  ;;  %v2158_v50 = vld [vmem:[#allocation3 + $0x170] sm:$0xff]  ;;  %v2165_v46 = vld [vmem:[#allocation3 + $0x1a8] sm:$0xff] }
 0x790   :  { %2820 = vmatprep.subr.bf16.mxu1 %v2577_v57  ;;  %2984 = vmatprep.subr.bf16.mxu0 %v2579_v6  ;;  %v2167_v57 = vld [vmem:[#allocation3 + $0x1b8] sm:$0xff]  ;;  %v2164_v6 = vld [vmem:[#allocation3 + $0x1a0] sm:$0xff] }
 0x793   :  { %2821 = vmatpush1.bf16.msra.mxu1 %v2576_v63  ;;  %2985 = vmatpush1.bf16.msra.mxu0 %v2578_v58  ;;  %v2166_v63 = vld [vmem:[#allocation3 + $0x1b0] sm:$0xff]  ;;  %v2173_v58 = vld [vmem:[#allocation3 + $0x1e8] sm:$0xff] }
 0x794   :  { %2822 = vmatprep.subr.bf16.mxu1 %v2585_v10  ;;  %2986 = vmatprep.subr.bf16.mxu0 %v2587_v13  ;;  %v2175_v10 = vld [vmem:[#allocation3 + $0x1f8] sm:$0xff]  ;;  %v2172_v13 = vld [vmem:[#allocation3 + $0x1e0] sm:$0xff] }
 0x797   :  { %2823 = vmatpush1.bf16.msra.mxu1 %v2584_v14  ;;  %2987 = vmatpush1.bf16.msra.mxu0 %v2586_v15  ;;  %v2174_v14 = vld [vmem:[#allocation3 + $0x1f0] sm:$0xff]  ;;  %v2181_v15 = vld [vmem:[#allocation3 + $0x228] sm:$0xff] }
 0x798   :  { %2824 = vmatprep.subr.bf16.mxu1 %v2593_v0  ;;  %2988 = vmatprep.subr.bf16.mxu0 %v2595_v4  ;;  %v2183_v0 = vld [vmem:[#allocation3 + $0x238] sm:$0xff]  ;;  %v2180_v4 = vld [vmem:[#allocation3 + $0x220] sm:$0xff] }
 0x79b   :  { %2825 = vmatpush1.bf16.msra.mxu1 %v2592_v16  ;;  %2989 = vmatpush1.bf16.msra.mxu0 %v2594_v17  ;;  %v2182_v16 = vld [vmem:[#allocation3 + $0x230] sm:$0xff]  ;;  %v2189_v17 = vld [vmem:[#allocation3 + $0x268] sm:$0xff] }
 0x79c   :  { %2826 = vmatprep.subr.bf16.mxu1 %v2601_v18  ;;  %2990 = vmatprep.subr.bf16.mxu0 %v2603_v21  ;;  %v2191_v18 = vld [vmem:[#allocation3 + $0x278] sm:$0xff]  ;;  %v2188_v21 = vld [vmem:[#allocation3 + $0x260] sm:$0xff] }
 0x79f   :  { %2827 = vmatpush1.bf16.msra.mxu1 %v2600_v19  ;;  %2991 = vmatpush1.bf16.msra.mxu0 %v2602_v51  ;;  %v2190_v19 = vld [vmem:[#allocation3 + $0x270] sm:$0xff]  ;;  %v2197_v51 = vld [vmem:[#allocation3 + $0x2a8] sm:$0xff] }
 0x7a0   :  { %2828 = vmatprep.subr.bf16.mxu1 %v2609_v47  ;;  %2992 = vmatprep.subr.bf16.mxu0 %v2611_v23  ;;  %v2199_v47 = vld [vmem:[#allocation3 + $0x2b8] sm:$0xff]  ;;  %v2196_v23 = vld [vmem:[#allocation3 + $0x2a0] sm:$0xff] }
 0x7a3   :  { %2829 = vmatpush1.bf16.msra.mxu1 %v2608_v59  ;;  %2993 = vmatpush1.bf16.msra.mxu0 %v2610_v25  ;;  %v2198_v59 = vld [vmem:[#allocation3 + $0x2b0] sm:$0xff]  ;;  %v2205_v25 = vld [vmem:[#allocation3 + $0x2e8] sm:$0xff] }
 0x7a4   :  { %2830 = vmatprep.subr.bf16.mxu1 %v2617_v26  ;;  %2994 = vmatprep.subr.bf16.mxu0 %v2619_v27  ;;  %v2207_v26 = vld [vmem:[#allocation3 + $0x2f8] sm:$0xff]  ;;  %v2204_v27 = vld [vmem:[#allocation3 + $0x2e0] sm:$0xff] }
 0x7a7   :  { %2831 = vmatpush1.bf16.msra.mxu1 %v2616_v28  ;;  %2995 = vmatpush1.bf16.msra.mxu0 %v2618_v3  ;;  %v2206_v28 = vld [vmem:[#allocation3 + $0x2f0] sm:$0xff]  ;;  %v2213_v3 = vld [vmem:[#allocation3 + $0x328] sm:$0xff] }
 0x7a8   :  { %3005 = vmatprep.subr.bf16.mxu1 %v2117_v30  ;;  %3169 = vmatprep.subr.bf16.mxu0 %v2119_v31  ;;  %v2215_v30 = vld [vmem:[#allocation3 + $0x338] sm:$0xff]  ;;  %v2212_v31 = vld [vmem:[#allocation3 + $0x320] sm:$0xff] }
 0x7aa   :  { %2833 = vmatmul.mubr.bf16.vlgmr.msra.gmra.mrb[20].mxu1 %v4293_v12  ;;  %2997 = vmatmul.mubr.bf16.vlgmr.msra.gmra.mrb[16].mxu0 %v4293_v12 }
 0x7ab   :  { %3006 = vmatpush1.bf16.msra.mxu1 %v2116_v38  ;;  %3170 = vmatpush1.bf16.msra.mxu0 %v2118_v39  ;;  %v2214_v38 = vld [vmem:[#allocation3 + $0x330] sm:$0xff]  ;;  %v2221_v39 = vld [vmem:[#allocation3 + $0x368] sm:$0xff] }
 0x7ac   :  { %3007 = vmatprep.subr.bf16.mxu1 %v2125_v34  ;;  %3171 = vmatprep.subr.bf16.mxu0 %v2127_v49  ;;  %v2223_v34 = vld [vmem:[#allocation3 + $0x378] sm:$0xff]  ;;  %v2220_v49 = vld [vmem:[#allocation3 + $0x360] sm:$0xff] }
 0x7ad   :  { %3037 = vmatprep.mubr.bf16.mxu1 %v4251_v20  ;;  %3201 = vmatprep.mubr.bf16.mxu0 %v4251_v20  ;;  %v2148_v20 = vld [vmem:[#allocation3 + $0x120] sm:$0xff] }
 0x7af   :  { %3008 = vmatpush1.bf16.msra.mxu1 %v2124_v40  ;;  %3172 = vmatpush1.bf16.msra.mxu0 %v2126_v41  ;;  %v2222_v40 = vld [vmem:[#allocation3 + $0x370] sm:$0xff]  ;;  %v2229_v41 = vld [vmem:[#allocation3 + $0x3a8] sm:$0xff] }
 0x7b0   :  { %3009 = vmatprep.subr.bf16.mxu1 %v2133_v48  ;;  %3173 = vmatprep.subr.bf16.mxu0 %v2135_v42  ;;  %v2231_v48 = vld [vmem:[#allocation3 + $0x3b8] sm:$0xff]  ;;  %v2228_v42 = vld [vmem:[#allocation3 + $0x3a0] sm:$0xff] }
 0x7b3   :  { %3010 = vmatpush1.bf16.msra.mxu1 %v2132_v37  ;;  %3174 = vmatpush1.bf16.msra.mxu0 %v2134_v35  ;;  %v2230_v37 = vld [vmem:[#allocation3 + $0x3b0] sm:$0xff]  ;;  %v2237_v35 = vld [vmem:[#allocation3 + $0x3e8] sm:$0xff] }
 0x7b4   :  { %3011 = vmatprep.subr.bf16.mxu1 %v2141_v43  ;;  %3175 = vmatprep.subr.bf16.mxu0 %v2143_v44  ;;  %v2239_v43 = vld [vmem:[#allocation3 + $0x3f8] sm:$0xff]  ;;  %v2236_v44 = vld [vmem:[#allocation3 + $0x3e0] sm:$0xff] }
 0x7b7   :  { %3012 = vmatpush1.bf16.msra.mxu1 %v2140_v36  ;;  %3176 = vmatpush1.bf16.msra.mxu0 %v2142_v24  ;;  %v2238_v36 = vld [vmem:[#allocation3 + $0x3f0] sm:$0xff]  ;;  %v2245_v24 = vld [vmem:[#allocation3 + $0x428] sm:$0xff] }
 0x7b8   :  { %3013 = vmatprep.subr.bf16.mxu1 %v2149_v29  ;;  %3177 = vmatprep.subr.bf16.mxu0 %v2151_v55  ;;  %v2247_v29 = vld [vmem:[#allocation3 + $0x438] sm:$0xff]  ;;  %v2244_v55 = vld [vmem:[#allocation3 + $0x420] sm:$0xff] }
 0x7bb   :  { %3014 = vmatpush1.bf16.msra.mxu1 %v2148_v20  ;;  %3178 = vmatpush1.bf16.msra.mxu0 %v2150_v60  ;;  %v2246_v20 = vld [vmem:[#allocation3 + $0x430] sm:$0xff]  ;;  %v2253_v60 = vld [vmem:[#allocation3 + $0x468] sm:$0xff] }
 0x7bc   :  { %3015 = vmatprep.subr.bf16.mxu1 %v2157_v56  ;;  %3179 = vmatprep.subr.bf16.mxu0 %v2159_v61  ;;  %v2255_v56 = vld [vmem:[#allocation3 + $0x478] sm:$0xff]  ;;  %v2252_v61 = vld [vmem:[#allocation3 + $0x460] sm:$0xff] }
 0x7bf   :  { %3016 = vmatpush1.bf16.msra.mxu1 %v2156_v62  ;;  %3180 = vmatpush1.bf16.msra.mxu0 %v2158_v50  ;;  %v2254_v62 = vld [vmem:[#allocation3 + $0x470] sm:$0xff]  ;;  %v2261_v50 = vld [vmem:[#allocation3 + $0x4a8] sm:$0xff] }
 0x7c0   :  { %3017 = vmatprep.subr.bf16.mxu1 %v2165_v46  ;;  %3181 = vmatprep.subr.bf16.mxu0 %v2167_v57  ;;  %v2263_v46 = vld [vmem:[#allocation3 + $0x4b8] sm:$0xff]  ;;  %v2260_v57 = vld [vmem:[#allocation3 + $0x4a0] sm:$0xff] }
 0x7c3   :  { %3018 = vmatpush1.bf16.msra.mxu1 %v2164_v6  ;;  %3182 = vmatpush1.bf16.msra.mxu0 %v2166_v63  ;;  %v2262_v6 = vld [vmem:[#allocation3 + $0x4b0] sm:$0xff]  ;;  %v2269_v63 = vld [vmem:[#allocation3 + $0x4e8] sm:$0xff] }
 0x7c4   :  { %3019 = vmatprep.subr.bf16.mxu1 %v2173_v58  ;;  %3183 = vmatprep.subr.bf16.mxu0 %v2175_v10  ;;  %v2268_v58 = vld [vmem:[#allocation3 + $0x4e0] sm:$0xff]  ;;  %v2270_v10 = vld [vmem:[#allocation3 + $0x4f0] sm:$0xff] }
 0x7c7   :  { %3020 = vmatpush1.bf16.msra.mxu1 %v2172_v13  ;;  %3184 = vmatpush1.bf16.msra.mxu0 %v2174_v14  ;;  %v2277_v13 = vld [vmem:[#allocation3 + $0x528] sm:$0xff]  ;;  %v2279_v14 = vld [vmem:[#allocation3 + $0x538] sm:$0xff] }
 0x7c8   :  { %3021 = vmatprep.subr.bf16.mxu1 %v2181_v15  ;;  %3185 = vmatprep.subr.bf16.mxu0 %v2183_v0  ;;  %v2278_v15 = vld [vmem:[#allocation3 + $0x530] sm:$0xff]  ;;  %v2285_v0 = vld [vmem:[#allocation3 + $0x568] sm:$0xff] }
 0x7cb   :  { %3022 = vmatpush1.bf16.msra.mxu1 %v2180_v4  ;;  %3186 = vmatpush1.bf16.msra.mxu0 %v2182_v16  ;;  %v2287_v4 = vld [vmem:[#allocation3 + $0x578] sm:$0xff]  ;;  %v2284_v16 = vld [vmem:[#allocation3 + $0x560] sm:$0xff] }
 0x7cc   :  { %3023 = vmatprep.subr.bf16.mxu1 %v2189_v17  ;;  %3187 = vmatprep.subr.bf16.mxu0 %v2191_v18  ;;  %v2286_v17 = vld [vmem:[#allocation3 + $0x570] sm:$0xff]  ;;  %v2293_v18 = vld [vmem:[#allocation3 + $0x5a8] sm:$0xff] }
 0x7cf   :  { %3024 = vmatpush1.bf16.msra.mxu1 %v2188_v21  ;;  %3188 = vmatpush1.bf16.msra.mxu0 %v2190_v19  ;;  %v2295_v21 = vld [vmem:[#allocation3 + $0x5b8] sm:$0xff]  ;;  %v2292_v19 = vld [vmem:[#allocation3 + $0x5a0] sm:$0xff] }
 0x7d0   :  { %3025 = vmatprep.subr.bf16.mxu1 %v2197_v51  ;;  %3189 = vmatprep.subr.bf16.mxu0 %v2199_v47  ;;  %v2294_v51 = vld [vmem:[#allocation3 + $0x5b0] sm:$0xff]  ;;  %v2301_v47 = vld [vmem:[#allocation3 + $0x5e8] sm:$0xff] }
 0x7d3   :  { %3026 = vmatpush1.bf16.msra.mxu1 %v2196_v23  ;;  %3190 = vmatpush1.bf16.msra.mxu0 %v2198_v59  ;;  %v2303_v23 = vld [vmem:[#allocation3 + $0x5f8] sm:$0xff]  ;;  %v2300_v59 = vld [vmem:[#allocation3 + $0x5e0] sm:$0xff] }
 0x7d4   :  { %3027 = vmatprep.subr.bf16.mxu1 %v2205_v25  ;;  %3191 = vmatprep.subr.bf16.mxu0 %v2207_v26  ;;  %v2302_v25 = vld [vmem:[#allocation3 + $0x5f0] sm:$0xff]  ;;  %v2309_v26 = vld [vmem:[#allocation3 + $0x628] sm:$0xff] }
 0x7d7   :  { %3028 = vmatpush1.bf16.msra.mxu1 %v2204_v27  ;;  %3192 = vmatpush1.bf16.msra.mxu0 %v2206_v28  ;;  %v2311_v27 = vld [vmem:[#allocation3 + $0x638] sm:$0xff]  ;;  %v2308_v28 = vld [vmem:[#allocation3 + $0x620] sm:$0xff] }
 0x7d8   :  { %3029 = vmatprep.subr.bf16.mxu1 %v2213_v3  ;;  %3193 = vmatprep.subr.bf16.mxu0 %v2215_v30  ;;  %v2310_v3 = vld [vmem:[#allocation3 + $0x630] sm:$0xff]  ;;  %v2317_v30 = vld [vmem:[#allocation3 + $0x668] sm:$0xff] }
 0x7db   :  { %3030 = vmatpush1.bf16.msra.mxu1 %v2212_v31  ;;  %3194 = vmatpush1.bf16.msra.mxu0 %v2214_v38  ;;  %v2319_v31 = vld [vmem:[#allocation3 + $0x678] sm:$0xff]  ;;  %v2316_v38 = vld [vmem:[#allocation3 + $0x660] sm:$0xff] }
 0x7dc   :  { %3031 = vmatprep.subr.bf16.mxu1 %v2221_v39  ;;  %3195 = vmatprep.subr.bf16.mxu0 %v2223_v34  ;;  %v2318_v39 = vld [vmem:[#allocation3 + $0x670] sm:$0xff]  ;;  %v2325_v34 = vld [vmem:[#allocation3 + $0x6a8] sm:$0xff] }
 0x7df   :  { %3032 = vmatpush1.bf16.msra.mxu1 %v2220_v49  ;;  %3196 = vmatpush1.bf16.msra.mxu0 %v2222_v40  ;;  %v2327_v49 = vld [vmem:[#allocation3 + $0x6b8] sm:$0xff]  ;;  %v2324_v40 = vld [vmem:[#allocation3 + $0x6a0] sm:$0xff] }
 0x7e0   :  { %3033 = vmatprep.subr.bf16.mxu1 %v2229_v41  ;;  %3197 = vmatprep.subr.bf16.mxu0 %v2231_v48  ;;  %v2326_v41 = vld [vmem:[#allocation3 + $0x6b0] sm:$0xff]  ;;  %v2333_v48 = vld [vmem:[#allocation3 + $0x6e8] sm:$0xff] }
 0x7e3   :  { %3034 = vmatpush1.bf16.msra.mxu1 %v2228_v42  ;;  %3198 = vmatpush1.bf16.msra.mxu0 %v2230_v37  ;;  %v2335_v42 = vld [vmem:[#allocation3 + $0x6f8] sm:$0xff]  ;;  %v2332_v37 = vld [vmem:[#allocation3 + $0x6e0] sm:$0xff] }
 0x7e4   :  { %3035 = vmatprep.subr.bf16.mxu1 %v2237_v35  ;;  %3199 = vmatprep.subr.bf16.mxu0 %v2239_v43  ;;  %v2334_v35 = vld [vmem:[#allocation3 + $0x6f0] sm:$0xff]  ;;  %v2341_v43 = vld [vmem:[#allocation3 + $0x728] sm:$0xff] }
 0x7e7   :  { %3036 = vmatpush1.bf16.msra.mxu1 %v2236_v44  ;;  %3200 = vmatpush1.bf16.msra.mxu0 %v2238_v36  ;;  %v2343_v44 = vld [vmem:[#allocation3 + $0x738] sm:$0xff]  ;;  %v2340_v36 = vld [vmem:[#allocation3 + $0x720] sm:$0xff] }
 0x7e8   :  { %3046 = vmatprep.subr.bf16.mxu1 %v2245_v24  ;;  %3210 = vmatprep.subr.bf16.mxu0 %v2247_v29  ;;  %v2342_v24 = vld [vmem:[#allocation3 + $0x730] sm:$0xff]  ;;  %v2349_v29 = vld [vmem:[#allocation3 + $0x768] sm:$0xff] }
 0x7ea   :  { %3038 = vmatmul.mubr.bf16.vlgmr.msra.gmra.mrb[24].mxu1 %v4257_v32  ;;  %3202 = vmatmul.mubr.bf16.vlgmr.msra.gmra.mrb[20].mxu0 %v4257_v32  ;;  %v2271_v32 = vld [vmem:[#allocation3 + $0x4f8] sm:$0xff] }
 0x7eb   :  { %3047 = vmatpush1.bf16.msra.mxu1 %v2244_v55  ;;  %3211 = vmatpush1.bf16.msra.mxu0 %v2246_v20  ;;  %v2351_v55 = vld [vmem:[#allocation3 + $0x778] sm:$0xff]  ;;  %v2348_v20 = vld [vmem:[#allocation3 + $0x760] sm:$0xff] }
 0x7ec   :  { %3048 = vmatprep.subr.bf16.mxu1 %v2253_v60  ;;  %3212 = vmatprep.subr.bf16.mxu0 %v2255_v56  ;;  %v2350_v60 = vld [vmem:[#allocation3 + $0x770] sm:$0xff]  ;;  %v2357_v56 = vld [vmem:[#allocation3 + $0x7a8] sm:$0xff] }
 0x7ed   :  { %3078 = vmatprep.mubr.bf16.mxu1 %v4261_v8  ;;  %3242 = vmatprep.mubr.bf16.mxu0 %v4261_v8  ;;  %v2276_v8 = vld [vmem:[#allocation3 + $0x520] sm:$0xff] }
 0x7ef   :  { %3049 = vmatpush1.bf16.msra.mxu1 %v2252_v61  ;;  %3213 = vmatpush1.bf16.msra.mxu0 %v2254_v62  ;;  %v2359_v61 = vld [vmem:[#allocation3 + $0x7b8] sm:$0xff]  ;;  %v2356_v62 = vld [vmem:[#allocation3 + $0x7a0] sm:$0xff] }
 0x7f0   :  { %3050 = vmatprep.subr.bf16.mxu1 %v2261_v50  ;;  %3214 = vmatprep.subr.bf16.mxu0 %v2263_v46  ;;  %v2358_v50 = vld [vmem:[#allocation3 + $0x7b0] sm:$0xff]  ;;  %v2365_v46 = vld [vmem:[#allocation3 + $0x7e8] sm:$0xff] }
 0x7f3   :  { %3051 = vmatpush1.bf16.msra.mxu1 %v2260_v57  ;;  %3215 = vmatpush1.bf16.msra.mxu0 %v2262_v6  ;;  %v2367_v57 = vld [vmem:[#allocation3 + $0x7f8] sm:$0xff]  ;;  %v2364_v6 = vld [vmem:[#allocation3 + $0x7e0] sm:$0xff] }
 0x7f4   :  { %3052 = vmatprep.subr.bf16.mxu1 %v2269_v63  ;;  %3216 = vmatprep.subr.bf16.mxu0 %v2271_v32  ;;  %v2366_v63 = vld [vmem:[#allocation3 + $0x7f0] sm:$0xff]  ;;  %v2373_v32 = vld [vmem:[#allocation3 + $0x828] sm:$0xff] }
 0x7f7   :  { %3053 = vmatpush1.bf16.msra.mxu1 %v2268_v58  ;;  %3217 = vmatpush1.bf16.msra.mxu0 %v2270_v10  ;;  %v2375_v58 = vld [vmem:[#allocation3 + $0x838] sm:$0xff]  ;;  %v2372_v10 = vld [vmem:[#allocation3 + $0x820] sm:$0xff] }
 0x7f8   :  { %3054 = vmatprep.subr.bf16.mxu1 %v2277_v13  ;;  %3218 = vmatprep.subr.bf16.mxu0 %v2279_v14  ;;  %v2374_v13 = vld [vmem:[#allocation3 + $0x830] sm:$0xff]  ;;  %v2381_v14 = vld [vmem:[#allocation3 + $0x868] sm:$0xff] }
 0x7fb   :  { %3055 = vmatpush1.bf16.msra.mxu1 %v2276_v8  ;;  %3219 = vmatpush1.bf16.msra.mxu0 %v2278_v15  ;;  %v2383_v8 = vld [vmem:[#allocation3 + $0x878] sm:$0xff]  ;;  %v2380_v15 = vld [vmem:[#allocation3 + $0x860] sm:$0xff] }
 0x7fc   :  { %3056 = vmatprep.subr.bf16.mxu1 %v2285_v0  ;;  %3220 = vmatprep.subr.bf16.mxu0 %v2287_v4  ;;  %v2382_v0 = vld [vmem:[#allocation3 + $0x870] sm:$0xff]  ;;  %v2389_v4 = vld [vmem:[#allocation3 + $0x8a8] sm:$0xff] }
 0x7ff   :  { %3057 = vmatpush1.bf16.msra.mxu1 %v2284_v16  ;;  %3221 = vmatpush1.bf16.msra.mxu0 %v2286_v17  ;;  %v2391_v16 = vld [vmem:[#allocation3 + $0x8b8] sm:$0xff]  ;;  %v2388_v17 = vld [vmem:[#allocation3 + $0x8a0] sm:$0xff] }
 0x800   :  { %3058 = vmatprep.subr.bf16.mxu1 %v2293_v18  ;;  %3222 = vmatprep.subr.bf16.mxu0 %v2295_v21  ;;  %v2390_v18 = vld [vmem:[#allocation3 + $0x8b0] sm:$0xff]  ;;  %v2397_v21 = vld [vmem:[#allocation3 + $0x8e8] sm:$0xff] }
 0x803   :  { %3059 = vmatpush1.bf16.msra.mxu1 %v2292_v19  ;;  %3223 = vmatpush1.bf16.msra.mxu0 %v2294_v51  ;;  %v2396_v19 = vld [vmem:[#allocation3 + $0x8e0] sm:$0xff]  ;;  %v2398_v51 = vld [vmem:[#allocation3 + $0x8f0] sm:$0xff] }
 0x804   :  { %3060 = vmatprep.subr.bf16.mxu1 %v2301_v47  ;;  %3224 = vmatprep.subr.bf16.mxu0 %v2303_v23  ;;  %v2405_v47 = vld [vmem:[#allocation3 + $0x928] sm:$0xff]  ;;  %v2407_v23 = vld [vmem:[#allocation3 + $0x938] sm:$0xff] }
 0x807   :  { %3061 = vmatpush1.bf16.msra.mxu1 %v2300_v59  ;;  %3225 = vmatpush1.bf16.msra.mxu0 %v2302_v25  ;;  %v2406_v59 = vld [vmem:[#allocation3 + $0x930] sm:$0xff]  ;;  %v2413_v25 = vld [vmem:[#allocation3 + $0x968] sm:$0xff] }
 0x808   :  { %3062 = vmatprep.subr.bf16.mxu1 %v2309_v26  ;;  %3226 = vmatprep.subr.bf16.mxu0 %v2311_v27  ;;  %v2415_v26 = vld [vmem:[#allocation3 + $0x978] sm:$0xff]  ;;  %v2412_v27 = vld [vmem:[#allocation3 + $0x960] sm:$0xff] }
 0x80b   :  { %3063 = vmatpush1.bf16.msra.mxu1 %v2308_v28  ;;  %3227 = vmatpush1.bf16.msra.mxu0 %v2310_v3  ;;  %v2414_v28 = vld [vmem:[#allocation3 + $0x970] sm:$0xff]  ;;  %v2421_v3 = vld [vmem:[#allocation3 + $0x9a8] sm:$0xff] }
 0x80c   :  { %3064 = vmatprep.subr.bf16.mxu1 %v2317_v30  ;;  %3228 = vmatprep.subr.bf16.mxu0 %v2319_v31  ;;  %v2423_v30 = vld [vmem:[#allocation3 + $0x9b8] sm:$0xff]  ;;  %v2420_v31 = vld [vmem:[#allocation3 + $0x9a0] sm:$0xff] }
 0x80f   :  { %3065 = vmatpush1.bf16.msra.mxu1 %v2316_v38  ;;  %3229 = vmatpush1.bf16.msra.mxu0 %v2318_v39  ;;  %v2422_v38 = vld [vmem:[#allocation3 + $0x9b0] sm:$0xff]  ;;  %v2429_v39 = vld [vmem:[#allocation3 + $0x9e8] sm:$0xff] }
 0x810   :  { %3066 = vmatprep.subr.bf16.mxu1 %v2325_v34  ;;  %3230 = vmatprep.subr.bf16.mxu0 %v2327_v49  ;;  %v2431_v34 = vld [vmem:[#allocation3 + $0x9f8] sm:$0xff]  ;;  %v2428_v49 = vld [vmem:[#allocation3 + $0x9e0] sm:$0xff] }
 0x813   :  { %3067 = vmatpush1.bf16.msra.mxu1 %v2324_v40  ;;  %3231 = vmatpush1.bf16.msra.mxu0 %v2326_v41  ;;  %v2430_v40 = vld [vmem:[#allocation3 + $0x9f0] sm:$0xff]  ;;  %v2437_v41 = vld [vmem:[#allocation3 + $0xa28] sm:$0xff] }
 0x814   :  { %3068 = vmatprep.subr.bf16.mxu1 %v2333_v48  ;;  %3232 = vmatprep.subr.bf16.mxu0 %v2335_v42  ;;  %v2439_v48 = vld [vmem:[#allocation3 + $0xa38] sm:$0xff]  ;;  %v2436_v42 = vld [vmem:[#allocation3 + $0xa20] sm:$0xff] }
 0x817   :  { %3069 = vmatpush1.bf16.msra.mxu1 %v2332_v37  ;;  %3233 = vmatpush1.bf16.msra.mxu0 %v2334_v35  ;;  %v2438_v37 = vld [vmem:[#allocation3 + $0xa30] sm:$0xff]  ;;  %v2445_v35 = vld [vmem:[#allocation3 + $0xa68] sm:$0xff] }
 0x818   :  { %3070 = vmatprep.subr.bf16.mxu1 %v2341_v43  ;;  %3234 = vmatprep.subr.bf16.mxu0 %v2343_v44  ;;  %v2447_v43 = vld [vmem:[#allocation3 + $0xa78] sm:$0xff]  ;;  %v2444_v44 = vld [vmem:[#allocation3 + $0xa60] sm:$0xff] }
 0x81b   :  { %3071 = vmatpush1.bf16.msra.mxu1 %v2340_v36  ;;  %3235 = vmatpush1.bf16.msra.mxu0 %v2342_v24  ;;  %v2446_v36 = vld [vmem:[#allocation3 + $0xa70] sm:$0xff]  ;;  %v2453_v24 = vld [vmem:[#allocation3 + $0xaa8] sm:$0xff] }
 0x81c   :  { %3072 = vmatprep.subr.bf16.mxu1 %v2349_v29  ;;  %3236 = vmatprep.subr.bf16.mxu0 %v2351_v55  ;;  %v2455_v29 = vld [vmem:[#allocation3 + $0xab8] sm:$0xff]  ;;  %v2452_v55 = vld [vmem:[#allocation3 + $0xaa0] sm:$0xff] }
 0x81f   :  { %3073 = vmatpush1.bf16.msra.mxu1 %v2348_v20  ;;  %3237 = vmatpush1.bf16.msra.mxu0 %v2350_v60  ;;  %v2454_v20 = vld [vmem:[#allocation3 + $0xab0] sm:$0xff]  ;;  %v2461_v60 = vld [vmem:[#allocation3 + $0xae8] sm:$0xff] }
 0x820   :  { %3074 = vmatprep.subr.bf16.mxu1 %v2357_v56  ;;  %3238 = vmatprep.subr.bf16.mxu0 %v2359_v61  ;;  %v2463_v56 = vld [vmem:[#allocation3 + $0xaf8] sm:$0xff]  ;;  %v2460_v61 = vld [vmem:[#allocation3 + $0xae0] sm:$0xff] }
 0x823   :  { %3075 = vmatpush1.bf16.msra.mxu1 %v2356_v62  ;;  %3239 = vmatpush1.bf16.msra.mxu0 %v2358_v50  ;;  %v2462_v62 = vld [vmem:[#allocation3 + $0xaf0] sm:$0xff]  ;;  %v2469_v50 = vld [vmem:[#allocation3 + $0xb28] sm:$0xff] }
 0x824   :  { %3076 = vmatprep.subr.bf16.mxu1 %v2365_v46  ;;  %3240 = vmatprep.subr.bf16.mxu0 %v2367_v57  ;;  %v2471_v46 = vld [vmem:[#allocation3 + $0xb38] sm:$0xff]  ;;  %v2468_v57 = vld [vmem:[#allocation3 + $0xb20] sm:$0xff] }
 0x827   :  { %3077 = vmatpush1.bf16.msra.mxu1 %v2364_v6  ;;  %3241 = vmatpush1.bf16.msra.mxu0 %v2366_v63  ;;  %v2470_v6 = vld [vmem:[#allocation3 + $0xb30] sm:$0xff]  ;;  %v2477_v63 = vld [vmem:[#allocation3 + $0xb68] sm:$0xff] }
 0x828   :  { %3087 = vmatprep.subr.bf16.mxu1 %v2373_v32  ;;  %3251 = vmatprep.subr.bf16.mxu0 %v2375_v58  ;;  %v2479_v32 = vld [vmem:[#allocation3 + $0xb78] sm:$0xff]  ;;  %v2476_v58 = vld [vmem:[#allocation3 + $0xb60] sm:$0xff] }
 0x82a   :  { %3079 = vmatmul.mubr.bf16.vlgmr.msra.gmra.mrb[24].mxu1 %v4269_v45  ;;  %3243 = vmatmul.mubr.bf16.vlgmr.msra.gmra.mrb[20].mxu0 %v4269_v45  ;;  %v2399_v45 = vld [vmem:[#allocation3 + $0x8f8] sm:$0xff] }
 0x82b   :  { %3088 = vmatpush1.bf16.msra.mxu1 %v2372_v10  ;;  %3252 = vmatpush1.bf16.msra.mxu0 %v2374_v13  ;;  %v2478_v10 = vld [vmem:[#allocation3 + $0xb70] sm:$0xff]  ;;  %v2485_v13 = vld [vmem:[#allocation3 + $0xba8] sm:$0xff] }
 0x82c   :  { %3089 = vmatprep.subr.bf16.mxu1 %v2381_v14  ;;  %3253 = vmatprep.subr.bf16.mxu0 %v2383_v8  ;;  %v2487_v14 = vld [vmem:[#allocation3 + $0xbb8] sm:$0xff]  ;;  %v2484_v8 = vld [vmem:[#allocation3 + $0xba0] sm:$0xff] }
 0x82d   :  { %3119 = vmatprep.mubr.bf16.mxu1 %v4273_v1  ;;  %3283 = vmatprep.mubr.bf16.mxu0 %v4273_v1  ;;  %v2404_v1 = vld [vmem:[#allocation3 + $0x920] sm:$0xff] }
 0x82f   :  { %3090 = vmatpush1.bf16.msra.mxu1 %v2380_v15  ;;  %3254 = vmatpush1.bf16.msra.mxu0 %v2382_v0  ;;  %v2486_v15 = vld [vmem:[#allocation3 + $0xbb0] sm:$0xff]  ;;  %v2493_v0 = vld [vmem:[#allocation3 + $0xbe8] sm:$0xff] }
 0x830   :  { %3091 = vmatprep.subr.bf16.mxu1 %v2389_v4  ;;  %3255 = vmatprep.subr.bf16.mxu0 %v2391_v16  ;;  %v2495_v4 = vld [vmem:[#allocation3 + $0xbf8] sm:$0xff]  ;;  %v2492_v16 = vld [vmem:[#allocation3 + $0xbe0] sm:$0xff] }
 0x833   :  { %3092 = vmatpush1.bf16.msra.mxu1 %v2388_v17  ;;  %3256 = vmatpush1.bf16.msra.mxu0 %v2390_v18  ;;  %v2494_v17 = vld [vmem:[#allocation3 + $0xbf0] sm:$0xff]  ;;  %v2501_v18 = vld [vmem:[#allocation3 + $0xc28] sm:$0xff] }
 0x834   :  { %3093 = vmatprep.subr.bf16.mxu1 %v2397_v21  ;;  %3257 = vmatprep.subr.bf16.mxu0 %v2399_v45  ;;  %v2503_v21 = vld [vmem:[#allocation3 + $0xc38] sm:$0xff]  ;;  %v2500_v45 = vld [vmem:[#allocation3 + $0xc20] sm:$0xff] }
 0x837   :  { %3094 = vmatpush1.bf16.msra.mxu1 %v2396_v19  ;;  %3258 = vmatpush1.bf16.msra.mxu0 %v2398_v51  ;;  %v2502_v19 = vld [vmem:[#allocation3 + $0xc30] sm:$0xff]  ;;  %v2509_v51 = vld [vmem:[#allocation3 + $0xc68] sm:$0xff] }
 0x838   :  { %3095 = vmatprep.subr.bf16.mxu1 %v2405_v47  ;;  %3259 = vmatprep.subr.bf16.mxu0 %v2407_v23  ;;  %v2511_v47 = vld [vmem:[#allocation3 + $0xc78] sm:$0xff]  ;;  %v2508_v23 = vld [vmem:[#allocation3 + $0xc60] sm:$0xff] }
 0x83b   :  { %3096 = vmatpush1.bf16.msra.mxu1 %v2404_v1  ;;  %3260 = vmatpush1.bf16.msra.mxu0 %v2406_v59  ;;  %v2510_v1 = vld [vmem:[#allocation3 + $0xc70] sm:$0xff]  ;;  %v2517_v59 = vld [vmem:[#allocation3 + $0xca8] sm:$0xff] }
 0x83c   :  { %3097 = vmatprep.subr.bf16.mxu1 %v2413_v25  ;;  %3261 = vmatprep.subr.bf16.mxu0 %v2415_v26  ;;  %v2519_v25 = vld [vmem:[#allocation3 + $0xcb8] sm:$0xff]  ;;  %v2516_v26 = vld [vmem:[#allocation3 + $0xca0] sm:$0xff] }
 0x83f   :  { %3098 = vmatpush1.bf16.msra.mxu1 %v2412_v27  ;;  %3262 = vmatpush1.bf16.msra.mxu0 %v2414_v28  ;;  %v2518_v27 = vld [vmem:[#allocation3 + $0xcb0] sm:$0xff]  ;;  %v2525_v28 = vld [vmem:[#allocation3 + $0xce8] sm:$0xff] }
 0x840   :  { %3099 = vmatprep.subr.bf16.mxu1 %v2421_v3  ;;  %3263 = vmatprep.subr.bf16.mxu0 %v2423_v30  ;;  %v2625_v3 = vld [vmem:[#allocation13 + $0x45] ss:$8 sm:$0xf] }
 0x841   :  { %v2626_v30 = vld [vmem:[#allocation13 + $0x45] ss:$8 sm:$0xf0] }
 0x843   :  { %3100 = vmatpush1.bf16.msra.mxu1 %v2420_v31  ;;  %3264 = vmatpush1.bf16.msra.mxu0 %v2422_v38  ;;  %v2524_v31 = vld [vmem:[#allocation3 + $0xce0] sm:$0xff]  ;;  %v2526_v38 = vld [vmem:[#allocation3 + $0xcf0] sm:$0xff] }
 0x844   :  { %3101 = vmatprep.subr.bf16.mxu1 %v2429_v39  ;;  %3265 = vmatprep.subr.bf16.mxu0 %v2431_v34  ;;  %v2533_v39 = vld [vmem:[#allocation3 + $0xd28] sm:$0xff]  ;;  %v2535_v34 = vld [vmem:[#allocation3 + $0xd38] sm:$0xff] }
 0x847   :  { %3102 = vmatpush1.bf16.msra.mxu1 %v2428_v49  ;;  %3266 = vmatpush1.bf16.msra.mxu0 %v2430_v40  ;;  %v4311_v49 = vor.u32 %v2626_v30, %v2625_v3  ;;  %v2534_v40 = vld [vmem:[#allocation3 + $0xd30] sm:$0xff]  ;;  %v2596_v3 = vld [vmem:[#allocation3 + $0xf20] sm:$0xff] }
 0x848   :  { %3103 = vmatprep.subr.bf16.mxu1 %v2437_v41  ;;  %3267 = vmatprep.subr.bf16.mxu0 %v2439_v48  ;;  %v2541_v41 = vld [vmem:[#allocation3 + $0xd68] sm:$0xff]  ;;  %v2543_v48 = vld [vmem:[#allocation3 + $0xd78] sm:$0xff]  ;;  %v2598_v30 = vld [vmem:[#allocation3 + $0xf30] sm:$0xff] }
 0x84b   :  { %3104 = vmatpush1.bf16.msra.mxu1 %v2436_v42  ;;  %3268 = vmatpush1.bf16.msra.mxu0 %v2438_v37  ;;  %v2640_v42 = vrot.slane %v4311_v49, %v4097_v5  ;;  %v2648_v37 = vrot.slane %v4311_v49, %v4109_v9 }
 0x84c   :  { %3105 = vmatprep.subr.bf16.mxu1 %v2445_v35  ;;  %3269 = vmatprep.subr.bf16.mxu0 %v2447_v43  ;;  %v2644_v35 = vrot.slane %v4311_v49, %v4100_v7  ;;  %v2652_v43 = vrot.slane %v4311_v49, %v4112_v11 }
 0x84f   :  { %3106 = vmatpush1.bf16.msra.mxu1 %v2444_v44  ;;  %3270 = vmatpush1.bf16.msra.mxu0 %v2446_v36  ;;  %v2540_v44 = vld [vmem:[#allocation3 + $0xd60] sm:$0xff]  ;;  %v2542_v36 = vld [vmem:[#allocation3 + $0xd70] sm:$0xff] }
 0x850   :  { %3107 = vmatprep.subr.bf16.mxu1 %v2453_v24  ;;  %3271 = vmatprep.subr.bf16.mxu0 %v2455_v29 }
 0x853   :  { %3108 = vmatpush1.bf16.msra.mxu1 %v2452_v55  ;;  %3272 = vmatpush1.bf16.msra.mxu0 %v2454_v20  ;;  %v2549_v55 = vld [vmem:[#allocation3 + $0xda8] sm:$0xff]  ;;  %v2551_v20 = vld [vmem:[#allocation3 + $0xdb8] sm:$0xff] }
 0x854   :  { %3109 = vmatprep.subr.bf16.mxu1 %v2461_v60  ;;  %3273 = vmatprep.subr.bf16.mxu0 %v2463_v56 }
 0x857   :  { %3110 = vmatpush1.bf16.msra.mxu1 %v2460_v61  ;;  %3274 = vmatpush1.bf16.msra.mxu0 %v2462_v62 }
 0x858   :  { %3111 = vmatprep.subr.bf16.mxu1 %v2469_v50  ;;  %3275 = vmatprep.subr.bf16.mxu0 %v2471_v46 }
 0x85b   :  { %3112 = vmatpush1.bf16.msra.mxu1 %v2468_v57  ;;  %3276 = vmatpush1.bf16.msra.mxu0 %v2470_v6  ;;  %v2548_v57 = vld [vmem:[#allocation3 + $0xda0] sm:$0xff]  ;;  %v2550_v6 = vld [vmem:[#allocation3 + $0xdb0] sm:$0xff] }
 0x85c   :  { %3113 = vmatprep.subr.bf16.mxu1 %v2477_v63  ;;  %3277 = vmatprep.subr.bf16.mxu0 %v2479_v32  ;;  %v2557_v63 = vld [vmem:[#allocation3 + $0xde8] sm:$0xff]  ;;  %v2559_v32 = vld [vmem:[#allocation3 + $0xdf8] sm:$0xff] }
 0x85f   :  { %3114 = vmatpush1.bf16.msra.mxu1 %v2476_v58  ;;  %3278 = vmatpush1.bf16.msra.mxu0 %v2478_v10  ;;  %v2556_v58 = vld [vmem:[#allocation3 + $0xde0] sm:$0xff]  ;;  %v2558_v10 = vld [vmem:[#allocation3 + $0xdf0] sm:$0xff] }
 0x860   :  { %3115 = vmatprep.subr.bf16.mxu1 %v2485_v13  ;;  %3279 = vmatprep.subr.bf16.mxu0 %v2487_v14  ;;  %v2565_v13 = vld [vmem:[#allocation3 + $0xe28] sm:$0xff]  ;;  %v2567_v14 = vld [vmem:[#allocation3 + $0xe38] sm:$0xff] }
 0x863   :  { %3116 = vmatpush1.bf16.msra.mxu1 %v2484_v8  ;;  %3280 = vmatpush1.bf16.msra.mxu0 %v2486_v15  ;;  %v2564_v8 = vld [vmem:[#allocation3 + $0xe20] sm:$0xff]  ;;  %v2566_v15 = vld [vmem:[#allocation3 + $0xe30] sm:$0xff] }
 0x864   :  { %3117 = vmatprep.subr.bf16.mxu1 %v2493_v0  ;;  %3281 = vmatprep.subr.bf16.mxu0 %v2495_v4  ;;  %v2573_v0 = vld [vmem:[#allocation3 + $0xe68] sm:$0xff]  ;;  %v2575_v4 = vld [vmem:[#allocation3 + $0xe78] sm:$0xff] }
 0x867   :  { %3118 = vmatpush1.bf16.msra.mxu1 %v2492_v16  ;;  %3282 = vmatpush1.bf16.msra.mxu0 %v2494_v17 }
 0x868   :  { %3128 = vmatprep.subr.bf16.mxu1 %v2501_v18  ;;  %3292 = vmatprep.subr.bf16.mxu0 %v2503_v21  ;;  %v2572_v21 = vld [vmem:[#allocation3 + $0xe60] sm:$0xff] }
 0x86a   :  { %3120 = vmatmul.mubr.bf16.vlgmr.msra.gmra.mrb[24].mxu1 %v4281_v2  ;;  %3284 = vmatmul.mubr.bf16.vlgmr.msra.gmra.mrb[20].mxu0 %v4281_v2  ;;  %v2527_v2 = vld [vmem:[#allocation3 + $0xcf8] sm:$0xff] }
 0x86b   :  { %3129 = vmatpush1.bf16.msra.mxu1 %v2500_v45  ;;  %3293 = vmatpush1.bf16.msra.mxu0 %v2502_v19  ;;  %v2574_v45 = vld [vmem:[#allocation3 + $0xe70] sm:$0xff] }
 0x86c   :  { %3130 = vmatprep.subr.bf16.mxu1 %v2509_v51  ;;  %3294 = vmatprep.subr.bf16.mxu0 %v2511_v47  ;;  %v2581_v51 = vld [vmem:[#allocation3 + $0xea8] sm:$0xff]  ;;  %v2583_v47 = vld [vmem:[#allocation3 + $0xeb8] sm:$0xff] }
 0x86d   :  { %3160 = vmatprep.mubr.bf16.mxu1 %v4285_v22  ;;  %3324 = vmatprep.mubr.bf16.mxu0 %v4285_v22  ;;  %v2532_v22 = vld [vmem:[#allocation3 + $0xd20] sm:$0xff] }
 0x86f   :  { %3131 = vmatpush1.bf16.msra.mxu1 %v2508_v23  ;;  %3295 = vmatpush1.bf16.msra.mxu0 %v2510_v1  ;;  %v2580_v23 = vld [vmem:[#allocation3 + $0xea0] sm:$0xff]  ;;  %v2582_v1 = vld [vmem:[#allocation3 + $0xeb0] sm:$0xff] }
 0x870   :  { %3132 = vmatprep.subr.bf16.mxu1 %v2517_v59  ;;  %3296 = vmatprep.subr.bf16.mxu0 %v2519_v25  ;;  %v2589_v59 = vld [vmem:[#allocation3 + $0xee8] sm:$0xff]  ;;  %v2591_v25 = vld [vmem:[#allocation3 + $0xef8] sm:$0xff] }
 0x873   :  { %3133 = vmatpush1.bf16.msra.mxu1 %v2516_v26  ;;  %3297 = vmatpush1.bf16.msra.mxu0 %v2518_v27  ;;  %v2588_v26 = vld [vmem:[#allocation3 + $0xee0] sm:$0xff]  ;;  %v2590_v27 = vld [vmem:[#allocation3 + $0xef0] sm:$0xff] }
 0x874   :  { %3134 = vmatprep.subr.bf16.mxu1 %v2525_v28  ;;  %3298 = vmatprep.subr.bf16.mxu0 %v2527_v2  ;;  %v2597_v28 = vld [vmem:[#allocation3 + $0xf28] sm:$0xff]  ;;  %v2599_v2 = vld [vmem:[#allocation3 + $0xf38] sm:$0xff] }
 0x877   :  { %3135 = vmatpush1.bf16.msra.mxu1 %v2524_v31  ;;  %3299 = vmatpush1.bf16.msra.mxu0 %v2526_v38  ;;  %v2605_v31 = vld [vmem:[#allocation3 + $0xf68] sm:$0xff]  ;;  %v2607_v38 = vld [vmem:[#allocation3 + $0xf78] sm:$0xff] }
 0x878   :  { %3136 = vmatprep.subr.bf16.mxu1 %v2533_v39  ;;  %3300 = vmatprep.subr.bf16.mxu0 %v2535_v34  ;;  %v2604_v39 = vld [vmem:[#allocation3 + $0xf60] sm:$0xff]  ;;  %v2606_v34 = vld [vmem:[#allocation3 + $0xf70] sm:$0xff] }
 0x87b   :  { %3137 = vmatpush1.bf16.msra.mxu1 %v2532_v22  ;;  %3301 = vmatpush1.bf16.msra.mxu0 %v2534_v40  ;;  %v2613_v22 = vld [vmem:[#allocation3 + $0xfa8] sm:$0xff]  ;;  %v2615_v40 = vld [vmem:[#allocation3 + $0xfb8] sm:$0xff] }
 0x87c   :  { %3138 = vmatprep.subr.bf16.mxu1 %v2541_v41  ;;  %3302 = vmatprep.subr.bf16.mxu0 %v2543_v48  ;;  %v2612_v41 = vld [vmem:[#allocation3 + $0xfa0] sm:$0xff]  ;;  %v2614_v48 = vld [vmem:[#allocation3 + $0xfb0] sm:$0xff] }
 0x87d   :  { %v2834_v24 = vpop.f32.mrb[20].mxu1  ;;  %v2998_v29 = vpop.f32.mrb[16].mxu0 }
 0x87e   :  { %v3500_v5 = vadd.f32 %v2834_v24, %v2640_v42  ;;  %v3502_v60 = vadd.f32 %v2998_v29, %v2648_v37  ;;  %v2836_v56 = vpop.f32.mrb[21].mxu1  ;;  %v3000_v9 = vpop.f32.mrb[17].mxu0  ;;  %v2621_v42 = vld [vmem:[#allocation3 + $0xfe8] sm:$0xff]  ;;  %v2623_v37 = vld [vmem:[#allocation3 + $0xff8] sm:$0xff]  ;;  %v2660_v24 = vrot.slane %v4311_v49, %v4212_v53  ;;  %v2668_v29 = vrot.slane %v4311_v49, %v4215_v54 }
 0x87f   :  { %v3501_v61 = vadd.f32 %v2836_v56, %v2644_v35  ;;  %v3503_v62 = vadd.f32 %v3000_v9, %v2652_v43  ;;  %v2838_v50 = vpop.f32.mrb[22].mxu1  ;;  %v3002_v46 = vpop.f32.mrb[18].mxu0  ;;  %3139 = vmatpush1.bf16.msra.mxu1 %v2540_v44  ;;  %3303 = vmatpush1.bf16.msra.mxu0 %v2542_v36  ;;  %v2620_v35 = vld [vmem:[#allocation3 + $0xfe0] sm:$0xff]  ;;  %v2622_v43 = vld [vmem:[#allocation3 + $0xff0] sm:$0xff]  ;;  %v2656_v44 = vrot.slane %v4311_v49, %v4206_v52 }
 0x880   :  { %3752 = vtanh.f32 %v3500_v5  ;;  %v2839_v7 = vpop.f32.mrb[23].mxu1  ;;  %v3003_v11 = vpop.f32.mrb[19].mxu0  ;;  %3140 = vmatprep.subr.bf16.mxu1 %v2549_v55  ;;  %3304 = vmatprep.subr.bf16.mxu0 %v2551_v20  ;;  %v2664_v36 = vrot.slane %v4311_v49, %v4209_v33 }
 0x881   :  { %3754 = vtanh.f32 %v3502_v60 }
 0x882   :  { %3756 = vtanh.f32 %v3501_v61 }
 0x883   :  { %3758 = vtanh.f32 %v3503_v62  ;;  %3141 = vmatpush1.bf16.msra.mxu1 %v2548_v57  ;;  %3305 = vmatpush1.bf16.msra.mxu0 %v2550_v6 }
 0x884   :  { %3142 = vmatprep.subr.bf16.mxu1 %v2557_v63  ;;  %3306 = vmatprep.subr.bf16.mxu0 %v2559_v32 }
 0x887   :  { %3143 = vmatpush1.bf16.msra.mxu1 %v2556_v58  ;;  %3307 = vmatpush1.bf16.msra.mxu0 %v2558_v10 }
 0x888   :  { %3144 = vmatprep.subr.bf16.mxu1 %v2565_v13  ;;  %3308 = vmatprep.subr.bf16.mxu0 %v2567_v14 }
 0x88a   :  { %v3753_v16 = vpop.eup %3752 }
 0x88b   :  { %v3755_v17 = vpop.eup %3754  ;;  %3341 = vst [vmem:[%s4363_s8] sm:$0xff] %v3753_v16  ;;  %3145 = vmatpush1.bf16.msra.mxu1 %v2564_v8  ;;  %3309 = vmatpush1.bf16.msra.mxu0 %v2566_v15 }
 0x88c   :  { %v3757_v18 = vpop.eup %3756  ;;  %3343 = vst [vmem:[%s4363_s8 + $0x10] sm:$0xff] %v3755_v17  ;;  %3146 = vmatprep.subr.bf16.mxu1 %v2573_v0  ;;  %3310 = vmatprep.subr.bf16.mxu0 %v2575_v4 }
 0x88d   :  { %v3759_v19 = vpop.eup %3758  ;;  %3342 = vst [vmem:[%s4363_s8 + $0x8] sm:$0xff] %v3757_v18 }
 0x88e   :  { %3344 = vst [vmem:[%s4363_s8 + $0x18] sm:$0xff] %v3759_v19 }
 0x88f   :  { %3147 = vmatpush1.bf16.msra.mxu1 %v2572_v21  ;;  %3311 = vmatpush1.bf16.msra.mxu0 %v2574_v45 }
 0x890   :  { %3148 = vmatprep.subr.bf16.mxu1 %v2581_v51  ;;  %3312 = vmatprep.subr.bf16.mxu0 %v2583_v47 }
 0x893   :  { %3149 = vmatpush1.bf16.msra.mxu1 %v2580_v23  ;;  %3313 = vmatpush1.bf16.msra.mxu0 %v2582_v1 }
 0x894   :  { %3150 = vmatprep.subr.bf16.mxu1 %v2589_v59  ;;  %3314 = vmatprep.subr.bf16.mxu0 %v2591_v25 }
 0x897   :  { %3151 = vmatpush1.bf16.msra.mxu1 %v2588_v26  ;;  %3315 = vmatpush1.bf16.msra.mxu0 %v2590_v27 }
 0x898   :  { %3152 = vmatprep.subr.bf16.mxu1 %v2597_v28  ;;  %3316 = vmatprep.subr.bf16.mxu0 %v2599_v2 }
 0x89b   :  { %3153 = vmatpush1.bf16.msra.mxu1 %v2596_v3  ;;  %3317 = vmatpush1.bf16.msra.mxu0 %v2598_v30 }
 0x89c   :  { %3154 = vmatprep.subr.bf16.mxu1 %v2605_v31  ;;  %3318 = vmatprep.subr.bf16.mxu0 %v2607_v38 }
 0x89f   :  { %3155 = vmatpush1.bf16.msra.mxu1 %v2604_v39  ;;  %3319 = vmatpush1.bf16.msra.mxu0 %v2606_v34 }
 0x8a0   :  { %3156 = vmatprep.subr.bf16.mxu1 %v2613_v22  ;;  %3320 = vmatprep.subr.bf16.mxu0 %v2615_v40 }
 0x8a3   :  { %3157 = vmatpush1.bf16.msra.mxu1 %v2612_v41  ;;  %3321 = vmatpush1.bf16.msra.mxu0 %v2614_v48 }
 0x8a4   :  { %3158 = vmatprep.subr.bf16.mxu1 %v2621_v42  ;;  %3322 = vmatprep.subr.bf16.mxu0 %v2623_v37 }
 0x8a7   :  { %3159 = vmatpush1.bf16.msra.mxu1 %v2620_v35  ;;  %3323 = vmatpush1.bf16.msra.mxu0 %v2622_v43 }
 0x8aa   :  { %3161 = vmatmul.mubr.bf16.vlgmr.msra.gmra.mrb[24].mxu1 %v4293_v12  ;;  %3325 = vmatmul.mubr.bf16.vlgmr.msra.gmra.mrb[20].mxu0 %v4293_v12 }
 0x97d   :  { %v3162_v55 = vpop.f32.mrb[24].mxu1  ;;  %v3326_v20 = vpop.f32.mrb[20].mxu0 }
 0x97e   :  { %v3504_v5 = vadd.f32 %v3162_v55, %v2656_v44  ;;  %v3506_v60 = vadd.f32 %v3326_v20, %v2664_v36  ;;  %v3164_v56 = vpop.f32.mrb[25].mxu1  ;;  %v3328_v9 = vpop.f32.mrb[21].mxu0 }
 0x97f   :  { %v3505_v61 = vadd.f32 %v3164_v56, %v2660_v24  ;;  %v3507_v12 = vadd.f32 %v3328_v9, %v2668_v29  ;;  %v3166_v62 = vpop.f32.mrb[26].mxu1  ;;  %v3330_v50 = vpop.f32.mrb[22].mxu0 }
 0x980   :  { %3760 = vtanh.f32 %v3504_v5  ;;  %v3167_v52 = vpop.f32.mrb[27].mxu1  ;;  %v3331_v46 = vpop.f32.mrb[23].mxu0 }
 0x981   :  { %3762 = vtanh.f32 %v3506_v60 }
 0x982   :  { %3764 = vtanh.f32 %v3505_v61 }
 0x983   :  { %3766 = vtanh.f32 %v3507_v12 }
 0x98a   :  { %v3761_v33 = vpop.eup %3760 }
 0x98b   :  { %v3763_v53 = vpop.eup %3762  ;;  %3345 = vst [vmem:[%s4363_s8 + $0x20] sm:$0xff] %v3761_v33 }
 0x98c   :  { %v3765_v54 = vpop.eup %3764  ;;  %3347 = vst [vmem:[%s4363_s8 + $0x30] sm:$0xff] %v3763_v53 }
 0x98d   :  { %v3767_v49 = vpop.eup %3766  ;;  %3346 = vst [vmem:[%s4363_s8 + $0x28] sm:$0xff] %v3765_v54 }
 0x98e   :  { %3348 = vst [vmem:[%s4363_s8 + $0x38] sm:$0xff] %v3767_v49 }
 0x98f   :  { %3353 = vsyncpa [#allocation6], 1 }
 0x990   :  { %3354 = vsyncpa [#allocation8], 1 }
 0x991   :  { %3355 = vsyncpa [#allocation11], 1 }
 0x992   :  { %3356 = vsyncpa [#allocation14], 1 }
 0x993   :  { %3357 = vsyncmov [#allocation4] }
 0x996   :  { %s3358_s23 = vpop.sfrf %3357 }
 0x997   :  { %p3462_p6 = scmp.ne.s32.totalorder %s3358_s23, 0 }
 0x999   :  { %3362 = shalt.err (%p3462_p6)  }
 0x99a   :  { %3364 = vsyncmov [#allocation4 + $0x1] }
 0x99d   :  { %s3365_s3 = vpop.sfrf %3364 }
 0x99e   :  { %p3463_p7 = scmp.ne.s32.totalorder %s3365_s3, 0 }
 0x9a0   :  { %3369 = shalt.err (%p3463_p7)  }

</bundles_post_ra>
